<compile_context>
chip_gen: v6e
topology: v6e:2x2x1
jax: 0.10.0
libtpu: 0.0.40
codegen_flags: <defaults>
</compile_context>

<pallas_src>
import functools

import jax
import jax.numpy as jnp
from jax.experimental import pallas as pl
from jax.experimental.pallas import tpu as pltpu

LANES = 128                        # lane width of a vreg / dense store width
COMPUTE_DTYPE = jnp.bfloat16       # MXU input dtype for the big streamed operands
PAD_MULTIPLE = 512                 # N padded up to a multiple of this (= row tile)
ROW_TILE = 512                     # aggregation row tile
RED_TILE = 1024                    # aggregation reduction tile (falls back to 512)
RESIDENT_XW_BUDGET = 24 << 20      # cap on double-buffered resident XW (v7x 64MiB VMEM safe)
VMEM_LIMIT = 48 << 20              # scoped VMEM limit (<= ~56 MiB for v7x headroom)


def _round_up(x, m):
    return ((x + m - 1) // m) * m


def _pad_lanes(m, width=LANES):
    """Zero-pad the last dim of a 2-D array up to `width` lanes."""
    pad = width - m.shape[-1]
    if pad <= 0:
        return m
    return jnp.pad(m, ((0, 0), (0, pad)))


# ----------------------------------------------------------------------------
# Layer-1 feature transform: (N_pad, F) @ (F, 128) -> (N_pad, 128), run once.
# ----------------------------------------------------------------------------
def _linear_kernel(x_ref, w_ref, o_ref):
    o_ref[...] = jnp.dot(
        x_ref[...], w_ref[...], preferred_element_type=jnp.float32
    ).astype(o_ref.dtype)


def _linear(x, w_pad, *, out_dtype, row_tile=ROW_TILE):
    n, f = x.shape
    assert n % row_tile == 0
    return pl.pallas_call(
        _linear_kernel,
        out_shape=jax.ShapeDtypeStruct((n, LANES), out_dtype),
        grid=(n // row_tile,),
        in_specs=[
            pl.BlockSpec((row_tile, f), lambda i: (i, 0)),
            pl.BlockSpec((f, LANES), lambda i: (0, 0)),
        ],
        out_specs=pl.BlockSpec((row_tile, LANES), lambda i: (i, 0)),
        compiler_params=pltpu.CompilerParams(
            dimension_semantics=("parallel",),
            vmem_limit_bytes=VMEM_LIMIT,
        ),
    )(x, w_pad)


# ----------------------------------------------------------------------------
# Aggregation: OUT[i-tile] = relu?(A[i-tile, :] @ XW + bias) (@ W_post)?
# Row-tiled + reduction-tiled; f32 VMEM accumulator; XW resident in VMEM and
# sliced with pl.ds per reduction step (tiled fallback for very large N);
# optional fused post-weight (layer-2 feature transform) in the epilogue.
# ----------------------------------------------------------------------------
def _aggregate_kernel(*refs, apply_relu, fuse_post, xw_resident, red_tile):
    if fuse_post:
        a_ref, xw_ref, b_ref, w_post_ref, o_ref, acc_ref = refs
    else:
        a_ref, xw_ref, b_ref, o_ref, acc_ref = refs
        w_post_ref = None

    k = pl.program_id(1)

    @pl.when(k == 0)
    def _():
        acc_ref[...] = jnp.zeros_like(acc_ref)

    if xw_resident:
        start = pl.multiple_of(k * red_tile, red_tile)
        xw = xw_ref[pl.ds(start, red_tile), :]
    else:
        xw = xw_ref[...]

    acc_ref[...] += jnp.dot(a_ref[...], xw, preferred_element_type=jnp.float32)

    @pl.when(k == pl.num_programs(1) - 1)
    def _():
        r = acc_ref[...] + b_ref[...]
        if apply_relu:
            r = jnp.maximum(r, 0.0)
        if fuse_post:
            r = jnp.dot(r.astype(w_post_ref.dtype), w_post_ref[...],
                        preferred_element_type=jnp.float32)
        o_ref[...] = r.astype(o_ref.dtype)


def _aggregate(a, xw, b_pad, *, apply_relu, out_dtype, w_post=None,
               row_tile=ROW_TILE, red_tile=RED_TILE,
               resident_budget=RESIDENT_XW_BUDGET):
    n = a.shape[0]
    assert n % row_tile == 0
    tm = row_tile
    tk = red_tile if n % red_tile == 0 else row_tile

    # XW (N_pad x 128 bf16) is tiny vs A; keep it resident in VMEM unless the
    # double-buffered copy would blow the (v7x-sized) budget.
    xw_resident = 2 * n * LANES * xw.dtype.itemsize <= resident_budget
    fuse_post = w_post is not None

    kernel = functools.partial(
        _aggregate_kernel, apply_relu=apply_relu, fuse_post=fuse_post,
        xw_resident=xw_resident, red_tile=tk)

    if xw_resident:
        # Whole array, constant block index -> DMA'd once, revisited thereafter.
        xw_spec = pl.BlockSpec((n, LANES), lambda i, k: (0, 0))
    else:
        # Large-N fallback: stream the reduction tile (re-fetched per row tile).
        xw_spec = pl.BlockSpec((tk, LANES), lambda i, k: (k, 0))

    in_specs = [
        pl.BlockSpec((tm, tk), lambda i, k: (i, k)),      # A row/col tile (bf16)
        xw_spec,                                          # XW (resident or tiled)
        pl.BlockSpec((1, LANES), lambda i, k: (0, 0)),    # bias, resident
    ]
    operands = [a, xw, b_pad]
    if fuse_post:
        in_specs.append(pl.BlockSpec((LANES, LANES), lambda i, k: (0, 0)))
        operands.append(w_post)

    a_bytes = a.size * a.dtype.itemsize
    xw_bytes = xw.size * xw.dtype.itemsize * (1 if xw_resident else n // tm)
    out_bytes = n * LANES * jnp.dtype(out_dtype).itemsize
    cost = pl.CostEstimate(
        flops=2 * n * n * LANES + (2 * n * LANES * LANES if fuse_post else 0),
        transcendentals=0,
        bytes_accessed=a_bytes + xw_bytes + out_bytes,
    )

    return pl.pallas_call(
        kernel,
        out_shape=jax.ShapeDtypeStruct((n, LANES), out_dtype),
        grid=(n // tm, n // tk),
        in_specs=in_specs,
        out_specs=pl.BlockSpec((tm, LANES), lambda i, k: (i, 0)),
        scratch_shapes=[pltpu.VMEM((tm, LANES), jnp.float32)],
        compiler_params=pltpu.CompilerParams(
            dimension_semantics=("parallel", "arbitrary"),
            vmem_limit_bytes=VMEM_LIMIT,
        ),
        cost_estimate=cost,
    )(*operands)


# ----------------------------------------------------------------------------
# Full forward pass.
# ----------------------------------------------------------------------------
def mesh_gnn_forward(x, a_norm, w1, b1, w2, b2, *, compute_dtype=COMPUTE_DTYPE):
    n, _ = x.shape
    hidden = w1.shape[1]
    out_features = w2.shape[1]
    assert hidden <= LANES and out_features <= LANES

    n_pad = _round_up(max(n, a_norm.shape[0]), PAD_MULTIPLE)

    a = a_norm.astype(compute_dtype)          # no-op if already built in bf16
    if a.shape[0] != n_pad:
        # TODO(synk): build the padded bf16 adjacency upstream to skip this pass.
        a = jnp.pad(a, ((0, n_pad - a.shape[0]), (0, n_pad - a.shape[1])))

    x_pad = jnp.pad(x, ((0, n_pad - n), (0, 0))).astype(compute_dtype)

    # Layer-1 feature transform, once: XW1 = X @ W1, lane-padded to 128, bf16.
    w1_pad = _pad_lanes(w1).astype(compute_dtype)            # (F_in, 128)
    xw1 = _linear(x_pad, w1_pad, out_dtype=compute_dtype)    # (N_pad, 128)

    # Layer-1 aggregation with layer-2's feature transform fused in the epilogue:
    #   HW2 = relu(A @ XW1 + b1) @ W2        (W2_pad 128x128 bf16, VMEM-resident)
    b1_pad = _pad_lanes(b1).astype(jnp.float32)
    w2_pad = jnp.zeros((LANES, LANES), jnp.float32)
    w2_pad = w2_pad.at[:hidden, :out_features].set(w2).astype(compute_dtype)
    hw2 = _aggregate(a, xw1, b1_pad, apply_relu=True, w_post=w2_pad,
                     out_dtype=compute_dtype)

    # Layer-2 aggregation: OUT = A @ HW2 + b2
    b2_pad = _pad_lanes(b2).astype(jnp.float32)
    out_pad = _aggregate(a, hw2, b2_pad, apply_relu=False, out_dtype=jnp.float32)

    return out_pad[:n, :out_features]


# ----------------------------------------------------------------------------
# Glue: sparse edge_index -> dense normalized adjacency (not the hot path).
# ----------------------------------------------------------------------------
def build_normalized_adjacency(edge_index, num_nodes, *, num_nodes_padded=None,
                               dtype=COMPUTE_DTYPE):
    """Dense gcn_norm (scatter-add of duplicate edges, self-loops, sym norm).

    Built directly at the padded size and in the kernel's streaming dtype so no
    separate O(N^2) cast/pad pass hits HBM before the aggregation kernels.
    Padded rows/cols have degree 0 and come out exactly zero.
    """
    n_pad = num_nodes_padded or num_nodes
    src, dst = edge_index[0], edge_index[1]
    a = jnp.zeros((n_pad, n_pad), jnp.float32).at[dst, src].add(1.0)
    eye = jnp.pad(jnp.eye(num_nodes, dtype=jnp.float32),
                  ((0, n_pad - num_nodes), (0, n_pad - num_nodes)))
    a = a + eye
    deg = jnp.sum(a, axis=1)
    dinv = jnp.where(deg > 0, 1.0 / jnp.sqrt(deg), 0.0)
    return (dinv[:, None] * a * dinv[None, :]).astype(dtype)


def glorot(key, shape):
    fan_in, fan_out = shape
    limit = jnp.sqrt(6.0 / (fan_in + fan_out))
    return jax.random.uniform(key, shape, jnp.float32, -limit, limit)


if __name__ == "__main__":
    # Small shapes consistent with MeshGNN(in_features, hidden_dim, out_features).
    num_nodes = 64
    num_edges = 256
    in_features, hidden_dim, out_features = 16, 32, 8

    key = jax.random.PRNGKey(0)
    k_x, k_e, k_w1, k_w2 = jax.random.split(key, 4)

    x = jax.random.normal(k_x, (num_nodes, in_features), jnp.float32)
    edge_index = jax.random.randint(k_e, (2, num_edges), 0, num_nodes, jnp.int32)

    # GCNConv init: glorot weights, zero bias.
    w1 = glorot(k_w1, (in_features, hidden_dim))
    b1 = jnp.zeros((1, hidden_dim), jnp.float32)
    w2 = glorot(k_w2, (hidden_dim, out_features))
    b2 = jnp.zeros((1, out_features), jnp.float32)

    # Adjacency built padded + bf16 so the kernel streams it without extra passes.
    n_pad = _round_up(num_nodes, PAD_MULTIPLE)
    a_bf16 = build_normalized_adjacency(
        edge_index, num_nodes, num_nodes_padded=n_pad, dtype=COMPUTE_DTYPE)

    fwd = jax.jit(mesh_gnn_forward)
    out = fwd(x, a_bf16, w1, b1, w2, b2)
    jax.block_until_ready(out)
    assert out.shape == (num_nodes, out_features)

    # Reference 1: same numerics as the kernel (bf16 MXU inputs, f32 accumulation).
    dt = COMPUTE_DTYPE
    a_ref = a_bf16[:num_nodes, :num_nodes]
    xw1_r = jnp.dot(x.astype(dt), w1.astype(dt),
                    preferred_element_type=jnp.float32).astype(dt)
    h_r = jnp.maximum(jnp.dot(a_ref, xw1_r,
                              preferred_element_type=jnp.float32) + b1, 0.0)
    hw2_r = jnp.dot(h_r.astype(dt), w2.astype(dt),
                    preferred_element_type=jnp.float32).astype(dt)
    ref_bf16 = jnp.dot(a_ref, hw2_r, preferred_element_type=jnp.float32) + b2
    assert jnp.allclose(out, ref_bf16, atol=1e-3, rtol=1e-3), \
        float(jnp.max(jnp.abs(out - ref_bf16)))

    # Reference 2: pure f32 math (semantics of the PyTorch module); bf16 streaming
    # of A / XW introduces only a small bounded error.
    a_f32 = build_normalized_adjacency(edge_index, num_nodes, dtype=jnp.float32)
    ref_f32 = a_f32 @ (jnp.maximum(a_f32 @ (x @ w1) + b1, 0.0) @ w2) + b2
    assert jnp.allclose(out, ref_f32, atol=5e-2, rtol=5e-2), \
        float(jnp.max(jnp.abs(out - ref_f32)))

    print("KERNEL_OK")
</pallas_src>

<mosaic_0001>
module attributes {stable_mosaic.version = 11 : i64} {
  func.func @_aggregate_kernel(%arg0: i32, %arg1: i32, %arg2: memref<512x512xbf16, #tpu.memory_space<vmem>>, %arg3: memref<512x128xbf16, #tpu.memory_space<vmem>>, %arg4: memref<1x128xf32, #tpu.memory_space<vmem>>, %arg5: memref<128x128xbf16, #tpu.memory_space<vmem>>, %arg6: memref<512x128xbf16, #tpu.memory_space<vmem>>, %arg7: memref<512x128xf32, #tpu.memory_space<vmem>>) attributes {dimension_semantics = [#tpu.dimension_semantics<parallel>, #tpu.dimension_semantics<arbitrary>], iteration_bounds = array<i64: 1, 1>, scalar_prefetch = 0 : i64, scratch_operands = 1 : i64, tpu.core_type = #tpu.core_type<tc>, window_params = [{transform_indices = @transform_0, window_bounds = array<i64: 512, 512>}, {pipeline_mode = #tpu.pipeline_mode<synchronous>, transform_indices = @transform_1, window_bounds = array<i64: 512, 128>}, {pipeline_mode = #tpu.pipeline_mode<synchronous>, transform_indices = @transform_2, window_bounds = array<i64: 1, 128>}, {pipeline_mode = #tpu.pipeline_mode<synchronous>, transform_indices = @transform_3, window_bounds = array<i64: 128, 128>}, {transform_indices = @transform_4, window_bounds = array<i64: 512, 128>}]} {
    %c0_i32 = arith.constant 0 : i32
    %0 = arith.cmpi eq, %arg1, %c0_i32 : i32
    %1 = arith.extui %0 : i1 to i32
    %c0_i32_0 = arith.constant 0 : i32
    %2 = arith.cmpi ne, %1, %c0_i32_0 : i32
    scf.if %2 {
      %cst_9 = arith.constant 0.000000e+00 : f32
      %15 = vector.broadcast %cst_9 : f32 to vector<512x128xf32>
      %c0_10 = arith.constant 0 : index
      %c0_11 = arith.constant 0 : index
      %16 = vector.load %arg7[%c0_10, %c0_11] : memref<512x128xf32, #tpu.memory_space<vmem>>, vector<512x128xf32>
      tpu.vector_store %arg7[%c0_10, %c0_11], %15 {strides = array<i32>} : memref<512x128xf32, #tpu.memory_space<vmem>>, vector<512x128xf32>,
    } else {
    }
    %c512_i32 = arith.constant 512 : i32
    %3 = arith.muli %arg1, %c512_i32 : i32
    %4 = tpu.assume_multiple %3, 512 : i32
    %5 = arith.index_cast %4 : i32 to index
    %c0 = arith.constant 0 : index
    %6 = vector.load %arg3[%5, %c0] : memref<512x128xbf16, #tpu.memory_space<vmem>>, vector<512x128xbf16>
    %c0_1 = arith.constant 0 : index
    %c0_2 = arith.constant 0 : index
    %7 = vector.load %arg7[%c0_1, %c0_2] : memref<512x128xf32, #tpu.memory_space<vmem>>, vector<512x128xf32>
    %c0_3 = arith.constant 0 : index
    %c0_4 = arith.constant 0 : index
    %8 = vector.load %arg2[%c0_3, %c0_4] : memref<512x512xbf16, #tpu.memory_space<vmem>>, vector<512x512xbf16>
    %cst = arith.constant dense<0.000000e+00> : vector<512x128xf32>
    %9 = tpu.matmul %8, %6, %cst {dimension_numbers = #tpu.dot_dimension_numbers<[1], [0], [0], [1], [0, 0, 1, 1], [], []>} : vector<512x512xbf16>, vector<512x128xbf16>, vector<512x128xf32> -> vector<512x128xf32>
    %10 = arith.addf %7, %9 : vector<512x128xf32>
    %c0_5 = arith.constant 0 : index
    %c0_6 = arith.constant 0 : index
    %11 = vector.load %arg7[%c0_5, %c0_6] : memref<512x128xf32, #tpu.memory_space<vmem>>, vector<512x128xf32>
    tpu.vector_store %arg7[%c0_5, %c0_6], %10 {strides = array<i32>} : memref<512x128xf32, #tpu.memory_space<vmem>>, vector<512x128xf32>,
    %c0_i32_7 = arith.constant 0 : i32
    %12 = arith.cmpi eq, %arg1, %c0_i32_7 : i32
    %13 = arith.extui %12 : i1 to i32
    %c0_i32_8 = arith.constant 0 : i32
    %14 = arith.cmpi ne, %13, %c0_i32_8 : i32
    scf.if %14 {
      %c0_9 = arith.constant 0 : index
      %c0_10 = arith.constant 0 : index
      %15 = vector.load %arg7[%c0_9, %c0_10] : memref<512x128xf32, #tpu.memory_space<vmem>>, vector<512x128xf32>
      %c0_11 = arith.constant 0 : index
      %c0_12 = arith.constant 0 : index
      %16 = vector.load %arg4[%c0_11, %c0_12] : memref<1x128xf32, #tpu.memory_space<vmem>>, vector<1x128xf32>
      %17 = vector.broadcast %16 : vector<1x128xf32> to vector<512x128xf32>
      %18 = arith.addf %15, %17 : vector<512x128xf32>
      %cst_13 = arith.constant 0.000000e+00 : f32
      %19 = vector.broadcast %cst_13 : f32 to vector<512x128xf32>
      %20 = arith.maximumf %18, %19 : vector<512x128xf32>
      %21 = arith.truncf %20 : vector<512x128xf32> to vector<512x128xbf16>
      %c0_14 = arith.constant 0 : index
      %c0_15 = arith.constant 0 : index
      %22 = vector.load %arg5[%c0_14, %c0_15] : memref<128x128xbf16, #tpu.memory_space<vmem>>, vector<128x128xbf16>
      %cst_16 = arith.constant dense<0.000000e+00> : vector<512x128xf32>
      %23 = tpu.matmul %21, %22, %cst_16 {dimension_numbers = #tpu.dot_dimension_numbers<[1], [0], [0], [1], [0, 0, 1, 1], [], []>} : vector<512x128xbf16>, vector<128x128xbf16>, vector<512x128xf32> -> vector<512x128xf32>
      %24 = arith.truncf %23 : vector<512x128xf32> to vector<512x128xbf16>
      %c0_17 = arith.constant 0 : index
      %c0_18 = arith.constant 0 : index
      %25 = vector.load %arg6[%c0_17, %c0_18] : memref<512x128xbf16, #tpu.memory_space<vmem>>, vector<512x128xbf16>
      tpu.vector_store %arg6[%c0_17, %c0_18], %24 {strides = array<i32>} : memref<512x128xbf16, #tpu.memory_space<vmem>>, vector<512x128xbf16>,
    } else {
    }
    return
  }
  func.func @transform_0(%arg0: i32, %arg1: i32) -> (i32, i32) {
    %c0_i32 = arith.constant 0 : i32
    return %arg0, %arg1 : i32, i32
  }
  func.func @transform_1(%arg0: i32, %arg1: i32) -> (i32, i32) {
    %c0_i32 = arith.constant 0 : i32
    %c0_i32_0 = arith.constant 0 : i32
    %c0_i32_1 = arith.constant 0 : i32
    return %c0_i32, %c0_i32_0 : i32, i32
  }
  func.func @transform_2(%arg0: i32, %arg1: i32) -> (i32, i32) {
    %c0_i32 = arith.constant 0 : i32
    %c0_i32_0 = arith.constant 0 : i32
    %c0_i32_1 = arith.constant 0 : i32
    return %c0_i32, %c0_i32_0 : i32, i32
  }
  func.func @transform_3(%arg0: i32, %arg1: i32) -> (i32, i32) {
    %c0_i32 = arith.constant 0 : i32
    %c0_i32_0 = arith.constant 0 : i32
    %c0_i32_1 = arith.constant 0 : i32
    return %c0_i32, %c0_i32_0 : i32, i32
  }
  func.func @transform_4(%arg0: i32, %arg1: i32) -> (i32, i32) {
    %c0_i32 = arith.constant 0 : i32
    %c0_i32_0 = arith.constant 0 : i32
    return %arg0, %c0_i32 : i32, i32
  }
}

module attributes {stable_mosaic.version = 11 : i64} {
  func.func @_linear_kernel(%arg0: i32, %arg1: memref<512x16xbf16, #tpu.memory_space<vmem>>, %arg2: memref<16x128xbf16, #tpu.memory_space<vmem>>, %arg3: memref<512x128xbf16, #tpu.memory_space<vmem>>) attributes {dimension_semantics = [#tpu.dimension_semantics<parallel>], iteration_bounds = array<i64: 1>, scalar_prefetch = 0 : i64, scratch_operands = 0 : i64, tpu.core_type = #tpu.core_type<tc>, window_params = [{transform_indices = @transform_0, window_bounds = array<i64: 512, 16>}, {pipeline_mode = #tpu.pipeline_mode<synchronous>, transform_indices = @transform_1, window_bounds = array<i64: 16, 128>}, {transform_indices = @transform_2, window_bounds = array<i64: 512, 128>}]} {
    %c0 = arith.constant 0 : index
    %c0_0 = arith.constant 0 : index
    %0 = vector.load %arg1[%c0, %c0_0] : memref<512x16xbf16, #tpu.memory_space<vmem>>, vector<512x16xbf16>
    %c0_1 = arith.constant 0 : index
    %c0_2 = arith.constant 0 : index
    %1 = vector.load %arg2[%c0_1, %c0_2] : memref<16x128xbf16, #tpu.memory_space<vmem>>, vector<16x128xbf16>
    %cst = arith.constant dense<0.000000e+00> : vector<512x128xf32>
    %2 = tpu.matmul %0, %1, %cst {dimension_numbers = #tpu.dot_dimension_numbers<[1], [0], [0], [1], [0, 0, 1, 1], [], []>} : vector<512x16xbf16>, vector<16x128xbf16>, vector<512x128xf32> -> vector<512x128xf32>
    %3 = arith.truncf %2 : vector<512x128xf32> to vector<512x128xbf16>
    %c0_3 = arith.constant 0 : index
    %c0_4 = arith.constant 0 : index
    %4 = vector.load %arg3[%c0_3, %c0_4] : memref<512x128xbf16, #tpu.memory_space<vmem>>, vector<512x128xbf16>
    tpu.vector_store %arg3[%c0_3, %c0_4], %3 {strides = array<i32>} : memref<512x128xbf16, #tpu.memory_space<vmem>>, vector<512x128xbf16>,
    return
  }
  func.func @transform_0(%arg0: i32) -> (i32, i32) {
    %c0_i32 = arith.constant 0 : i32
    %c0_i32_0 = arith.constant 0 : i32
    return %arg0, %c0_i32 : i32, i32
  }
  func.func @transform_1(%arg0: i32) -> (i32, i32) {
    %c0_i32 = arith.constant 0 : i32
    %c0_i32_0 = arith.constant 0 : i32
    %c0_i32_1 = arith.constant 0 : i32
    return %c0_i32, %c0_i32_0 : i32, i32
  }
  func.func @transform_2(%arg0: i32) -> (i32, i32) {
    %c0_i32 = arith.constant 0 : i32
    %c0_i32_0 = arith.constant 0 : i32
    return %arg0, %c0_i32 : i32, i32
  }
}

module attributes {stable_mosaic.version = 11 : i64} {
  func.func @_aggregate_kernel(%arg0: i32, %arg1: i32, %arg2: memref<512x512xbf16, #tpu.memory_space<vmem>>, %arg3: memref<512x128xbf16, #tpu.memory_space<vmem>>, %arg4: memref<1x128xf32, #tpu.memory_space<vmem>>, %arg5: memref<512x128xf32, #tpu.memory_space<vmem>>, %arg6: memref<512x128xf32, #tpu.memory_space<vmem>>) attributes {dimension_semantics = [#tpu.dimension_semantics<parallel>, #tpu.dimension_semantics<arbitrary>], iteration_bounds = array<i64: 1, 1>, scalar_prefetch = 0 : i64, scratch_operands = 1 : i64, tpu.core_type = #tpu.core_type<tc>, window_params = [{transform_indices = @transform_0, window_bounds = array<i64: 512, 512>}, {pipeline_mode = #tpu.pipeline_mode<synchronous>, transform_indices = @transform_1, window_bounds = array<i64: 512, 128>}, {pipeline_mode = #tpu.pipeline_mode<synchronous>, transform_indices = @transform_2, window_bounds = array<i64: 1, 128>}, {transform_indices = @transform_3, window_bounds = array<i64: 512, 128>}]} {
    %c0_i32 = arith.constant 0 : i32
    %0 = arith.cmpi eq, %arg1, %c0_i32 : i32
    %1 = arith.extui %0 : i1 to i32
    %c0_i32_0 = arith.constant 0 : i32
    %2 = arith.cmpi ne, %1, %c0_i32_0 : i32
    scf.if %2 {
      %cst_9 = arith.constant 0.000000e+00 : f32
      %15 = vector.broadcast %cst_9 : f32 to vector<512x128xf32>
      %c0_10 = arith.constant 0 : index
      %c0_11 = arith.constant 0 : index
      %16 = vector.load %arg6[%c0_10, %c0_11] : memref<512x128xf32, #tpu.memory_space<vmem>>, vector<512x128xf32>
      tpu.vector_store %arg6[%c0_10, %c0_11], %15 {strides = array<i32>} : memref<512x128xf32, #tpu.memory_space<vmem>>, vector<512x128xf32>,
    } else {
    }
    %c512_i32 = arith.constant 512 : i32
    %3 = arith.muli %arg1, %c512_i32 : i32
    %4 = tpu.assume_multiple %3, 512 : i32
    %5 = arith.index_cast %4 : i32 to index
    %c0 = arith.constant 0 : index
    %6 = vector.load %arg3[%5, %c0] : memref<512x128xbf16, #tpu.memory_space<vmem>>, vector<512x128xbf16>
    %c0_1 = arith.constant 0 : index
    %c0_2 = arith.constant 0 : index
    %7 = vector.load %arg6[%c0_1, %c0_2] : memref<512x128xf32, #tpu.memory_space<vmem>>, vector<512x128xf32>
    %c0_3 = arith.constant 0 : index
    %c0_4 = arith.constant 0 : index
    %8 = vector.load %arg2[%c0_3, %c0_4] : memref<512x512xbf16, #tpu.memory_space<vmem>>, vector<512x512xbf16>
    %cst = arith.constant dense<0.000000e+00> : vector<512x128xf32>
    %9 = tpu.matmul %8, %6, %cst {dimension_numbers = #tpu.dot_dimension_numbers<[1], [0], [0], [1], [0, 0, 1, 1], [], []>} : vector<512x512xbf16>, vector<512x128xbf16>, vector<512x128xf32> -> vector<512x128xf32>
    %10 = arith.addf %7, %9 : vector<512x128xf32>
    %c0_5 = arith.constant 0 : index
    %c0_6 = arith.constant 0 : index
    %11 = vector.load %arg6[%c0_5, %c0_6] : memref<512x128xf32, #tpu.memory_space<vmem>>, vector<512x128xf32>
    tpu.vector_store %arg6[%c0_5, %c0_6], %10 {strides = array<i32>} : memref<512x128xf32, #tpu.memory_space<vmem>>, vector<512x128xf32>,
    %c0_i32_7 = arith.constant 0 : i32
    %12 = arith.cmpi eq, %arg1, %c0_i32_7 : i32
    %13 = arith.extui %12 : i1 to i32
    %c0_i32_8 = arith.constant 0 : i32
    %14 = arith.cmpi ne, %13, %c0_i32_8 : i32
    scf.if %14 {
      %c0_9 = arith.constant 0 : index
      %c0_10 = arith.constant 0 : index
      %15 = vector.load %arg6[%c0_9, %c0_10] : memref<512x128xf32, #tpu.memory_space<vmem>>, vector<512x128xf32>
      %c0_11 = arith.constant 0 : index
      %c0_12 = arith.constant 0 : index
      %16 = vector.load %arg4[%c0_11, %c0_12] : memref<1x128xf32, #tpu.memory_space<vmem>>, vector<1x128xf32>
      %17 = vector.broadcast %16 : vector<1x128xf32> to vector<512x128xf32>
      %18 = arith.addf %15, %17 : vector<512x128xf32>
      %c0_13 = arith.constant 0 : index
      %c0_14 = arith.constant 0 : index
      %19 = vector.load %arg5[%c0_13, %c0_14] : memref<512x128xf32, #tpu.memory_space<vmem>>, vector<512x128xf32>
      tpu.vector_store %arg5[%c0_13, %c0_14], %18 {strides = array<i32>} : memref<512x128xf32, #tpu.memory_space<vmem>>, vector<512x128xf32>,
    } else {
    }
    return
  }
  func.func @transform_0(%arg0: i32, %arg1: i32) -> (i32, i32) {
    %c0_i32 = arith.constant 0 : i32
    return %arg0, %arg1 : i32, i32
  }
  func.func @transform_1(%arg0: i32, %arg1: i32) -> (i32, i32) {
    %c0_i32 = arith.constant 0 : i32
    %c0_i32_0 = arith.constant 0 : i32
    %c0_i32_1 = arith.constant 0 : i32
    return %c0_i32, %c0_i32_0 : i32, i32
  }
  func.func @transform_2(%arg0: i32, %arg1: i32) -> (i32, i32) {
    %c0_i32 = arith.constant 0 : i32
    %c0_i32_0 = arith.constant 0 : i32
    %c0_i32_1 = arith.constant 0 : i32
    return %c0_i32, %c0_i32_0 : i32, i32
  }
  func.func @transform_3(%arg0: i32, %arg1: i32) -> (i32, i32) {
    %c0_i32 = arith.constant 0 : i32
    %c0_i32_0 = arith.constant 0 : i32
    return %arg0, %c0_i32 : i32, i32
  }
}

</mosaic_0001>

<bundles_post_ra>
// kernel: mesh_gnn_forward.3
= control target key start
LH: loop header
LB: loop body
LE: loop exit
PB: predicated region body
PF: predicated region fallthrough
CT: control target
= control target key end

     0   :  { %vm244_vm0 = vcmask 130048   ;;  %s1714_s1 = inlined_call_operand.vmem [shape: bf16[16,128], index: 1, kind: input, shape index: {}]   ;;  %s1715_s0 = inlined_call_operand.vmem [shape: bf16[512,16], index: 0, kind: input, shape index: {}]   ;;  %s1716_s2 = inlined_call_operand.vmem [shape: bf16[512,128], index: 2, kind: output, shape index: {}]  }
   0x1   :  { %v1439_v0 = vld [vmem:[%s1714_s1] sm:$0xff]   ;;  %v1442_v3 = vld [vmem:[%s1715_s0 + $0x8] sm:$0xff]   ;;  %v1444_v5 = vld [vmem:[%s1715_s0 + $0x10] sm:$0xff]  }
   0x2   :  { %v1440_v1 = vld [vmem:[%s1715_s0] sm:$0xff]   ;;  %1371 = vmatprep.subr.bf16.mxu0 %v1439_v0  ;;  %1437 = vmatprep.subr.bf16.mxu1 %v1439_v0  ;;  %v1443_v4 = vld [vmem:[%s1715_s0 + $0x88] sm:$0xff]   ;;  %v1445_v6 = vld [vmem:[%s1715_s0 + $0x90] sm:$0xff]  }
   0x3   :  { %v1441_v2 = vld [vmem:[%s1715_s0 + $0x80] sm:$0xff]   ;;  %1372 = vmatpush3.bf16.msra.mxu0 %v1439_v0  ;;  %1438 = vmatpush3.bf16.msra.mxu1 %v1439_v0  ;;  %v1446_v7 = vld [vmem:[%s1715_s0 + $0x18] sm:$0xff]   ;;  %v1450_v11 = vld [vmem:[%s1715_s0 + $0x28] sm:$0xff]  }
   0x4   :  { %1373 = vmatprep.mubr.msk.bf16.mxu0 %vm244_vm0, %v1440_v1  ;;  %1405 = vmatprep.mubr.msk.bf16.mxu1 %vm244_vm0, %v1441_v2  ;;  %v1447_v8 = vld [vmem:[%s1715_s0 + $0x98] sm:$0xff]   ;;  %v1448_v9 = vld [vmem:[%s1715_s0 + $0x20] sm:$0xff]   ;;  %v1451_v12 = vld [vmem:[%s1715_s0 + $0xa8] sm:$0xff]  }
   0x5   :  { %v1449_v10 = vld [vmem:[%s1715_s0 + $0xa0] sm:$0xff]   ;;  %v1452_v13 = vld [vmem:[%s1715_s0 + $0x30] sm:$0xff]   ;;  %v1454_v15 = vld [vmem:[%s1715_s0 + $0x38] sm:$0xff]  }
   0x6   :  { %1374 = vmatmul.mubr.msk.bf16.vlgmr.msra.gmra.mxu0 %vm244_vm0, %v1442_v3  ;;  %1406 = vmatmul.mubr.msk.bf16.vlgmr.msra.gmra.mxu1 %vm244_vm0, %v1443_v4  ;;  %v1453_v14 = vld [vmem:[%s1715_s0 + $0xb0] sm:$0xff]   ;;  %v1455_v16 = vld [vmem:[%s1715_s0 + $0xb8] sm:$0xff]   ;;  %v1456_v17 = vld [vmem:[%s1715_s0 + $0x40] sm:$0xff]  }
   0x7   :  { %1377 = vmatprep.mubr.msk.bf16.mxu0 %vm244_vm0, %v1444_v5  ;;  %1409 = vmatprep.mubr.msk.bf16.mxu1 %vm244_vm0, %v1445_v6  ;;  %v1457_v18 = vld [vmem:[%s1715_s0 + $0xc0] sm:$0xff]   ;;  %v1458_v19 = vld [vmem:[%s1715_s0 + $0x48] sm:$0xff]   ;;  %v1460_v21 = vld [vmem:[%s1715_s0 + $0x50] sm:$0xff]  }
   0x8   :  { %v1459_v20 = vld [vmem:[%s1715_s0 + $0xc8] sm:$0xff]   ;;  %v1461_v22 = vld [vmem:[%s1715_s0 + $0xd0] sm:$0xff]   ;;  %v1462_v23 = vld [vmem:[%s1715_s0 + $0x58] sm:$0xff]  }
   0x9   :  { %v1463_v24 = vld [vmem:[%s1715_s0 + $0xd8] sm:$0xff]   ;;  %v1464_v25 = vld [vmem:[%s1715_s0 + $0x60] sm:$0xff]   ;;  %v1466_v27 = vld [vmem:[%s1715_s0 + $0x68] sm:$0xff]  }
   0xa   :  { %v1465_v26 = vld [vmem:[%s1715_s0 + $0xe0] sm:$0xff]   ;;  %v1467_v28 = vld [vmem:[%s1715_s0 + $0xe8] sm:$0xff]   ;;  %v1468_v29 = vld [vmem:[%s1715_s0 + $0x70] sm:$0xff]  }
   0xb   :  { %v1469_v30 = vld [vmem:[%s1715_s0 + $0xf0] sm:$0xff]   ;;  %v1470_v31 = vld [vmem:[%s1715_s0 + $0x78] sm:$0xff]  }
   0xc   :  { %v1471_v32 = vld [vmem:[%s1715_s0 + $0xf8] sm:$0xff]  }
   0xe   :  { %1378 = vmatmul.mubr.msk.bf16.gmra.mxu0 %vm244_vm0, %v1446_v7  ;;  %1410 = vmatmul.mubr.msk.bf16.gmra.mxu1 %vm244_vm0, %v1447_v8 }
   0xf   :  { %1381 = vmatprep.mubr.msk.bf16.mxu0 %vm244_vm0, %v1448_v9  ;;  %1413 = vmatprep.mubr.msk.bf16.mxu1 %vm244_vm0, %v1449_v10 }
  0x16   :  { %1382 = vmatmul.mubr.msk.bf16.gmra.mxu0 %vm244_vm0, %v1450_v11  ;;  %1414 = vmatmul.mubr.msk.bf16.gmra.mxu1 %vm244_vm0, %v1451_v12 }
  0x17   :  { %1385 = vmatprep.mubr.msk.bf16.mxu0 %vm244_vm0, %v1452_v13  ;;  %1417 = vmatprep.mubr.msk.bf16.mxu1 %vm244_vm0, %v1453_v14 }
  0x1e   :  { %1386 = vmatmul.mubr.msk.bf16.gmra.mxu0 %vm244_vm0, %v1454_v15  ;;  %1418 = vmatmul.mubr.msk.bf16.gmra.mxu1 %vm244_vm0, %v1455_v16 }
  0x1f   :  { %1389 = vmatprep.mubr.msk.bf16.mxu0 %vm244_vm0, %v1456_v17  ;;  %1421 = vmatprep.mubr.msk.bf16.mxu1 %vm244_vm0, %v1457_v18 }
  0x26   :  { %1390 = vmatmul.mubr.msk.bf16.gmra.mxu0 %vm244_vm0, %v1458_v19  ;;  %1422 = vmatmul.mubr.msk.bf16.gmra.mxu1 %vm244_vm0, %v1459_v20 }
  0x27   :  { %1393 = vmatprep.mubr.msk.bf16.mxu0 %vm244_vm0, %v1460_v21  ;;  %1425 = vmatprep.mubr.msk.bf16.mxu1 %vm244_vm0, %v1461_v22 }
  0x2e   :  { %1394 = vmatmul.mubr.msk.bf16.gmra.mxu0 %vm244_vm0, %v1462_v23  ;;  %1426 = vmatmul.mubr.msk.bf16.gmra.mxu1 %vm244_vm0, %v1463_v24 }
  0x2f   :  { %1397 = vmatprep.mubr.msk.bf16.mxu0 %vm244_vm0, %v1464_v25  ;;  %1429 = vmatprep.mubr.msk.bf16.mxu1 %vm244_vm0, %v1465_v26 }
  0x36   :  { %1398 = vmatmul.mubr.msk.bf16.gmra.mxu0 %vm244_vm0, %v1466_v27  ;;  %1430 = vmatmul.mubr.msk.bf16.gmra.mxu1 %vm244_vm0, %v1467_v28 }
  0x37   :  { %1401 = vmatprep.mubr.msk.bf16.mxu0 %vm244_vm0, %v1468_v29  ;;  %1433 = vmatprep.mubr.msk.bf16.mxu1 %vm244_vm0, %v1469_v30 }
  0x3e   :  { %1402 = vmatmul.mubr.msk.bf16.gmra.mxu0 %vm244_vm0, %v1470_v31  ;;  %1434 = vmatmul.mubr.msk.bf16.gmra.mxu1 %vm244_vm0, %v1471_v32 }
  0xc6   :  { %v1375_v33 = vpop.f32.mrf.mxu0  ;;  %v1407_v34 = vpop.f32.mrf.mxu1 }
  0xc8   :  { %v375_v35 = vpop.f32.mrf.mxu0  ;;  %v503_v36 = vpop.f32.mrf.mxu1 }
  0xca   :  { %v1376_v37 = vpop.f32.mrf.mxu0  ;;  %v1408_v38 = vpop.f32.mrf.mxu1 }
  0xcb   :  { %v1155_v39 = vpack.c.bf16 %v1376_v37, %v1375_v33  ;;  %v1235_v40 = vpack.c.bf16 %v1408_v38, %v1407_v34 }
  0xcc   :  { %v378_v41 = vpop.f32.mrf.mxu0  ;;  %v506_v42 = vpop.f32.mrf.mxu1 }
  0xcd   :  { %1307 = vst [vmem:[%s1716_s2 + $0x8] sm:$0xff] %v1155_v39   ;;  %1323 = vst [vmem:[%s1716_s2 + $0x88] sm:$0xff] %v1235_v40   ;;  %v1150_v43 = vpack.c.bf16 %v378_v41, %v375_v35  ;;  %v1230_v44 = vpack.c.bf16 %v506_v42, %v503_v36 }
  0xce   :  { %v1379_v45 = vpop.f32.mrf.mxu0  ;;  %v1411_v46 = vpop.f32.mrf.mxu1 }
  0xcf   :  { %1151 = vst [vmem:[%s1716_s2] sm:$0xff] %v1150_v43   ;;  %1322 = vst [vmem:[%s1716_s2 + $0x80] sm:$0xff] %v1230_v44  }
  0xd0   :  { %v391_v47 = vpop.f32.mrf.mxu0  ;;  %v519_v48 = vpop.f32.mrf.mxu1 }
  0xd2   :  { %v1380_v49 = vpop.f32.mrf.mxu0  ;;  %v1412_v50 = vpop.f32.mrf.mxu1 }
  0xd3   :  { %v1165_v51 = vpack.c.bf16 %v1380_v49, %v1379_v45  ;;  %v1245_v52 = vpack.c.bf16 %v1412_v50, %v1411_v46 }
  0xd4   :  { %v394_v53 = vpop.f32.mrf.mxu0  ;;  %v522_v54 = vpop.f32.mrf.mxu1 }
  0xd5   :  { %1309 = vst [vmem:[%s1716_s2 + $0x18] sm:$0xff] %v1165_v51   ;;  %1325 = vst [vmem:[%s1716_s2 + $0x98] sm:$0xff] %v1245_v52   ;;  %v1160_v55 = vpack.c.bf16 %v394_v53, %v391_v47  ;;  %v1240_v56 = vpack.c.bf16 %v522_v54, %v519_v48 }
  0xd6   :  { %v1383_v57 = vpop.f32.mrf.mxu0  ;;  %v1415_v58 = vpop.f32.mrf.mxu1 }
  0xd7   :  { %1308 = vst [vmem:[%s1716_s2 + $0x10] sm:$0xff] %v1160_v55   ;;  %1324 = vst [vmem:[%s1716_s2 + $0x90] sm:$0xff] %v1240_v56  }
  0xd8   :  { %v407_v59 = vpop.f32.mrf.mxu0  ;;  %v535_v60 = vpop.f32.mrf.mxu1 }
  0xda   :  { %v1384_v61 = vpop.f32.mrf.mxu0  ;;  %v1416_v62 = vpop.f32.mrf.mxu1 }
  0xdb   :  { %v1175_v63 = vpack.c.bf16 %v1384_v61, %v1383_v57  ;;  %v1255_v0 = vpack.c.bf16 %v1416_v62, %v1415_v58 }
  0xdc   :  { %v410_v1 = vpop.f32.mrf.mxu0  ;;  %v538_v2 = vpop.f32.mrf.mxu1 }
  0xdd   :  { %1311 = vst [vmem:[%s1716_s2 + $0x28] sm:$0xff] %v1175_v63   ;;  %1327 = vst [vmem:[%s1716_s2 + $0xa8] sm:$0xff] %v1255_v0   ;;  %v1170_v3 = vpack.c.bf16 %v410_v1, %v407_v59  ;;  %v1250_v4 = vpack.c.bf16 %v538_v2, %v535_v60 }
  0xde   :  { %v1387_v5 = vpop.f32.mrf.mxu0  ;;  %v1419_v6 = vpop.f32.mrf.mxu1 }
  0xdf   :  { %1310 = vst [vmem:[%s1716_s2 + $0x20] sm:$0xff] %v1170_v3   ;;  %1326 = vst [vmem:[%s1716_s2 + $0xa0] sm:$0xff] %v1250_v4  }
  0xe0   :  { %v423_v7 = vpop.f32.mrf.mxu0  ;;  %v551_v8 = vpop.f32.mrf.mxu1 }
  0xe2   :  { %v1388_v9 = vpop.f32.mrf.mxu0  ;;  %v1420_v10 = vpop.f32.mrf.mxu1 }
  0xe3   :  { %v1185_v11 = vpack.c.bf16 %v1388_v9, %v1387_v5  ;;  %v1265_v12 = vpack.c.bf16 %v1420_v10, %v1419_v6 }
  0xe4   :  { %v426_v13 = vpop.f32.mrf.mxu0  ;;  %v554_v14 = vpop.f32.mrf.mxu1 }
  0xe5   :  { %1313 = vst [vmem:[%s1716_s2 + $0x38] sm:$0xff] %v1185_v11   ;;  %1329 = vst [vmem:[%s1716_s2 + $0xb8] sm:$0xff] %v1265_v12   ;;  %v1180_v15 = vpack.c.bf16 %v426_v13, %v423_v7  ;;  %v1260_v16 = vpack.c.bf16 %v554_v14, %v551_v8 }
  0xe6   :  { %v1391_v17 = vpop.f32.mrf.mxu0  ;;  %v1423_v18 = vpop.f32.mrf.mxu1 }
  0xe7   :  { %1312 = vst [vmem:[%s1716_s2 + $0x30] sm:$0xff] %v1180_v15   ;;  %1328 = vst [vmem:[%s1716_s2 + $0xb0] sm:$0xff] %v1260_v16  }
  0xe8   :  { %v439_v19 = vpop.f32.mrf.mxu0  ;;  %v567_v20 = vpop.f32.mrf.mxu1 }
  0xea   :  { %v1392_v21 = vpop.f32.mrf.mxu0  ;;  %v1424_v22 = vpop.f32.mrf.mxu1 }
  0xeb   :  { %v1195_v23 = vpack.c.bf16 %v1392_v21, %v1391_v17  ;;  %v1275_v24 = vpack.c.bf16 %v1424_v22, %v1423_v18 }
  0xec   :  { %v442_v25 = vpop.f32.mrf.mxu0  ;;  %v570_v26 = vpop.f32.mrf.mxu1 }
  0xed   :  { %1315 = vst [vmem:[%s1716_s2 + $0x48] sm:$0xff] %v1195_v23   ;;  %1331 = vst [vmem:[%s1716_s2 + $0xc8] sm:$0xff] %v1275_v24   ;;  %v1190_v27 = vpack.c.bf16 %v442_v25, %v439_v19  ;;  %v1270_v28 = vpack.c.bf16 %v570_v26, %v567_v20 }
  0xee   :  { %v1395_v29 = vpop.f32.mrf.mxu0  ;;  %v1427_v30 = vpop.f32.mrf.mxu1 }
  0xef   :  { %1314 = vst [vmem:[%s1716_s2 + $0x40] sm:$0xff] %v1190_v27   ;;  %1330 = vst [vmem:[%s1716_s2 + $0xc0] sm:$0xff] %v1270_v28  }
  0xf0   :  { %v455_v31 = vpop.f32.mrf.mxu0  ;;  %v583_v32 = vpop.f32.mrf.mxu1 }
  0xf2   :  { %v1396_v33 = vpop.f32.mrf.mxu0  ;;  %v1428_v34 = vpop.f32.mrf.mxu1 }
  0xf3   :  { %v1205_v35 = vpack.c.bf16 %v1396_v33, %v1395_v29  ;;  %v1285_v36 = vpack.c.bf16 %v1428_v34, %v1427_v30 }
  0xf4   :  { %v458_v37 = vpop.f32.mrf.mxu0  ;;  %v586_v38 = vpop.f32.mrf.mxu1 }
  0xf5   :  { %1317 = vst [vmem:[%s1716_s2 + $0x58] sm:$0xff] %v1205_v35   ;;  %1333 = vst [vmem:[%s1716_s2 + $0xd8] sm:$0xff] %v1285_v36   ;;  %v1200_v39 = vpack.c.bf16 %v458_v37, %v455_v31  ;;  %v1280_v40 = vpack.c.bf16 %v586_v38, %v583_v32 }
  0xf6   :  { %v1399_v41 = vpop.f32.mrf.mxu0  ;;  %v1431_v42 = vpop.f32.mrf.mxu1 }
  0xf7   :  { %1316 = vst [vmem:[%s1716_s2 + $0x50] sm:$0xff] %v1200_v39   ;;  %1332 = vst [vmem:[%s1716_s2 + $0xd0] sm:$0xff] %v1280_v40  }
  0xf8   :  { %v471_v43 = vpop.f32.mrf.mxu0  ;;  %v599_v44 = vpop.f32.mrf.mxu1 }
  0xfa   :  { %v1400_v45 = vpop.f32.mrf.mxu0  ;;  %v1432_v46 = vpop.f32.mrf.mxu1 }
  0xfb   :  { %v1215_v47 = vpack.c.bf16 %v1400_v45, %v1399_v41  ;;  %v1295_v48 = vpack.c.bf16 %v1432_v46, %v1431_v42 }
  0xfc   :  { %v474_v49 = vpop.f32.mrf.mxu0  ;;  %v602_v50 = vpop.f32.mrf.mxu1 }
  0xfd   :  { %1319 = vst [vmem:[%s1716_s2 + $0x68] sm:$0xff] %v1215_v47   ;;  %1335 = vst [vmem:[%s1716_s2 + $0xe8] sm:$0xff] %v1295_v48   ;;  %v1210_v51 = vpack.c.bf16 %v474_v49, %v471_v43  ;;  %v1290_v52 = vpack.c.bf16 %v602_v50, %v599_v44 }
  0xfe   :  { %v1403_v53 = vpop.f32.mrf.mxu0  ;;  %v1435_v54 = vpop.f32.mrf.mxu1 }
  0xff   :  { %1318 = vst [vmem:[%s1716_s2 + $0x60] sm:$0xff] %v1210_v51   ;;  %1334 = vst [vmem:[%s1716_s2 + $0xe0] sm:$0xff] %v1290_v52  }
 0x100   :  { %v487_v55 = vpop.f32.mrf.mxu0  ;;  %v615_v56 = vpop.f32.mrf.mxu1 }
 0x102   :  { %v1404_v57 = vpop.f32.mrf.mxu0  ;;  %v1436_v58 = vpop.f32.mrf.mxu1 }
 0x103   :  { %v1225_v59 = vpack.c.bf16 %v1404_v57, %v1403_v53  ;;  %v1305_v60 = vpack.c.bf16 %v1436_v58, %v1435_v54 }
 0x104   :  { %v490_v61 = vpop.f32.mrf.mxu0  ;;  %v618_v62 = vpop.f32.mrf.mxu1 }
 0x105   :  { %1321 = vst [vmem:[%s1716_s2 + $0x78] sm:$0xff] %v1225_v59   ;;  %1337 = vst [vmem:[%s1716_s2 + $0xf8] sm:$0xff] %v1305_v60   ;;  %v1220_v63 = vpack.c.bf16 %v490_v61, %v487_v55  ;;  %v1300_v0 = vpack.c.bf16 %v618_v62, %v615_v56 }
 0x107   :  { %1320 = vst [vmem:[%s1716_s2 + $0x70] sm:$0xff] %v1220_v63   ;;  %1336 = vst [vmem:[%s1716_s2 + $0xf0] sm:$0xff] %v1300_v0  }

// kernel: mesh_gnn_forward.5
= control target key start
LH: loop header
LB: loop body
LE: loop exit
PB: predicated region body
PF: predicated region fallthrough
CT: control target
= control target key end

     0   :  { %v2476_v0 = vmov 0   ;;  %s3270_s1 = inlined_call_operand.vmem [shape: bf16[512,128], index: 1, kind: input, shape index: {}]   ;;  %s3271_s0 = inlined_call_operand.vmem [shape: bf16[512,512], index: 0, kind: input, shape index: {}]   ;;  %s3272_s2 = inlined_call_operand.vmem [shape: f32[1,128], index: 2, kind: input, shape index: {}]   ;;  %s3273_s3 = inlined_call_operand.vmem [shape: f32[512,128], index: 3, kind: output, shape index: {}]  }
   0x1   :  { %1176 = vmatprep.subr.bf16.mxu0 %v2476_v0  ;;  %1465 = vmatprep.subr.bf16.mxu1 %v2476_v0  ;;  %v2252_v1 = vld [vmem:[%s3270_s1 + $0x38] sm:$0xff]   ;;  %v2254_v3 = vld [vmem:[%s3270_s1 + $0x30] sm:$0xff]   ;;  %v2256_v5 = vld [vmem:[%s3270_s1 + $0x28] sm:$0xff]  }
   0x2   :  { %v2253_v2 = vld [vmem:[%s3270_s1 + $0xb8] sm:$0xff]   ;;  %1177 = vmatpush1.bf16.msra.mxu0 %v2252_v1  ;;  %v2255_v4 = vld [vmem:[%s3270_s1 + $0xb0] sm:$0xff]   ;;  %v2257_v6 = vld [vmem:[%s3270_s1 + $0xa8] sm:$0xff]  }
   0x3   :  { %1466 = vmatpush1.bf16.msra.mxu1 %v2253_v2  ;;  %1178 = vmatprep.subr.bf16.mxu0 %v2476_v0  ;;  %v2258_v7 = vld [vmem:[%s3270_s1 + $0x20] sm:$0xff]   ;;  %v2260_v9 = vld [vmem:[%s3270_s1 + $0x18] sm:$0xff]   ;;  %v2262_v11 = vld [vmem:[%s3270_s1 + $0x10] sm:$0xff]  }
   0x4   :  { %1467 = vmatprep.subr.bf16.mxu1 %v2476_v0  ;;  %v2259_v8 = vld [vmem:[%s3270_s1 + $0xa0] sm:$0xff]   ;;  %v2261_v10 = vld [vmem:[%s3270_s1 + $0x98] sm:$0xff]   ;;  %v2263_v12 = vld [vmem:[%s3270_s1 + $0x90] sm:$0xff]  }
   0x5   :  { %v2264_v13 = vld [vmem:[%s3270_s1 + $0x8] sm:$0xff]   ;;  %v2266_v15 = vld [vmem:[%s3270_s1] sm:$0xff]   ;;  %v2268_v17 = vld [vmem:[%s3270_s1 + $0x78] sm:$0xff]  }
   0x6   :  { %1179 = vmatpush1.bf16.msra.mxu0 %v2254_v3  ;;  %v2265_v14 = vld [vmem:[%s3270_s1 + $0x88] sm:$0xff]   ;;  %v2267_v16 = vld [vmem:[%s3270_s1 + $0x80] sm:$0xff]   ;;  %v2269_v18 = vld [vmem:[%s3270_s1 + $0xf8] sm:$0xff]  }
   0x7   :  { %1468 = vmatpush1.bf16.msra.mxu1 %v2255_v4  ;;  %1180 = vmatprep.subr.bf16.mxu0 %v2476_v0  ;;  %v2286_v19 = vld [vmem:[%s3271_s0 + $0x4] ss:$16 sps:$4 sm:$0xff]   ;;  %v2289_v21 = vld [vmem:[%s3271_s0 + $0xc] ss:$16 sps:$4 sm:$0xff]   ;;  %v2284_v35 = vld [vmem:[%s3271_s0] ss:$16 sps:$4 sm:$0xff]  }
   0x8   :  { %1469 = vmatprep.subr.bf16.mxu1 %v2476_v0  ;;  %v2270_v20 = vld [vmem:[%s3270_s1 + $0x70] sm:$0xff]   ;;  %1208 = vmatprep.mubr.bf16.mxu0 %v2286_v19  ;;  %v2272_v23 = vld [vmem:[%s3270_s1 + $0x68] sm:$0xff]   ;;  %v2274_v25 = vld [vmem:[%s3270_s1 + $0x60] sm:$0xff]  }
   0x9   :  { %v2271_v22 = vld [vmem:[%s3270_s1 + $0xf0] sm:$0xff]   ;;  %1497 = vmatprep.mubr.bf16.mxu1 %v2289_v21  ;;  %v2273_v24 = vld [vmem:[%s3270_s1 + $0xe8] sm:$0xff]   ;;  %v2275_v26 = vld [vmem:[%s3270_s1 + $0xe0] sm:$0xff]  }
   0xa   :  { %1181 = vmatpush1.bf16.msra.mxu0 %v2256_v5  ;;  %v2276_v27 = vld [vmem:[%s3270_s1 + $0x58] sm:$0xff]   ;;  %v2278_v29 = vld [vmem:[%s3270_s1 + $0x50] sm:$0xff]   ;;  %v2280_v31 = vld [vmem:[%s3270_s1 + $0x48] sm:$0xff]  }
   0xb   :  { %1470 = vmatpush1.bf16.msra.mxu1 %v2257_v6  ;;  %1182 = vmatprep.subr.bf16.mxu0 %v2476_v0  ;;  %v2277_v28 = vld [vmem:[%s3270_s1 + $0xd8] sm:$0xff]   ;;  %v2279_v30 = vld [vmem:[%s3270_s1 + $0xd0] sm:$0xff]   ;;  %v2281_v32 = vld [vmem:[%s3270_s1 + $0xc8] sm:$0xff]  }
   0xc   :  { %1471 = vmatprep.subr.bf16.mxu1 %v2476_v0  ;;  %v2282_v33 = vld [vmem:[%s3270_s1 + $0x40] sm:$0xff]   ;;  %v2287_v36 = vld [vmem:[%s3271_s0 + $0x8] ss:$16 sps:$4 sm:$0xff]   ;;  %v2292_v38 = vld [vmem:[%s3271_s0 + $0x2c] ss:$16 sps:$4 sm:$0xff]  }
   0xd   :  { %v2283_v34 = vld [vmem:[%s3270_s1 + $0xc0] sm:$0xff]   ;;  %v2295_v40 = vld [vmem:[%s3271_s0 + $0x28] ss:$16 sps:$4 sm:$0xff]   ;;  %v2298_v42 = vld [vmem:[%s3271_s0 + $0x4c] ss:$16 sps:$4 sm:$0xff]  }
   0xe   :  { %1183 = vmatpush1.bf16.msra.mxu0 %v2258_v7  ;;  %v2290_v37 = vld [vmem:[%s3271_s0 + $0x24] ss:$16 sps:$4 sm:$0xff]   ;;  %v2294_v39 = vld [vmem:[%s3271_s0 + $0x20] ss:$16 sps:$4 sm:$0xff]   ;;  %v2301_v44 = vld [vmem:[%s3271_s0 + $0x48] ss:$16 sps:$4 sm:$0xff]  }
   0xf   :  { %1472 = vmatpush1.bf16.msra.mxu1 %v2259_v8  ;;  %1184 = vmatprep.subr.bf16.mxu0 %v2476_v0  ;;  %v2296_v41 = vld [vmem:[%s3271_s0 + $0x44] ss:$16 sps:$4 sm:$0xff]   ;;  %v2300_v43 = vld [vmem:[%s3271_s0 + $0x40] ss:$16 sps:$4 sm:$0xff]   ;;  %v2304_v46 = vld [vmem:[%s3271_s0 + $0x6c] ss:$16 sps:$4 sm:$0xff]  }
  0x10   :  { %1473 = vmatprep.subr.bf16.mxu1 %v2476_v0  ;;  %v2302_v45 = vld [vmem:[%s3271_s0 + $0x64] ss:$16 sps:$4 sm:$0xff]   ;;  %v2306_v47 = vld [vmem:[%s3271_s0 + $0x60] ss:$16 sps:$4 sm:$0xff]   ;;  %v2307_v48 = vld [vmem:[%s3271_s0 + $0x68] ss:$16 sps:$4 sm:$0xff]  }
  0x11   :  { %v2308_v49 = vld [vmem:[%s3271_s0 + $0x84] ss:$16 sps:$4 sm:$0xff]   ;;  %v2310_v50 = vld [vmem:[%s3271_s0 + $0x8c] ss:$16 sps:$4 sm:$0xff]   ;;  %v2312_v51 = vld [vmem:[%s3271_s0 + $0x80] ss:$16 sps:$4 sm:$0xff]  }
  0x12   :  { %1185 = vmatpush1.bf16.msra.mxu0 %v2260_v9  ;;  %v2313_v52 = vld [vmem:[%s3271_s0 + $0x88] ss:$16 sps:$4 sm:$0xff]   ;;  %v2314_v53 = vld [vmem:[%s3271_s0 + $0xa4] ss:$16 sps:$4 sm:$0xff]   ;;  %v2316_v54 = vld [vmem:[%s3271_s0 + $0xac] ss:$16 sps:$4 sm:$0xff]  }
  0x13   :  { %1474 = vmatpush1.bf16.msra.mxu1 %v2261_v10  ;;  %1186 = vmatprep.subr.bf16.mxu0 %v2476_v0  ;;  %v2318_v55 = vld [vmem:[%s3271_s0 + $0xa0] ss:$16 sps:$4 sm:$0xff]   ;;  %v2319_v56 = vld [vmem:[%s3271_s0 + $0xa8] ss:$16 sps:$4 sm:$0xff]   ;;  %v2320_v57 = vld [vmem:[%s3271_s0 + $0xc4] ss:$16 sps:$4 sm:$0xff]  }
  0x14   :  { %1475 = vmatprep.subr.bf16.mxu1 %v2476_v0  ;;  %v2322_v58 = vld [vmem:[%s3271_s0 + $0xcc] ss:$16 sps:$4 sm:$0xff]   ;;  %v2324_v59 = vld [vmem:[%s3271_s0 + $0xc0] ss:$16 sps:$4 sm:$0xff]   ;;  %v2325_v60 = vld [vmem:[%s3271_s0 + $0xc8] ss:$16 sps:$4 sm:$0xff]  }
  0x15   :  { %v2326_v61 = vld [vmem:[%s3271_s0 + $0xe4] ss:$16 sps:$4 sm:$0xff]   ;;  %v2328_v62 = vld [vmem:[%s3271_s0 + $0xec] ss:$16 sps:$4 sm:$0xff]   ;;  %v2330_v63 = vld [vmem:[%s3271_s0 + $0xe0] ss:$16 sps:$4 sm:$0xff]  }
  0x16   :  { %1187 = vmatpush1.bf16.msra.mxu0 %v2262_v11  ;;  %v2332_v1 = vld [vmem:[%s3271_s0 + $0x104] ss:$16 sps:$4 sm:$0xff]   ;;  %v2334_v2 = vld [vmem:[%s3271_s0 + $0x10c] ss:$16 sps:$4 sm:$0xff]   ;;  %v2336_v3 = vld [vmem:[%s3271_s0 + $0x100] ss:$16 sps:$4 sm:$0xff]  }
  0x17   :  { %1476 = vmatpush1.bf16.msra.mxu1 %v2263_v12  ;;  %1188 = vmatprep.subr.bf16.mxu0 %v2476_v0  ;;  %v2337_v4 = vld [vmem:[%s3271_s0 + $0x108] ss:$16 sps:$4 sm:$0xff]   ;;  %v2338_v5 = vld [vmem:[%s3271_s0 + $0x124] ss:$16 sps:$4 sm:$0xff]   ;;  %v2340_v6 = vld [vmem:[%s3271_s0 + $0x12c] ss:$16 sps:$4 sm:$0xff]  }
  0x18   :  { %1477 = vmatprep.subr.bf16.mxu1 %v2476_v0  ;;  %v2342_v7 = vld [vmem:[%s3271_s0 + $0x120] ss:$16 sps:$4 sm:$0xff]   ;;  %v2343_v8 = vld [vmem:[%s3271_s0 + $0x128] ss:$16 sps:$4 sm:$0xff]   ;;  %v2344_v9 = vld [vmem:[%s3271_s0 + $0x144] ss:$16 sps:$4 sm:$0xff]  }
  0x19   :  { %v2346_v10 = vld [vmem:[%s3271_s0 + $0x14c] ss:$16 sps:$4 sm:$0xff]   ;;  %v2348_v11 = vld [vmem:[%s3271_s0 + $0x140] ss:$16 sps:$4 sm:$0xff]   ;;  %v2349_v12 = vld [vmem:[%s3271_s0 + $0x148] ss:$16 sps:$4 sm:$0xff]  }
  0x1a   :  { %1189 = vmatpush1.bf16.msra.mxu0 %v2264_v13  ;;  %v2350_v13 = vld [vmem:[%s3271_s0 + $0x164] ss:$16 sps:$4 sm:$0xff]   ;;  %v2360_v19 = vld [vmem:[%s3271_s0 + $0x180] ss:$16 sps:$4 sm:$0xff]  }
  0x1b   :  { %1478 = vmatpush1.bf16.msra.mxu1 %v2265_v14  ;;  %1190 = vmatprep.subr.bf16.mxu0 %v2476_v0  ;;  %v2352_v14 = vld [vmem:[%s3271_s0 + $0x16c] ss:$16 sps:$4 sm:$0xff]   ;;  %v2362_v21 = vld [vmem:[%s3271_s0 + $0x1a4] ss:$16 sps:$4 sm:$0xff]  }
  0x1c   :  { %1479 = vmatprep.subr.bf16.mxu1 %v2476_v0 }
  0x1e   :  { %1191 = vmatpush1.bf16.msra.mxu0 %v2266_v15  ;;  %v2354_v15 = vld [vmem:[%s3271_s0 + $0x160] ss:$16 sps:$4 sm:$0xff]  }
  0x1f   :  { %1480 = vmatpush1.bf16.msra.mxu1 %v2267_v16  ;;  %1192 = vmatprep.subr.bf16.mxu0 %v2476_v0  ;;  %v2355_v16 = vld [vmem:[%s3271_s0 + $0x168] ss:$16 sps:$4 sm:$0xff]  }
  0x20   :  { %1481 = vmatprep.subr.bf16.mxu1 %v2476_v0 }
  0x22   :  { %1193 = vmatpush2.bf16.msra.mxu0 %v2268_v17  ;;  %v2356_v17 = vld [vmem:[%s3271_s0 + $0x184] ss:$16 sps:$4 sm:$0xff]  }
  0x23   :  { %1482 = vmatpush2.bf16.msra.mxu1 %v2269_v18  ;;  %1194 = vmatprep.subr.bf16.mxu0 %v2476_v0  ;;  %v2358_v18 = vld [vmem:[%s3271_s0 + $0x18c] ss:$16 sps:$4 sm:$0xff]  }
  0x24   :  { %1483 = vmatprep.subr.bf16.mxu1 %v2476_v0 }
  0x26   :  { %1195 = vmatpush2.bf16.msra.mxu0 %v2270_v20  ;;  %v2361_v20 = vld [vmem:[%s3271_s0 + $0x188] ss:$16 sps:$4 sm:$0xff]  }
  0x27   :  { %1484 = vmatpush2.bf16.msra.mxu1 %v2271_v22  ;;  %1196 = vmatprep.subr.bf16.mxu0 %v2476_v0  ;;  %v2364_v22 = vld [vmem:[%s3271_s0 + $0x1ac] ss:$16 sps:$4 sm:$0xff]  }
  0x28   :  { %1485 = vmatprep.subr.bf16.mxu1 %v2476_v0 }
  0x2a   :  { %1197 = vmatpush2.bf16.msra.mxu0 %v2272_v23  ;;  %v2366_v23 = vld [vmem:[%s3271_s0 + $0x1a0] ss:$16 sps:$4 sm:$0xff]  }
  0x2b   :  { %1486 = vmatpush2.bf16.msra.mxu1 %v2273_v24  ;;  %1198 = vmatprep.subr.bf16.mxu0 %v2476_v0  ;;  %v2367_v24 = vld [vmem:[%s3271_s0 + $0x1a8] ss:$16 sps:$4 sm:$0xff]  }
  0x2c   :  { %1487 = vmatprep.subr.bf16.mxu1 %v2476_v0 }
  0x2e   :  { %1199 = vmatpush2.bf16.msra.mxu0 %v2274_v25  ;;  %v2368_v25 = vld [vmem:[%s3271_s0 + $0x1c4] ss:$16 sps:$4 sm:$0xff]  }
  0x2f   :  { %1488 = vmatpush2.bf16.msra.mxu1 %v2275_v26  ;;  %1200 = vmatprep.subr.bf16.mxu0 %v2476_v0  ;;  %v2370_v26 = vld [vmem:[%s3271_s0 + $0x1cc] ss:$16 sps:$4 sm:$0xff]  }
  0x30   :  { %1489 = vmatprep.subr.bf16.mxu1 %v2476_v0 }
  0x32   :  { %1201 = vmatpush2.bf16.msra.mxu0 %v2276_v27  ;;  %v2372_v27 = vld [vmem:[%s3271_s0 + $0x1c0] ss:$16 sps:$4 sm:$0xff]  }
  0x33   :  { %1490 = vmatpush2.bf16.msra.mxu1 %v2277_v28  ;;  %1202 = vmatprep.subr.bf16.mxu0 %v2476_v0  ;;  %v2373_v28 = vld [vmem:[%s3271_s0 + $0x1c8] ss:$16 sps:$4 sm:$0xff]  }
  0x34   :  { %1491 = vmatprep.subr.bf16.mxu1 %v2476_v0 }
  0x36   :  { %1203 = vmatpush2.bf16.msra.mxu0 %v2278_v29  ;;  %v2374_v29 = vld [vmem:[%s3271_s0 + $0x1e4] ss:$16 sps:$4 sm:$0xff]  }
  0x37   :  { %1492 = vmatpush2.bf16.msra.mxu1 %v2279_v30  ;;  %1204 = vmatprep.subr.bf16.mxu0 %v2476_v0  ;;  %v2376_v30 = vld [vmem:[%s3271_s0 + $0x1ec] ss:$16 sps:$4 sm:$0xff]  }
  0x38   :  { %1493 = vmatprep.subr.bf16.mxu1 %v2476_v0 }
  0x3a   :  { %1205 = vmatpush2.bf16.msra.mxu0 %v2280_v31  ;;  %v2378_v31 = vld [vmem:[%s3271_s0 + $0x1e0] ss:$16 sps:$4 sm:$0xff]  }
  0x3b   :  { %1494 = vmatpush2.bf16.msra.mxu1 %v2281_v32  ;;  %1206 = vmatprep.subr.bf16.mxu0 %v2476_v0  ;;  %v2379_v32 = vld [vmem:[%s3271_s0 + $0x1e8] ss:$16 sps:$4 sm:$0xff]  }
  0x3c   :  { %1495 = vmatprep.subr.bf16.mxu1 %v2476_v0  ;;  %v2331_v0 = vld [vmem:[%s3271_s0 + $0xe8] ss:$16 sps:$4 sm:$0xff]  }
  0x3e   :  { %1207 = vmatpush2.bf16.msra.mxu0 %v2282_v33  ;;  %v2380_v33 = vld [vmem:[%s3271_s0 + $0x204] ss:$16 sps:$4 sm:$0xff]  }
  0x3f   :  { %1496 = vmatpush2.bf16.msra.mxu1 %v2283_v34  ;;  %v2382_v34 = vld [vmem:[%s3271_s0 + $0x20c] ss:$16 sps:$4 sm:$0xff]  }
  0x41   :  { %1209 = vmatmul.mubr.bf16.vlgmr.msra.gmra.mxu0 %v2284_v35  ;;  %v2384_v35 = vld [vmem:[%s3271_s0 + $0x200] ss:$16 sps:$4 sm:$0xff]  }
  0x42   :  { %1498 = vmatmul.mubr.bf16.vlgmr.msra.gmra.mxu1 %v2287_v36  ;;  %1216 = vmatprep.mubr.bf16.mxu0 %v2290_v37  ;;  %v2385_v36 = vld [vmem:[%s3271_s0 + $0x208] ss:$16 sps:$4 sm:$0xff]   ;;  %v2386_v37 = vld [vmem:[%s3271_s0 + $0x224] ss:$16 sps:$4 sm:$0xff]  }
  0x43   :  { %1505 = vmatprep.mubr.bf16.mxu1 %v2292_v38  ;;  %v2388_v38 = vld [vmem:[%s3271_s0 + $0x22c] ss:$16 sps:$4 sm:$0xff]  }
  0x49   :  { %1217 = vmatmul.mubr.bf16.gmra.mxu0 %v2294_v39  ;;  %v2390_v39 = vld [vmem:[%s3271_s0 + $0x220] ss:$16 sps:$4 sm:$0xff]  }
  0x4a   :  { %1506 = vmatmul.mubr.bf16.gmra.mxu1 %v2295_v40  ;;  %1224 = vmatprep.mubr.bf16.mxu0 %v2296_v41  ;;  %v2391_v40 = vld [vmem:[%s3271_s0 + $0x228] ss:$16 sps:$4 sm:$0xff]   ;;  %v2392_v41 = vld [vmem:[%s3271_s0 + $0x244] ss:$16 sps:$4 sm:$0xff]  }
  0x4b   :  { %1513 = vmatprep.mubr.bf16.mxu1 %v2298_v42  ;;  %v2394_v42 = vld [vmem:[%s3271_s0 + $0x24c] ss:$16 sps:$4 sm:$0xff]  }
  0x51   :  { %1225 = vmatmul.mubr.bf16.gmra.mxu0 %v2300_v43  ;;  %v2396_v43 = vld [vmem:[%s3271_s0 + $0x240] ss:$16 sps:$4 sm:$0xff]  }
  0x52   :  { %1514 = vmatmul.mubr.bf16.gmra.mxu1 %v2301_v44  ;;  %1232 = vmatprep.mubr.bf16.mxu0 %v2302_v45  ;;  %v2397_v44 = vld [vmem:[%s3271_s0 + $0x248] ss:$16 sps:$4 sm:$0xff]   ;;  %v2398_v45 = vld [vmem:[%s3271_s0 + $0x264] ss:$16 sps:$4 sm:$0xff]  }
  0x53   :  { %1521 = vmatprep.mubr.bf16.mxu1 %v2304_v46  ;;  %v2400_v46 = vld [vmem:[%s3271_s0 + $0x26c] ss:$16 sps:$4 sm:$0xff]  }
  0x59   :  { %1233 = vmatmul.mubr.bf16.gmra.mxu0 %v2306_v47  ;;  %v2402_v47 = vld [vmem:[%s3271_s0 + $0x260] ss:$16 sps:$4 sm:$0xff]  }
  0x5a   :  { %1522 = vmatmul.mubr.bf16.gmra.mxu1 %v2307_v48  ;;  %1240 = vmatprep.mubr.bf16.mxu0 %v2308_v49  ;;  %v2403_v48 = vld [vmem:[%s3271_s0 + $0x268] ss:$16 sps:$4 sm:$0xff]   ;;  %v2404_v49 = vld [vmem:[%s3271_s0 + $0x284] ss:$16 sps:$4 sm:$0xff]  }
  0x5b   :  { %1529 = vmatprep.mubr.bf16.mxu1 %v2310_v50  ;;  %v2406_v50 = vld [vmem:[%s3271_s0 + $0x28c] ss:$16 sps:$4 sm:$0xff]  }
  0x61   :  { %1241 = vmatmul.mubr.bf16.gmra.mxu0 %v2312_v51  ;;  %v2408_v51 = vld [vmem:[%s3271_s0 + $0x280] ss:$16 sps:$4 sm:$0xff]  }
  0x62   :  { %1530 = vmatmul.mubr.bf16.gmra.mxu1 %v2313_v52  ;;  %1248 = vmatprep.mubr.bf16.mxu0 %v2314_v53  ;;  %v2409_v52 = vld [vmem:[%s3271_s0 + $0x288] ss:$16 sps:$4 sm:$0xff]   ;;  %v2410_v53 = vld [vmem:[%s3271_s0 + $0x2a4] ss:$16 sps:$4 sm:$0xff]  }
  0x63   :  { %1537 = vmatprep.mubr.bf16.mxu1 %v2316_v54  ;;  %v2412_v54 = vld [vmem:[%s3271_s0 + $0x2ac] ss:$16 sps:$4 sm:$0xff]  }
  0x69   :  { %1249 = vmatmul.mubr.bf16.gmra.mxu0 %v2318_v55  ;;  %v2414_v55 = vld [vmem:[%s3271_s0 + $0x2a0] ss:$16 sps:$4 sm:$0xff]  }
  0x6a   :  { %1538 = vmatmul.mubr.bf16.gmra.mxu1 %v2319_v56  ;;  %1256 = vmatprep.mubr.bf16.mxu0 %v2320_v57  ;;  %v2415_v56 = vld [vmem:[%s3271_s0 + $0x2a8] ss:$16 sps:$4 sm:$0xff]   ;;  %v2416_v57 = vld [vmem:[%s3271_s0 + $0x2c4] ss:$16 sps:$4 sm:$0xff]  }
  0x6b   :  { %1545 = vmatprep.mubr.bf16.mxu1 %v2322_v58  ;;  %v2418_v58 = vld [vmem:[%s3271_s0 + $0x2cc] ss:$16 sps:$4 sm:$0xff]  }
  0x71   :  { %1257 = vmatmul.mubr.bf16.gmra.mxu0 %v2324_v59  ;;  %v2420_v59 = vld [vmem:[%s3271_s0 + $0x2c0] ss:$16 sps:$4 sm:$0xff]  }
  0x72   :  { %1546 = vmatmul.mubr.bf16.gmra.mxu1 %v2325_v60  ;;  %1264 = vmatprep.mubr.bf16.mxu0 %v2326_v61  ;;  %v2421_v60 = vld [vmem:[%s3271_s0 + $0x2c8] ss:$16 sps:$4 sm:$0xff]   ;;  %v2422_v61 = vld [vmem:[%s3271_s0 + $0x2e4] ss:$16 sps:$4 sm:$0xff]  }
  0x73   :  { %1553 = vmatprep.mubr.bf16.mxu1 %v2328_v62  ;;  %v2424_v62 = vld [vmem:[%s3271_s0 + $0x2ec] ss:$16 sps:$4 sm:$0xff]  }
  0x79   :  { %1265 = vmatmul.mubr.bf16.gmra.mxu0 %v2330_v63  ;;  %v2426_v63 = vld [vmem:[%s3271_s0 + $0x2e0] ss:$16 sps:$4 sm:$0xff]  }
  0x7a   :  { %1554 = vmatmul.mubr.bf16.gmra.mxu1 %v2331_v0  ;;  %1272 = vmatprep.mubr.bf16.mxu0 %v2332_v1  ;;  %v2427_v0 = vld [vmem:[%s3271_s0 + $0x2e8] ss:$16 sps:$4 sm:$0xff]   ;;  %v2428_v1 = vld [vmem:[%s3271_s0 + $0x304] ss:$16 sps:$4 sm:$0xff]  }
  0x7b   :  { %1561 = vmatprep.mubr.bf16.mxu1 %v2334_v2  ;;  %v2430_v2 = vld [vmem:[%s3271_s0 + $0x30c] ss:$16 sps:$4 sm:$0xff]  }
  0x81   :  { %1273 = vmatmul.mubr.bf16.gmra.mxu0 %v2336_v3  ;;  %v2432_v3 = vld [vmem:[%s3271_s0 + $0x300] ss:$16 sps:$4 sm:$0xff]  }
  0x82   :  { %1562 = vmatmul.mubr.bf16.gmra.mxu1 %v2337_v4  ;;  %1280 = vmatprep.mubr.bf16.mxu0 %v2338_v5  ;;  %v2433_v4 = vld [vmem:[%s3271_s0 + $0x308] ss:$16 sps:$4 sm:$0xff]   ;;  %v2434_v5 = vld [vmem:[%s3271_s0 + $0x324] ss:$16 sps:$4 sm:$0xff]  }
  0x83   :  { %1569 = vmatprep.mubr.bf16.mxu1 %v2340_v6  ;;  %v2436_v6 = vld [vmem:[%s3271_s0 + $0x32c] ss:$16 sps:$4 sm:$0xff]  }
  0x89   :  { %1281 = vmatmul.mubr.bf16.gmra.mxu0 %v2342_v7 }
  0x8a   :  { %1570 = vmatmul.mubr.bf16.gmra.mxu1 %v2343_v8  ;;  %1288 = vmatprep.mubr.bf16.mxu0 %v2344_v9  ;;  %v2934_v9 = vld [vmem:[%s3272_s2] ss:$0 sm:$0xff] }
  0x8b   :  { %1577 = vmatprep.mubr.bf16.mxu1 %v2346_v10 }
  0x91   :  { %1289 = vmatmul.mubr.bf16.gmra.mxu0 %v2348_v11 }
  0x92   :  { %1578 = vmatmul.mubr.bf16.gmra.mxu1 %v2349_v12  ;;  %1296 = vmatprep.mubr.bf16.mxu0 %v2350_v13 }
  0x93   :  { %1585 = vmatprep.mubr.bf16.mxu1 %v2352_v14 }
  0x99   :  { %1297 = vmatmul.mubr.bf16.gmra.mxu0 %v2354_v15  ;;  %v2438_v15 = vld [vmem:[%s3271_s0 + $0x320] ss:$16 sps:$4 sm:$0xff]  }
  0x9a   :  { %1586 = vmatmul.mubr.bf16.gmra.mxu1 %v2355_v16  ;;  %1304 = vmatprep.mubr.bf16.mxu0 %v2356_v17  ;;  %v2439_v17 = vld [vmem:[%s3271_s0 + $0x328] ss:$16 sps:$4 sm:$0xff]  }
  0x9b   :  { %1593 = vmatprep.mubr.bf16.mxu1 %v2358_v18  ;;  %v2440_v18 = vld [vmem:[%s3271_s0 + $0x344] ss:$16 sps:$4 sm:$0xff]  }
  0xa1   :  { %1305 = vmatmul.mubr.bf16.gmra.mxu0 %v2360_v19 }
  0xa2   :  { %1594 = vmatmul.mubr.bf16.gmra.mxu1 %v2361_v20  ;;  %1312 = vmatprep.mubr.bf16.mxu0 %v2362_v21  ;;  %v2442_v21 = vld [vmem:[%s3271_s0 + $0x34c] ss:$16 sps:$4 sm:$0xff]  }
  0xa3   :  { %1601 = vmatprep.mubr.bf16.mxu1 %v2364_v22 }
  0xa9   :  { %1313 = vmatmul.mubr.bf16.gmra.mxu0 %v2366_v23 }
  0xaa   :  { %1602 = vmatmul.mubr.bf16.gmra.mxu1 %v2367_v24  ;;  %1320 = vmatprep.mubr.bf16.mxu0 %v2368_v25 }
  0xab   :  { %1609 = vmatprep.mubr.bf16.mxu1 %v2370_v26 }
  0xb1   :  { %1321 = vmatmul.mubr.bf16.gmra.mxu0 %v2372_v27 }
  0xb2   :  { %1610 = vmatmul.mubr.bf16.gmra.mxu1 %v2373_v28  ;;  %1328 = vmatprep.mubr.bf16.mxu0 %v2374_v29 }
  0xb3   :  { %1617 = vmatprep.mubr.bf16.mxu1 %v2376_v30 }
  0xb9   :  { %1329 = vmatmul.mubr.bf16.gmra.mxu0 %v2378_v31  ;;  %v2444_v31 = vld [vmem:[%s3271_s0 + $0x340] ss:$16 sps:$4 sm:$0xff]  }
  0xba   :  { %1618 = vmatmul.mubr.bf16.gmra.mxu1 %v2379_v32  ;;  %1336 = vmatprep.mubr.bf16.mxu0 %v2380_v33  ;;  %v2445_v33 = vld [vmem:[%s3271_s0 + $0x348] ss:$16 sps:$4 sm:$0xff]  }
  0xbb   :  { %1625 = vmatprep.mubr.bf16.mxu1 %v2382_v34  ;;  %v2446_v34 = vld [vmem:[%s3271_s0 + $0x364] ss:$16 sps:$4 sm:$0xff]  }
  0xc1   :  { %1337 = vmatmul.mubr.bf16.gmra.mxu0 %v2384_v35 }
  0xc2   :  { %1626 = vmatmul.mubr.bf16.gmra.mxu1 %v2385_v36  ;;  %1344 = vmatprep.mubr.bf16.mxu0 %v2386_v37  ;;  %v2448_v37 = vld [vmem:[%s3271_s0 + $0x36c] ss:$16 sps:$4 sm:$0xff]  }
  0xc3   :  { %1633 = vmatprep.mubr.bf16.mxu1 %v2388_v38 }
  0xc9   :  { %1345 = vmatmul.mubr.bf16.gmra.mxu0 %v2390_v39 }
  0xca   :  { %1634 = vmatmul.mubr.bf16.gmra.mxu1 %v2391_v40  ;;  %1352 = vmatprep.mubr.bf16.mxu0 %v2392_v41 }
  0xcb   :  { %1641 = vmatprep.mubr.bf16.mxu1 %v2394_v42 }
  0xd1   :  { %1353 = vmatmul.mubr.bf16.gmra.mxu0 %v2396_v43 }
  0xd2   :  { %1642 = vmatmul.mubr.bf16.gmra.mxu1 %v2397_v44  ;;  %1360 = vmatprep.mubr.bf16.mxu0 %v2398_v45 }
  0xd3   :  { %1649 = vmatprep.mubr.bf16.mxu1 %v2400_v46 }
  0xd9   :  { %1361 = vmatmul.mubr.bf16.gmra.mxu0 %v2402_v47  ;;  %v2450_v47 = vld [vmem:[%s3271_s0 + $0x360] ss:$16 sps:$4 sm:$0xff]  }
  0xda   :  { %1650 = vmatmul.mubr.bf16.gmra.mxu1 %v2403_v48  ;;  %1368 = vmatprep.mubr.bf16.mxu0 %v2404_v49  ;;  %v2451_v49 = vld [vmem:[%s3271_s0 + $0x368] ss:$16 sps:$4 sm:$0xff]  }
  0xdb   :  { %1657 = vmatprep.mubr.bf16.mxu1 %v2406_v50  ;;  %v2454_v50 = vld [vmem:[%s3271_s0 + $0x384] ss:$16 sps:$4 sm:$0xff]  }
  0xe1   :  { %1369 = vmatmul.mubr.bf16.gmra.mxu0 %v2408_v51 }
  0xe2   :  { %1658 = vmatmul.mubr.bf16.gmra.mxu1 %v2409_v52  ;;  %1376 = vmatprep.mubr.bf16.mxu0 %v2410_v53  ;;  %v2457_v53 = vld [vmem:[%s3271_s0 + $0x38c] ss:$16 sps:$4 sm:$0xff]  }
  0xe3   :  { %1665 = vmatprep.mubr.bf16.mxu1 %v2412_v54 }
  0xe9   :  { %1377 = vmatmul.mubr.bf16.gmra.mxu0 %v2414_v55 }
  0xea   :  { %1666 = vmatmul.mubr.bf16.gmra.mxu1 %v2415_v56  ;;  %1384 = vmatprep.mubr.bf16.mxu0 %v2416_v57 }
  0xeb   :  { %1673 = vmatprep.mubr.bf16.mxu1 %v2418_v58 }
  0xf1   :  { %1385 = vmatmul.mubr.bf16.gmra.mxu0 %v2420_v59 }
  0xf2   :  { %1674 = vmatmul.mubr.bf16.gmra.mxu1 %v2421_v60  ;;  %1392 = vmatprep.mubr.bf16.mxu0 %v2422_v61 }
  0xf3   :  { %1681 = vmatprep.mubr.bf16.mxu1 %v2424_v62 }
  0xf9   :  { %1393 = vmatmul.mubr.bf16.gmra.mxu0 %v2426_v63  ;;  %v2452_v63 = vld [vmem:[%s3271_s0 + $0x380] ss:$16 sps:$4 sm:$0xff]  }
  0xfa   :  { %1682 = vmatmul.mubr.bf16.gmra.mxu1 %v2427_v0  ;;  %1400 = vmatprep.mubr.bf16.mxu0 %v2428_v1  ;;  %v2455_v1 = vld [vmem:[%s3271_s0 + $0x388] ss:$16 sps:$4 sm:$0xff]  }
  0xfb   :  { %1689 = vmatprep.mubr.bf16.mxu1 %v2430_v2  ;;  %v2460_v2 = vld [vmem:[%s3271_s0 + $0x3a4] ss:$16 sps:$4 sm:$0xff]  }
 0x101   :  { %v1210_v7 = vpop.f32.mrf.mxu0  ;;  %1401 = vmatmul.mubr.bf16.gmra.mxu0 %v2432_v3 }
 0x102   :  { %v1499_v8 = vpop.f32.mrf.mxu1  ;;  %1690 = vmatmul.mubr.bf16.gmra.mxu1 %v2433_v4  ;;  %1408 = vmatprep.mubr.bf16.mxu0 %v2434_v5  ;;  %v2463_v5 = vld [vmem:[%s3271_s0 + $0x3ac] ss:$16 sps:$4 sm:$0xff]  }
 0x103   :  { %v1500_v10 = vadd.f32 %v1499_v8, %v1210_v7  ;;  %v1212_v11 = vpop.f32.mrf.mxu0  ;;  %1697 = vmatprep.mubr.bf16.mxu1 %v2436_v6 }
 0x104   :  { %v1501_v12 = vpop.f32.mrf.mxu1 }
 0x105   :  { %v1956_v13 = vadd.f32 %v2934_v9, %v1500_v10  ;;  %v1213_v14 = vpop.f32.mrf.mxu0 }
 0x106   :  { %v1502_v16 = vpop.f32.mrf.mxu1 }
 0x107   :  { %2020 = vst [vmem:[%s3273_s3] sm:$0xff] %v1956_v13  ;;  %v1503_v19 = vadd.f32 %v1502_v16, %v1213_v14  ;;  %v1215_v20 = vpop.f32.mrf.mxu0  ;;  %v2458_v16 = vld [vmem:[%s3271_s0 + $0x3a0] ss:$16 sps:$4 sm:$0xff]  }
 0x108   :  { %v1504_v22 = vpop.f32.mrf.mxu1 }
 0x109   :  { %v1957_v23 = vadd.f32 %v2934_v9, %v1503_v19  ;;  %v1218_v24 = vpop.f32.mrf.mxu0  ;;  %1409 = vmatmul.mubr.bf16.gmra.mxu0 %v2438_v15  ;;  %v2466_v19 = vld [vmem:[%s3271_s0 + $0x3c4] ss:$16 sps:$4 sm:$0xff]   ;;  %v2469_v22 = vld [vmem:[%s3271_s0 + $0x3cc] ss:$16 sps:$4 sm:$0xff]  }
 0x10a   :  { %v1507_v25 = vpop.f32.mrf.mxu1  ;;  %1698 = vmatmul.mubr.bf16.gmra.mxu1 %v2439_v17  ;;  %1416 = vmatprep.mubr.bf16.mxu0 %v2440_v18  ;;  %v2461_v18 = vld [vmem:[%s3271_s0 + $0x3a8] ss:$16 sps:$4 sm:$0xff]  }
 0x10b   :  { %2021 = vst [vmem:[%s3273_s3 + $0x8] sm:$0xff] %v1957_v23  ;;  %v1508_v26 = vadd.f32 %v1507_v25, %v1218_v24  ;;  %v1220_v27 = vpop.f32.mrf.mxu0  ;;  %1705 = vmatprep.mubr.bf16.mxu1 %v2442_v21 }
 0x10c   :  { %v1509_v28 = vpop.f32.mrf.mxu1 }
 0x10d   :  { %v1958_v29 = vadd.f32 %v2934_v9, %v1508_v26  ;;  %v1221_v30 = vpop.f32.mrf.mxu0 }
 0x10e   :  { %v1510_v32 = vpop.f32.mrf.mxu1 }
 0x10f   :  { %2022 = vst [vmem:[%s3273_s3 + $0x10] sm:$0xff] %v1958_v29  ;;  %v1511_v35 = vadd.f32 %v1510_v32, %v1221_v30  ;;  %v1223_v36 = vpop.f32.mrf.mxu0  ;;  %v2464_v32 = vld [vmem:[%s3271_s0 + $0x3c0] ss:$16 sps:$4 sm:$0xff]  }
 0x110   :  { %v1512_v38 = vpop.f32.mrf.mxu1 }
 0x111   :  { %v1959_v39 = vadd.f32 %v2934_v9, %v1511_v35  ;;  %v1226_v40 = vpop.f32.mrf.mxu0  ;;  %1417 = vmatmul.mubr.bf16.gmra.mxu0 %v2444_v31  ;;  %v2472_v35 = vld [vmem:[%s3271_s0 + $0x3e4] ss:$16 sps:$4 sm:$0xff]   ;;  %v2475_v38 = vld [vmem:[%s3271_s0 + $0x3ec] ss:$16 sps:$4 sm:$0xff]  }
 0x112   :  { %v1515_v41 = vpop.f32.mrf.mxu1  ;;  %1706 = vmatmul.mubr.bf16.gmra.mxu1 %v2445_v33  ;;  %1424 = vmatprep.mubr.bf16.mxu0 %v2446_v34  ;;  %v2467_v34 = vld [vmem:[%s3271_s0 + $0x3c8] ss:$16 sps:$4 sm:$0xff]  }
 0x113   :  { %2023 = vst [vmem:[%s3273_s3 + $0x18] sm:$0xff] %v1959_v39  ;;  %v1516_v42 = vadd.f32 %v1515_v41, %v1226_v40  ;;  %v1228_v43 = vpop.f32.mrf.mxu0  ;;  %1713 = vmatprep.mubr.bf16.mxu1 %v2448_v37 }
 0x114   :  { %v1517_v44 = vpop.f32.mrf.mxu1 }
 0x115   :  { %v1960_v45 = vadd.f32 %v2934_v9, %v1516_v42  ;;  %v1229_v46 = vpop.f32.mrf.mxu0 }
 0x116   :  { %v1518_v48 = vpop.f32.mrf.mxu1 }
 0x117   :  { %2024 = vst [vmem:[%s3273_s3 + $0x20] sm:$0xff] %v1960_v45  ;;  %v1519_v51 = vadd.f32 %v1518_v48, %v1229_v46  ;;  %v1231_v52 = vpop.f32.mrf.mxu0  ;;  %v2470_v48 = vld [vmem:[%s3271_s0 + $0x3e0] ss:$16 sps:$4 sm:$0xff]  }
 0x118   :  { %v1520_v54 = vpop.f32.mrf.mxu1 }
 0x119   :  { %v1961_v55 = vadd.f32 %v2934_v9, %v1519_v51  ;;  %v1234_v56 = vpop.f32.mrf.mxu0  ;;  %1425 = vmatmul.mubr.bf16.gmra.mxu0 %v2450_v47 }
 0x11a   :  { %v1523_v57 = vpop.f32.mrf.mxu1  ;;  %1714 = vmatmul.mubr.bf16.gmra.mxu1 %v2451_v49  ;;  %1432 = vmatprep.mubr.bf16.mxu0 %v2454_v50  ;;  %v2473_v50 = vld [vmem:[%s3271_s0 + $0x3e8] ss:$16 sps:$4 sm:$0xff]  }
 0x11b   :  { %2025 = vst [vmem:[%s3273_s3 + $0x28] sm:$0xff] %v1961_v55  ;;  %v1524_v58 = vadd.f32 %v1523_v57, %v1234_v56  ;;  %v1236_v59 = vpop.f32.mrf.mxu0  ;;  %1721 = vmatprep.mubr.bf16.mxu1 %v2457_v53 }
 0x11c   :  { %v1525_v60 = vpop.f32.mrf.mxu1 }
 0x11d   :  { %v1962_v61 = vadd.f32 %v2934_v9, %v1524_v58  ;;  %v1237_v62 = vpop.f32.mrf.mxu0 }
 0x11e   :  { %v1526_v0 = vpop.f32.mrf.mxu1 }
 0x11f   :  { %2026 = vst [vmem:[%s3273_s3 + $0x30] sm:$0xff] %v1962_v61  ;;  %v1527_v3 = vadd.f32 %v1526_v0, %v1237_v62  ;;  %v1239_v4 = vpop.f32.mrf.mxu0 }
 0x120   :  { %v1528_v6 = vpop.f32.mrf.mxu1 }
 0x121   :  { %v1963_v7 = vadd.f32 %v2934_v9, %v1527_v3  ;;  %v1242_v8 = vpop.f32.mrf.mxu0  ;;  %1433 = vmatmul.mubr.bf16.gmra.mxu0 %v2452_v63 }
 0x122   :  { %v1531_v10 = vpop.f32.mrf.mxu1  ;;  %1722 = vmatmul.mubr.bf16.gmra.mxu1 %v2455_v1  ;;  %1440 = vmatprep.mubr.bf16.mxu0 %v2460_v2 }
 0x123   :  { %2027 = vst [vmem:[%s3273_s3 + $0x38] sm:$0xff] %v1963_v7  ;;  %v1532_v11 = vadd.f32 %v1531_v10, %v1242_v8  ;;  %v1244_v12 = vpop.f32.mrf.mxu0  ;;  %1729 = vmatprep.mubr.bf16.mxu1 %v2463_v5 }
 0x124   :  { %v1533_v13 = vpop.f32.mrf.mxu1 }
 0x125   :  { %v1964_v14 = vadd.f32 %v2934_v9, %v1532_v11  ;;  %v1245_v15 = vpop.f32.mrf.mxu0 }
 0x126   :  { %v1534_v17 = vpop.f32.mrf.mxu1 }
 0x127   :  { %2028 = vst [vmem:[%s3273_s3 + $0x40] sm:$0xff] %v1964_v14  ;;  %v1535_v20 = vadd.f32 %v1534_v17, %v1245_v15  ;;  %v1247_v21 = vpop.f32.mrf.mxu0 }
 0x128   :  { %v1536_v23 = vpop.f32.mrf.mxu1 }
 0x129   :  { %v1965_v24 = vadd.f32 %v2934_v9, %v1535_v20  ;;  %v1250_v25 = vpop.f32.mrf.mxu0  ;;  %1441 = vmatmul.mubr.bf16.gmra.mxu0 %v2458_v16 }
 0x12a   :  { %v1539_v26 = vpop.f32.mrf.mxu1  ;;  %1730 = vmatmul.mubr.bf16.gmra.mxu1 %v2461_v18  ;;  %1448 = vmatprep.mubr.bf16.mxu0 %v2466_v19 }
 0x12b   :  { %2029 = vst [vmem:[%s3273_s3 + $0x48] sm:$0xff] %v1965_v24  ;;  %v1540_v27 = vadd.f32 %v1539_v26, %v1250_v25  ;;  %v1252_v28 = vpop.f32.mrf.mxu0  ;;  %1737 = vmatprep.mubr.bf16.mxu1 %v2469_v22 }
 0x12c   :  { %v1541_v29 = vpop.f32.mrf.mxu1 }
 0x12d   :  { %v1966_v30 = vadd.f32 %v2934_v9, %v1540_v27  ;;  %v1253_v31 = vpop.f32.mrf.mxu0 }
 0x12e   :  { %v1542_v33 = vpop.f32.mrf.mxu1 }
 0x12f   :  { %2030 = vst [vmem:[%s3273_s3 + $0x50] sm:$0xff] %v1966_v30  ;;  %v1543_v36 = vadd.f32 %v1542_v33, %v1253_v31  ;;  %v1255_v37 = vpop.f32.mrf.mxu0 }
 0x130   :  { %v1544_v39 = vpop.f32.mrf.mxu1 }
 0x131   :  { %v1967_v40 = vadd.f32 %v2934_v9, %v1543_v36  ;;  %v1258_v41 = vpop.f32.mrf.mxu0  ;;  %1449 = vmatmul.mubr.bf16.gmra.mxu0 %v2464_v32 }
 0x132   :  { %v1547_v42 = vpop.f32.mrf.mxu1  ;;  %1738 = vmatmul.mubr.bf16.gmra.mxu1 %v2467_v34  ;;  %1456 = vmatprep.mubr.bf16.mxu0 %v2472_v35 }
 0x133   :  { %2031 = vst [vmem:[%s3273_s3 + $0x58] sm:$0xff] %v1967_v40  ;;  %v1548_v43 = vadd.f32 %v1547_v42, %v1258_v41  ;;  %v1260_v44 = vpop.f32.mrf.mxu0  ;;  %1745 = vmatprep.mubr.bf16.mxu1 %v2475_v38 }
 0x134   :  { %v1549_v45 = vpop.f32.mrf.mxu1 }
 0x135   :  { %v1968_v46 = vadd.f32 %v2934_v9, %v1548_v43  ;;  %v1261_v47 = vpop.f32.mrf.mxu0 }
 0x136   :  { %v1550_v49 = vpop.f32.mrf.mxu1 }
 0x137   :  { %2032 = vst [vmem:[%s3273_s3 + $0x60] sm:$0xff] %v1968_v46  ;;  %v1551_v51 = vadd.f32 %v1550_v49, %v1261_v47  ;;  %v1263_v52 = vpop.f32.mrf.mxu0 }
 0x138   :  { %v1552_v53 = vpop.f32.mrf.mxu1 }
 0x139   :  { %v1969_v54 = vadd.f32 %v2934_v9, %v1551_v51  ;;  %v1266_v55 = vpop.f32.mrf.mxu0  ;;  %1457 = vmatmul.mubr.bf16.gmra.mxu0 %v2470_v48 }
 0x13a   :  { %v1555_v56 = vpop.f32.mrf.mxu1  ;;  %1746 = vmatmul.mubr.bf16.gmra.mxu1 %v2473_v50 }
 0x13b   :  { %2033 = vst [vmem:[%s3273_s3 + $0x68] sm:$0xff] %v1969_v54  ;;  %v1556_v57 = vadd.f32 %v1555_v56, %v1266_v55  ;;  %v1268_v58 = vpop.f32.mrf.mxu0 }
 0x13c   :  { %v1557_v59 = vpop.f32.mrf.mxu1 }
 0x13d   :  { %v1970_v60 = vadd.f32 %v2934_v9, %v1556_v57  ;;  %v1269_v61 = vpop.f32.mrf.mxu0 }
 0x13e   :  { %v1558_v62 = vpop.f32.mrf.mxu1 }
 0x13f   :  { %2034 = vst [vmem:[%s3273_s3 + $0x70] sm:$0xff] %v1970_v60  ;;  %v1559_v63 = vadd.f32 %v1558_v62, %v1269_v61  ;;  %v1271_v0 = vpop.f32.mrf.mxu0 }
 0x140   :  { %v1560_v1 = vpop.f32.mrf.mxu1 }
 0x141   :  { %v1971_v2 = vadd.f32 %v2934_v9, %v1559_v63  ;;  %v1274_v3 = vpop.f32.mrf.mxu0 }
 0x142   :  { %v1563_v4 = vpop.f32.mrf.mxu1 }
 0x143   :  { %2035 = vst [vmem:[%s3273_s3 + $0x78] sm:$0xff] %v1971_v2  ;;  %v1564_v5 = vadd.f32 %v1563_v4, %v1274_v3  ;;  %v1276_v6 = vpop.f32.mrf.mxu0 }
 0x144   :  { %v1565_v7 = vpop.f32.mrf.mxu1 }
 0x145   :  { %v1972_v8 = vadd.f32 %v2934_v9, %v1564_v5  ;;  %v1277_v10 = vpop.f32.mrf.mxu0 }
 0x146   :  { %v1566_v11 = vpop.f32.mrf.mxu1 }
 0x147   :  { %2036 = vst [vmem:[%s3273_s3 + $0x80] sm:$0xff] %v1972_v8  ;;  %v1567_v12 = vadd.f32 %v1566_v11, %v1277_v10  ;;  %v1279_v13 = vpop.f32.mrf.mxu0 }
 0x148   :  { %v1568_v14 = vpop.f32.mrf.mxu1 }
 0x149   :  { %v1973_v15 = vadd.f32 %v2934_v9, %v1567_v12  ;;  %v1282_v16 = vpop.f32.mrf.mxu0 }
 0x14a   :  { %v1571_v17 = vpop.f32.mrf.mxu1 }
 0x14b   :  { %2037 = vst [vmem:[%s3273_s3 + $0x88] sm:$0xff] %v1973_v15  ;;  %v1572_v18 = vadd.f32 %v1571_v17, %v1282_v16  ;;  %v1284_v19 = vpop.f32.mrf.mxu0 }
 0x14c   :  { %v1573_v20 = vpop.f32.mrf.mxu1 }
 0x14d   :  { %v1974_v21 = vadd.f32 %v2934_v9, %v1572_v18  ;;  %v1285_v22 = vpop.f32.mrf.mxu0 }
 0x14e   :  { %v1574_v23 = vpop.f32.mrf.mxu1 }
 0x14f   :  { %2038 = vst [vmem:[%s3273_s3 + $0x90] sm:$0xff] %v1974_v21  ;;  %v1575_v24 = vadd.f32 %v1574_v23, %v1285_v22  ;;  %v1287_v25 = vpop.f32.mrf.mxu0 }
 0x150   :  { %v1576_v26 = vpop.f32.mrf.mxu1 }
 0x151   :  { %v1975_v27 = vadd.f32 %v2934_v9, %v1575_v24  ;;  %v1290_v28 = vpop.f32.mrf.mxu0 }
 0x152   :  { %v1579_v29 = vpop.f32.mrf.mxu1 }
 0x153   :  { %2039 = vst [vmem:[%s3273_s3 + $0x98] sm:$0xff] %v1975_v27  ;;  %v1580_v30 = vadd.f32 %v1579_v29, %v1290_v28  ;;  %v1292_v31 = vpop.f32.mrf.mxu0 }
 0x154   :  { %v1581_v32 = vpop.f32.mrf.mxu1 }
 0x155   :  { %v1976_v33 = vadd.f32 %v2934_v9, %v1580_v30  ;;  %v1293_v34 = vpop.f32.mrf.mxu0 }
 0x156   :  { %v1582_v35 = vpop.f32.mrf.mxu1 }
 0x157   :  { %2040 = vst [vmem:[%s3273_s3 + $0xa0] sm:$0xff] %v1976_v33  ;;  %v1583_v36 = vadd.f32 %v1582_v35, %v1293_v34  ;;  %v1295_v37 = vpop.f32.mrf.mxu0 }
 0x158   :  { %v1584_v38 = vpop.f32.mrf.mxu1 }
 0x159   :  { %v1977_v39 = vadd.f32 %v2934_v9, %v1583_v36  ;;  %v1298_v40 = vpop.f32.mrf.mxu0 }
 0x15a   :  { %v1587_v41 = vpop.f32.mrf.mxu1 }
 0x15b   :  { %2041 = vst [vmem:[%s3273_s3 + $0xa8] sm:$0xff] %v1977_v39  ;;  %v1588_v42 = vadd.f32 %v1587_v41, %v1298_v40  ;;  %v1300_v43 = vpop.f32.mrf.mxu0 }
 0x15c   :  { %v1589_v44 = vpop.f32.mrf.mxu1 }
 0x15d   :  { %v1978_v45 = vadd.f32 %v2934_v9, %v1588_v42  ;;  %v1301_v46 = vpop.f32.mrf.mxu0 }
 0x15e   :  { %v1590_v47 = vpop.f32.mrf.mxu1 }
 0x15f   :  { %2042 = vst [vmem:[%s3273_s3 + $0xb0] sm:$0xff] %v1978_v45  ;;  %v1591_v48 = vadd.f32 %v1590_v47, %v1301_v46  ;;  %v1303_v49 = vpop.f32.mrf.mxu0 }
 0x160   :  { %v1592_v50 = vpop.f32.mrf.mxu1 }
 0x161   :  { %v1979_v51 = vadd.f32 %v2934_v9, %v1591_v48  ;;  %v1306_v52 = vpop.f32.mrf.mxu0 }
 0x162   :  { %v1595_v53 = vpop.f32.mrf.mxu1 }
 0x163   :  { %2043 = vst [vmem:[%s3273_s3 + $0xb8] sm:$0xff] %v1979_v51  ;;  %v1596_v54 = vadd.f32 %v1595_v53, %v1306_v52  ;;  %v1308_v55 = vpop.f32.mrf.mxu0 }
 0x164   :  { %v1597_v56 = vpop.f32.mrf.mxu1 }
 0x165   :  { %v1980_v57 = vadd.f32 %v2934_v9, %v1596_v54  ;;  %v1309_v58 = vpop.f32.mrf.mxu0 }
 0x166   :  { %v1598_v59 = vpop.f32.mrf.mxu1 }
 0x167   :  { %2044 = vst [vmem:[%s3273_s3 + $0xc0] sm:$0xff] %v1980_v57  ;;  %v1599_v60 = vadd.f32 %v1598_v59, %v1309_v58  ;;  %v1311_v61 = vpop.f32.mrf.mxu0 }
 0x168   :  { %v1600_v62 = vpop.f32.mrf.mxu1 }
 0x169   :  { %v1981_v63 = vadd.f32 %v2934_v9, %v1599_v60  ;;  %v1314_v0 = vpop.f32.mrf.mxu0 }
 0x16a   :  { %v1603_v1 = vpop.f32.mrf.mxu1 }
 0x16b   :  { %2045 = vst [vmem:[%s3273_s3 + $0xc8] sm:$0xff] %v1981_v63  ;;  %v1604_v2 = vadd.f32 %v1603_v1, %v1314_v0  ;;  %v1316_v3 = vpop.f32.mrf.mxu0 }
 0x16c   :  { %v1605_v4 = vpop.f32.mrf.mxu1 }
 0x16d   :  { %v1982_v5 = vadd.f32 %v2934_v9, %v1604_v2  ;;  %v1317_v6 = vpop.f32.mrf.mxu0 }
 0x16e   :  { %v1606_v7 = vpop.f32.mrf.mxu1 }
 0x16f   :  { %2046 = vst [vmem:[%s3273_s3 + $0xd0] sm:$0xff] %v1982_v5  ;;  %v1607_v8 = vadd.f32 %v1606_v7, %v1317_v6  ;;  %v1319_v10 = vpop.f32.mrf.mxu0 }
 0x170   :  { %v1608_v11 = vpop.f32.mrf.mxu1 }
 0x171   :  { %v1983_v12 = vadd.f32 %v2934_v9, %v1607_v8  ;;  %v1322_v13 = vpop.f32.mrf.mxu0 }
 0x172   :  { %v1611_v14 = vpop.f32.mrf.mxu1 }
 0x173   :  { %2047 = vst [vmem:[%s3273_s3 + $0xd8] sm:$0xff] %v1983_v12  ;;  %v1612_v15 = vadd.f32 %v1611_v14, %v1322_v13  ;;  %v1324_v16 = vpop.f32.mrf.mxu0 }
 0x174   :  { %v1613_v17 = vpop.f32.mrf.mxu1 }
 0x175   :  { %v1984_v18 = vadd.f32 %v2934_v9, %v1612_v15  ;;  %v1325_v19 = vpop.f32.mrf.mxu0 }
 0x176   :  { %v1614_v20 = vpop.f32.mrf.mxu1 }
 0x177   :  { %2048 = vst [vmem:[%s3273_s3 + $0xe0] sm:$0xff] %v1984_v18  ;;  %v1615_v21 = vadd.f32 %v1614_v20, %v1325_v19  ;;  %v1327_v22 = vpop.f32.mrf.mxu0 }
 0x178   :  { %v1616_v23 = vpop.f32.mrf.mxu1 }
 0x179   :  { %v1985_v24 = vadd.f32 %v2934_v9, %v1615_v21  ;;  %v1330_v25 = vpop.f32.mrf.mxu0 }
 0x17a   :  { %v1619_v26 = vpop.f32.mrf.mxu1 }
 0x17b   :  { %2049 = vst [vmem:[%s3273_s3 + $0xe8] sm:$0xff] %v1985_v24  ;;  %v1620_v27 = vadd.f32 %v1619_v26, %v1330_v25  ;;  %v1332_v28 = vpop.f32.mrf.mxu0 }
 0x17c   :  { %v1621_v29 = vpop.f32.mrf.mxu1 }
 0x17d   :  { %v1986_v30 = vadd.f32 %v2934_v9, %v1620_v27  ;;  %v1333_v31 = vpop.f32.mrf.mxu0 }
 0x17e   :  { %v1622_v32 = vpop.f32.mrf.mxu1 }
 0x17f   :  { %2050 = vst [vmem:[%s3273_s3 + $0xf0] sm:$0xff] %v1986_v30  ;;  %v1623_v33 = vadd.f32 %v1622_v32, %v1333_v31  ;;  %v1335_v34 = vpop.f32.mrf.mxu0 }
 0x180   :  { %v1624_v35 = vpop.f32.mrf.mxu1 }
 0x181   :  { %v1987_v36 = vadd.f32 %v2934_v9, %v1623_v33  ;;  %v1338_v37 = vpop.f32.mrf.mxu0 }
 0x182   :  { %v1627_v38 = vpop.f32.mrf.mxu1 }
 0x183   :  { %2051 = vst [vmem:[%s3273_s3 + $0xf8] sm:$0xff] %v1987_v36  ;;  %v1628_v39 = vadd.f32 %v1627_v38, %v1338_v37  ;;  %v1340_v40 = vpop.f32.mrf.mxu0 }
 0x184   :  { %v1629_v41 = vpop.f32.mrf.mxu1 }
 0x185   :  { %v1988_v42 = vadd.f32 %v2934_v9, %v1628_v39  ;;  %v1341_v43 = vpop.f32.mrf.mxu0 }
 0x186   :  { %v1630_v44 = vpop.f32.mrf.mxu1 }
 0x187   :  { %2052 = vst [vmem:[%s3273_s3 + $0x100] sm:$0xff] %v1988_v42  ;;  %v1631_v45 = vadd.f32 %v1630_v44, %v1341_v43  ;;  %v1343_v46 = vpop.f32.mrf.mxu0 }
 0x188   :  { %v1632_v47 = vpop.f32.mrf.mxu1 }
 0x189   :  { %v1989_v48 = vadd.f32 %v2934_v9, %v1631_v45  ;;  %v1346_v49 = vpop.f32.mrf.mxu0 }
 0x18a   :  { %v1635_v50 = vpop.f32.mrf.mxu1 }
 0x18b   :  { %2053 = vst [vmem:[%s3273_s3 + $0x108] sm:$0xff] %v1989_v48  ;;  %v1636_v51 = vadd.f32 %v1635_v50, %v1346_v49  ;;  %v1348_v52 = vpop.f32.mrf.mxu0 }
 0x18c   :  { %v1637_v53 = vpop.f32.mrf.mxu1 }
 0x18d   :  { %v1990_v54 = vadd.f32 %v2934_v9, %v1636_v51  ;;  %v1349_v55 = vpop.f32.mrf.mxu0 }
 0x18e   :  { %v1638_v56 = vpop.f32.mrf.mxu1 }
 0x18f   :  { %2054 = vst [vmem:[%s3273_s3 + $0x110] sm:$0xff] %v1990_v54  ;;  %v1639_v57 = vadd.f32 %v1638_v56, %v1349_v55  ;;  %v1351_v58 = vpop.f32.mrf.mxu0 }
 0x190   :  { %v1640_v59 = vpop.f32.mrf.mxu1 }
 0x191   :  { %v1991_v60 = vadd.f32 %v2934_v9, %v1639_v57  ;;  %v1354_v61 = vpop.f32.mrf.mxu0 }
 0x192   :  { %v1643_v62 = vpop.f32.mrf.mxu1 }
 0x193   :  { %2055 = vst [vmem:[%s3273_s3 + $0x118] sm:$0xff] %v1991_v60  ;;  %v1644_v63 = vadd.f32 %v1643_v62, %v1354_v61  ;;  %v1356_v0 = vpop.f32.mrf.mxu0 }
 0x194   :  { %v1645_v1 = vpop.f32.mrf.mxu1 }
 0x195   :  { %v1992_v2 = vadd.f32 %v2934_v9, %v1644_v63  ;;  %v1357_v3 = vpop.f32.mrf.mxu0 }
 0x196   :  { %v1646_v4 = vpop.f32.mrf.mxu1 }
 0x197   :  { %2056 = vst [vmem:[%s3273_s3 + $0x120] sm:$0xff] %v1992_v2  ;;  %v1647_v5 = vadd.f32 %v1646_v4, %v1357_v3  ;;  %v1359_v6 = vpop.f32.mrf.mxu0 }
 0x198   :  { %v1648_v7 = vpop.f32.mrf.mxu1 }
 0x199   :  { %v1993_v8 = vadd.f32 %v2934_v9, %v1647_v5  ;;  %v1362_v10 = vpop.f32.mrf.mxu0 }
 0x19a   :  { %v1651_v11 = vpop.f32.mrf.mxu1 }
 0x19b   :  { %2057 = vst [vmem:[%s3273_s3 + $0x128] sm:$0xff] %v1993_v8  ;;  %v1652_v12 = vadd.f32 %v1651_v11, %v1362_v10  ;;  %v1364_v13 = vpop.f32.mrf.mxu0 }
 0x19c   :  { %v1653_v14 = vpop.f32.mrf.mxu1 }
 0x19d   :  { %v1994_v15 = vadd.f32 %v2934_v9, %v1652_v12  ;;  %v1365_v16 = vpop.f32.mrf.mxu0 }
 0x19e   :  { %v1654_v17 = vpop.f32.mrf.mxu1 }
 0x19f   :  { %2058 = vst [vmem:[%s3273_s3 + $0x130] sm:$0xff] %v1994_v15  ;;  %v1655_v18 = vadd.f32 %v1654_v17, %v1365_v16  ;;  %v1367_v19 = vpop.f32.mrf.mxu0 }
 0x1a0   :  { %v1656_v20 = vpop.f32.mrf.mxu1 }
 0x1a1   :  { %v1995_v21 = vadd.f32 %v2934_v9, %v1655_v18  ;;  %v1370_v22 = vpop.f32.mrf.mxu0 }
 0x1a2   :  { %v1659_v23 = vpop.f32.mrf.mxu1 }
 0x1a3   :  { %2059 = vst [vmem:[%s3273_s3 + $0x138] sm:$0xff] %v1995_v21  ;;  %v1660_v24 = vadd.f32 %v1659_v23, %v1370_v22  ;;  %v1372_v25 = vpop.f32.mrf.mxu0 }
 0x1a4   :  { %v1661_v26 = vpop.f32.mrf.mxu1 }
 0x1a5   :  { %v1996_v27 = vadd.f32 %v2934_v9, %v1660_v24  ;;  %v1373_v28 = vpop.f32.mrf.mxu0 }
 0x1a6   :  { %v1662_v29 = vpop.f32.mrf.mxu1 }
 0x1a7   :  { %2060 = vst [vmem:[%s3273_s3 + $0x140] sm:$0xff] %v1996_v27  ;;  %v1663_v30 = vadd.f32 %v1662_v29, %v1373_v28  ;;  %v1375_v31 = vpop.f32.mrf.mxu0 }
 0x1a8   :  { %v1664_v32 = vpop.f32.mrf.mxu1 }
 0x1a9   :  { %v1997_v33 = vadd.f32 %v2934_v9, %v1663_v30  ;;  %v1378_v34 = vpop.f32.mrf.mxu0 }
 0x1aa   :  { %v1667_v35 = vpop.f32.mrf.mxu1 }
 0x1ab   :  { %2061 = vst [vmem:[%s3273_s3 + $0x148] sm:$0xff] %v1997_v33  ;;  %v1668_v36 = vadd.f32 %v1667_v35, %v1378_v34  ;;  %v1380_v37 = vpop.f32.mrf.mxu0 }
 0x1ac   :  { %v1669_v38 = vpop.f32.mrf.mxu1 }
 0x1ad   :  { %v1998_v39 = vadd.f32 %v2934_v9, %v1668_v36  ;;  %v1381_v40 = vpop.f32.mrf.mxu0 }
 0x1ae   :  { %v1670_v41 = vpop.f32.mrf.mxu1 }
 0x1af   :  { %2062 = vst [vmem:[%s3273_s3 + $0x150] sm:$0xff] %v1998_v39  ;;  %v1671_v42 = vadd.f32 %v1670_v41, %v1381_v40  ;;  %v1383_v43 = vpop.f32.mrf.mxu0 }
 0x1b0   :  { %v1672_v44 = vpop.f32.mrf.mxu1 }
 0x1b1   :  { %v1999_v45 = vadd.f32 %v2934_v9, %v1671_v42  ;;  %v1386_v46 = vpop.f32.mrf.mxu0 }
 0x1b2   :  { %v1675_v47 = vpop.f32.mrf.mxu1 }
 0x1b3   :  { %2063 = vst [vmem:[%s3273_s3 + $0x158] sm:$0xff] %v1999_v45  ;;  %v1676_v48 = vadd.f32 %v1675_v47, %v1386_v46  ;;  %v1388_v49 = vpop.f32.mrf.mxu0 }
 0x1b4   :  { %v1677_v50 = vpop.f32.mrf.mxu1 }
 0x1b5   :  { %v2000_v51 = vadd.f32 %v2934_v9, %v1676_v48  ;;  %v1389_v52 = vpop.f32.mrf.mxu0 }
 0x1b6   :  { %v1678_v53 = vpop.f32.mrf.mxu1 }
 0x1b7   :  { %2064 = vst [vmem:[%s3273_s3 + $0x160] sm:$0xff] %v2000_v51  ;;  %v1679_v54 = vadd.f32 %v1678_v53, %v1389_v52  ;;  %v1391_v55 = vpop.f32.mrf.mxu0 }
 0x1b8   :  { %v1680_v56 = vpop.f32.mrf.mxu1 }
 0x1b9   :  { %v2001_v57 = vadd.f32 %v2934_v9, %v1679_v54  ;;  %v1394_v58 = vpop.f32.mrf.mxu0 }
 0x1ba   :  { %v1683_v59 = vpop.f32.mrf.mxu1 }
 0x1bb   :  { %2065 = vst [vmem:[%s3273_s3 + $0x168] sm:$0xff] %v2001_v57  ;;  %v1684_v60 = vadd.f32 %v1683_v59, %v1394_v58  ;;  %v1396_v61 = vpop.f32.mrf.mxu0 }
 0x1bc   :  { %v1685_v62 = vpop.f32.mrf.mxu1 }
 0x1bd   :  { %v2002_v63 = vadd.f32 %v2934_v9, %v1684_v60  ;;  %v1397_v0 = vpop.f32.mrf.mxu0 }
 0x1be   :  { %v1686_v1 = vpop.f32.mrf.mxu1 }
 0x1bf   :  { %2066 = vst [vmem:[%s3273_s3 + $0x170] sm:$0xff] %v2002_v63  ;;  %v1687_v2 = vadd.f32 %v1686_v1, %v1397_v0  ;;  %v1399_v3 = vpop.f32.mrf.mxu0 }
 0x1c0   :  { %v1688_v4 = vpop.f32.mrf.mxu1 }
 0x1c1   :  { %v2003_v5 = vadd.f32 %v2934_v9, %v1687_v2  ;;  %v1402_v6 = vpop.f32.mrf.mxu0 }
 0x1c2   :  { %v1691_v7 = vpop.f32.mrf.mxu1 }
 0x1c3   :  { %2067 = vst [vmem:[%s3273_s3 + $0x178] sm:$0xff] %v2003_v5  ;;  %v1692_v8 = vadd.f32 %v1691_v7, %v1402_v6  ;;  %v1404_v10 = vpop.f32.mrf.mxu0 }
 0x1c4   :  { %v1693_v11 = vpop.f32.mrf.mxu1 }
 0x1c5   :  { %v2004_v12 = vadd.f32 %v2934_v9, %v1692_v8  ;;  %v1405_v13 = vpop.f32.mrf.mxu0 }
 0x1c6   :  { %v1694_v14 = vpop.f32.mrf.mxu1 }
 0x1c7   :  { %2068 = vst [vmem:[%s3273_s3 + $0x180] sm:$0xff] %v2004_v12  ;;  %v1695_v15 = vadd.f32 %v1694_v14, %v1405_v13  ;;  %v1407_v16 = vpop.f32.mrf.mxu0 }
 0x1c8   :  { %v1696_v17 = vpop.f32.mrf.mxu1 }
 0x1c9   :  { %v2005_v18 = vadd.f32 %v2934_v9, %v1695_v15  ;;  %v1410_v19 = vpop.f32.mrf.mxu0 }
 0x1ca   :  { %v1699_v20 = vpop.f32.mrf.mxu1 }
 0x1cb   :  { %2069 = vst [vmem:[%s3273_s3 + $0x188] sm:$0xff] %v2005_v18  ;;  %v1700_v21 = vadd.f32 %v1699_v20, %v1410_v19  ;;  %v1412_v22 = vpop.f32.mrf.mxu0 }
 0x1cc   :  { %v1701_v23 = vpop.f32.mrf.mxu1 }
 0x1cd   :  { %v2006_v24 = vadd.f32 %v2934_v9, %v1700_v21  ;;  %v1413_v25 = vpop.f32.mrf.mxu0 }
 0x1ce   :  { %v1702_v26 = vpop.f32.mrf.mxu1 }
 0x1cf   :  { %2070 = vst [vmem:[%s3273_s3 + $0x190] sm:$0xff] %v2006_v24  ;;  %v1703_v27 = vadd.f32 %v1702_v26, %v1413_v25  ;;  %v1415_v28 = vpop.f32.mrf.mxu0 }
 0x1d0   :  { %v1704_v29 = vpop.f32.mrf.mxu1 }
 0x1d1   :  { %v2007_v30 = vadd.f32 %v2934_v9, %v1703_v27  ;;  %v1418_v31 = vpop.f32.mrf.mxu0 }
 0x1d2   :  { %v1707_v32 = vpop.f32.mrf.mxu1 }
 0x1d3   :  { %2071 = vst [vmem:[%s3273_s3 + $0x198] sm:$0xff] %v2007_v30  ;;  %v1708_v33 = vadd.f32 %v1707_v32, %v1418_v31  ;;  %v1420_v34 = vpop.f32.mrf.mxu0 }
 0x1d4   :  { %v1709_v35 = vpop.f32.mrf.mxu1 }
 0x1d5   :  { %v2008_v36 = vadd.f32 %v2934_v9, %v1708_v33  ;;  %v1421_v37 = vpop.f32.mrf.mxu0 }
 0x1d6   :  { %v1710_v38 = vpop.f32.mrf.mxu1 }
 0x1d7   :  { %2072 = vst [vmem:[%s3273_s3 + $0x1a0] sm:$0xff] %v2008_v36  ;;  %v1711_v39 = vadd.f32 %v1710_v38, %v1421_v37  ;;  %v1423_v40 = vpop.f32.mrf.mxu0 }
 0x1d8   :  { %v1712_v41 = vpop.f32.mrf.mxu1 }
 0x1d9   :  { %v2009_v42 = vadd.f32 %v2934_v9, %v1711_v39  ;;  %v1426_v43 = vpop.f32.mrf.mxu0 }
 0x1da   :  { %v1715_v44 = vpop.f32.mrf.mxu1 }
 0x1db   :  { %2073 = vst [vmem:[%s3273_s3 + $0x1a8] sm:$0xff] %v2009_v42  ;;  %v1716_v45 = vadd.f32 %v1715_v44, %v1426_v43  ;;  %v1428_v46 = vpop.f32.mrf.mxu0 }
 0x1dc   :  { %v1717_v47 = vpop.f32.mrf.mxu1 }
 0x1dd   :  { %v2010_v48 = vadd.f32 %v2934_v9, %v1716_v45  ;;  %v1429_v49 = vpop.f32.mrf.mxu0 }
 0x1de   :  { %v1718_v50 = vpop.f32.mrf.mxu1 }
 0x1df   :  { %2074 = vst [vmem:[%s3273_s3 + $0x1b0] sm:$0xff] %v2010_v48  ;;  %v1719_v51 = vadd.f32 %v1718_v50, %v1429_v49  ;;  %v1431_v52 = vpop.f32.mrf.mxu0 }
 0x1e0   :  { %v1720_v53 = vpop.f32.mrf.mxu1 }
 0x1e1   :  { %v2011_v54 = vadd.f32 %v2934_v9, %v1719_v51  ;;  %v1434_v55 = vpop.f32.mrf.mxu0 }
 0x1e2   :  { %v1723_v56 = vpop.f32.mrf.mxu1 }
 0x1e3   :  { %2075 = vst [vmem:[%s3273_s3 + $0x1b8] sm:$0xff] %v2011_v54  ;;  %v1724_v57 = vadd.f32 %v1723_v56, %v1434_v55  ;;  %v1436_v58 = vpop.f32.mrf.mxu0 }
 0x1e4   :  { %v1725_v59 = vpop.f32.mrf.mxu1 }
 0x1e5   :  { %v2012_v60 = vadd.f32 %v2934_v9, %v1724_v57  ;;  %v1437_v61 = vpop.f32.mrf.mxu0 }
 0x1e6   :  { %v1726_v62 = vpop.f32.mrf.mxu1 }
 0x1e7   :  { %2076 = vst [vmem:[%s3273_s3 + $0x1c0] sm:$0xff] %v2012_v60  ;;  %v1727_v63 = vadd.f32 %v1726_v62, %v1437_v61  ;;  %v1439_v0 = vpop.f32.mrf.mxu0 }
 0x1e8   :  { %v1728_v1 = vpop.f32.mrf.mxu1 }
 0x1e9   :  { %v2013_v2 = vadd.f32 %v2934_v9, %v1727_v63  ;;  %v1442_v3 = vpop.f32.mrf.mxu0 }
 0x1ea   :  { %v1731_v4 = vpop.f32.mrf.mxu1 }
 0x1eb   :  { %2077 = vst [vmem:[%s3273_s3 + $0x1c8] sm:$0xff] %v2013_v2  ;;  %v1732_v5 = vadd.f32 %v1731_v4, %v1442_v3  ;;  %v1444_v6 = vpop.f32.mrf.mxu0 }
 0x1ec   :  { %v1733_v7 = vpop.f32.mrf.mxu1 }
 0x1ed   :  { %v2014_v8 = vadd.f32 %v2934_v9, %v1732_v5  ;;  %v1445_v10 = vpop.f32.mrf.mxu0 }
 0x1ee   :  { %v1734_v11 = vpop.f32.mrf.mxu1 }
 0x1ef   :  { %2078 = vst [vmem:[%s3273_s3 + $0x1d0] sm:$0xff] %v2014_v8  ;;  %v1735_v12 = vadd.f32 %v1734_v11, %v1445_v10  ;;  %v1447_v13 = vpop.f32.mrf.mxu0 }
 0x1f0   :  { %v1736_v14 = vpop.f32.mrf.mxu1 }
 0x1f1   :  { %v2015_v15 = vadd.f32 %v2934_v9, %v1735_v12  ;;  %v1450_v16 = vpop.f32.mrf.mxu0 }
 0x1f2   :  { %v1739_v17 = vpop.f32.mrf.mxu1 }
 0x1f3   :  { %2079 = vst [vmem:[%s3273_s3 + $0x1d8] sm:$0xff] %v2015_v15  ;;  %v1740_v18 = vadd.f32 %v1739_v17, %v1450_v16  ;;  %v1452_v19 = vpop.f32.mrf.mxu0 }
 0x1f4   :  { %v1741_v20 = vpop.f32.mrf.mxu1 }
 0x1f5   :  { %v2016_v21 = vadd.f32 %v2934_v9, %v1740_v18  ;;  %v1453_v22 = vpop.f32.mrf.mxu0 }
 0x1f6   :  { %v1742_v23 = vpop.f32.mrf.mxu1 }
 0x1f7   :  { %2080 = vst [vmem:[%s3273_s3 + $0x1e0] sm:$0xff] %v2016_v21  ;;  %v1743_v24 = vadd.f32 %v1742_v23, %v1453_v22  ;;  %v1455_v25 = vpop.f32.mrf.mxu0 }
 0x1f8   :  { %v1744_v26 = vpop.f32.mrf.mxu1 }
 0x1f9   :  { %v2017_v27 = vadd.f32 %v2934_v9, %v1743_v24  ;;  %v1458_v28 = vpop.f32.mrf.mxu0 }
 0x1fa   :  { %v1747_v29 = vpop.f32.mrf.mxu1 }
 0x1fb   :  { %2081 = vst [vmem:[%s3273_s3 + $0x1e8] sm:$0xff] %v2017_v27  ;;  %v1748_v30 = vadd.f32 %v1747_v29, %v1458_v28  ;;  %v1460_v31 = vpop.f32.mrf.mxu0 }
 0x1fc   :  { %v1749_v32 = vpop.f32.mrf.mxu1 }
 0x1fd   :  { %v2018_v33 = vadd.f32 %v2934_v9, %v1748_v30  ;;  %v1461_v34 = vpop.f32.mrf.mxu0 }
 0x1fe   :  { %v1750_v35 = vpop.f32.mrf.mxu1 }
 0x1ff   :  { %2082 = vst [vmem:[%s3273_s3 + $0x1f0] sm:$0xff] %v2018_v33  ;;  %v1751_v36 = vadd.f32 %v1750_v35, %v1461_v34  ;;  %v1463_v37 = vpop.f32.mrf.mxu0 }
 0x200   :  { %v1752_v38 = vpop.f32.mrf.mxu1 }
 0x201   :  { %v2019_v39 = vadd.f32 %v2934_v9, %v1751_v36 }
 0x203   :  { %2083 = vst [vmem:[%s3273_s3 + $0x1f8] sm:$0xff] %v2019_v39 }

// kernel: mesh_gnn_forward.4
= control target key start
LH: loop header
LB: loop body
LE: loop exit
PB: predicated region body
PF: predicated region fallthrough
CT: control target
= control target key end

     0   :  { %v3671_v0 = vmov 0   ;;  %s4606_s1 = inlined_call_operand.vmem [shape: bf16[512,128], index: 1, kind: input, shape index: {}]   ;;  %s4607_s0 = inlined_call_operand.vmem [shape: bf16[512,512], index: 0, kind: input, shape index: {}]   ;;  %s4608_s3 = inlined_call_operand.vmem [shape: bf16[128,128], index: 3, kind: input, shape index: {}]   ;;  %s4609_s2 = inlined_call_operand.vmem [shape: f32[1,128], index: 2, kind: input, shape index: {}]   ;;  %s4610_s4 = inlined_call_operand.vmem [shape: bf16[512,128], index: 4, kind: output, shape index: {}]  }
   0x1   :  { %3406 = vmatprep.subr.bf16.mxu1 %v3671_v0  ;;  %v3439_v1 = vld [vmem:[%s4606_s1 + $0x38] sm:$0xff]   ;;  %1179 = vmatprep.subr.bf16.mxu0 %v3671_v0  ;;  %v3440_v2 = vld [vmem:[%s4606_s1 + $0x30] sm:$0xff]   ;;  %v3441_v3 = vld [vmem:[%s4606_s1 + $0x28] sm:$0xff]  }
   0x2   :  { %3422 = vmatpush1.bf16.msra.mxu1 %v3439_v1  ;;  %1180 = vmatpush1.bf16.msra.mxu0 %v3439_v1  ;;  %v3442_v4 = vld [vmem:[%s4606_s1 + $0x20] sm:$0xff]   ;;  %v3443_v5 = vld [vmem:[%s4606_s1 + $0x18] sm:$0xff]   ;;  %v3444_v7 = vld [vmem:[%s4606_s1 + $0x10] sm:$0xff]  }
   0x3   :  { %3407 = vmatprep.subr.bf16.mxu1 %v3671_v0  ;;  %1181 = vmatprep.subr.bf16.mxu0 %v3671_v0  ;;  %v3457_v6 = vld [vmem:[%s4607_s0 + $0x304] ss:$16 sps:$4 sm:$0xff]   ;;  %v3445_v8 = vld [vmem:[%s4606_s1 + $0x8] sm:$0xff]   ;;  %v3447_v10 = vld [vmem:[%s4606_s1 + $0x78] sm:$0xff]  }
   0x4   :  { %1403 = vmatprep.mubr.bf16.mxu1 %v3457_v6  ;;  %v3446_v9 = vld [vmem:[%s4606_s1] sm:$0xff]   ;;  %v3448_v11 = vld [vmem:[%s4606_s1 + $0x70] sm:$0xff]   ;;  %v3449_v12 = vld [vmem:[%s4606_s1 + $0x68] sm:$0xff]  }
   0x5   :  { %v3450_v13 = vld [vmem:[%s4606_s1 + $0x60] sm:$0xff]   ;;  %v3451_v15 = vld [vmem:[%s4606_s1 + $0x58] sm:$0xff]   ;;  %v3452_v16 = vld [vmem:[%s4606_s1 + $0x50] sm:$0xff]  }
   0x6   :  { %3423 = vmatpush1.bf16.msra.mxu1 %v3440_v2  ;;  %1182 = vmatpush1.bf16.msra.mxu0 %v3440_v2  ;;  %v3497_v14 = vld [vmem:[%s4607_s0 + $0x4] ss:$16 sps:$4 sm:$0xff]   ;;  %v3453_v17 = vld [vmem:[%s4606_s1 + $0x48] sm:$0xff]   ;;  %v3455_v19 = vld [vmem:[%s4607_s0 + $0x300] ss:$16 sps:$4 sm:$0xff]  }
   0x7   :  { %3408 = vmatprep.subr.bf16.mxu1 %v3671_v0  ;;  %1183 = vmatprep.subr.bf16.mxu0 %v3671_v0  ;;  %v3454_v18 = vld [vmem:[%s4606_s1 + $0x40] sm:$0xff]   ;;  %v3458_v20 = vld [vmem:[%s4606_s1 + $0xb8] sm:$0xff]   ;;  %v3459_v24 = vld [vmem:[%s4606_s1 + $0xb0] sm:$0xff]  }
   0x8   :  { %1211 = vmatprep.mubr.bf16.mxu0 %v3497_v14  ;;  %v3495_v21 = vld [vmem:[%s4607_s0] ss:$16 sps:$4 sm:$0xff]   ;;  %v3460_v22 = vld [vmem:[%s4607_s0 + $0x324] ss:$16 sps:$4 sm:$0xff]   ;;  %v3463_v26 = vld [vmem:[%s4606_s1 + $0xa8] sm:$0xff]  }
   0x9   :  { %v3501_v23 = vld [vmem:[%s4607_s0 + $0x24] ss:$16 sps:$4 sm:$0xff]   ;;  %v3462_v25 = vld [vmem:[%s4607_s0 + $0x320] ss:$16 sps:$4 sm:$0xff]   ;;  %v3468_v33 = vld [vmem:[%s4606_s1 + $0x98] sm:$0xff]  }
   0xa   :  { %3424 = vmatpush1.bf16.msra.mxu1 %v3441_v3  ;;  %1184 = vmatpush1.bf16.msra.mxu0 %v3441_v3  ;;  %v3465_v27 = vld [vmem:[%s4607_s0 + $0x344] ss:$16 sps:$4 sm:$0xff]   ;;  %v3505_v28 = vld [vmem:[%s4607_s0 + $0x20] ss:$16 sps:$4 sm:$0xff]   ;;  %v3473_v39 = vld [vmem:[%s4606_s1 + $0x88] sm:$0xff]  }
   0xb   :  { %3409 = vmatprep.subr.bf16.mxu1 %v3671_v0  ;;  %1185 = vmatprep.subr.bf16.mxu0 %v3671_v0  ;;  %v3507_v29 = vld [vmem:[%s4607_s0 + $0x44] ss:$16 sps:$4 sm:$0xff]   ;;  %v3467_v31 = vld [vmem:[%s4607_s0 + $0x340] ss:$16 sps:$4 sm:$0xff]   ;;  %v3478_v45 = vld [vmem:[%s4606_s1 + $0xf8] sm:$0xff]  }
   0xc   :  { %v3464_v30 = vld [vmem:[%s4606_s1 + $0xa0] sm:$0xff]   ;;  %v3469_v36 = vld [vmem:[%s4606_s1 + $0x90] sm:$0xff]   ;;  %v3483_v51 = vld [vmem:[%s4606_s1 + $0xe8] sm:$0xff]  }
   0xd   :  { %v3511_v32 = vld [vmem:[%s4607_s0 + $0x40] ss:$16 sps:$4 sm:$0xff]   ;;  %v3470_v34 = vld [vmem:[%s4607_s0 + $0x364] ss:$16 sps:$4 sm:$0xff]   ;;  %v3488_v57 = vld [vmem:[%s4606_s1 + $0xd8] sm:$0xff]  }
   0xe   :  { %3425 = vmatpush1.bf16.msra.mxu1 %v3442_v4  ;;  %1186 = vmatpush1.bf16.msra.mxu0 %v3442_v4  ;;  %v3513_v35 = vld [vmem:[%s4607_s0 + $0x64] ss:$16 sps:$4 sm:$0xff]   ;;  %v3472_v37 = vld [vmem:[%s4607_s0 + $0x360] ss:$16 sps:$4 sm:$0xff]   ;;  %v3493_v63 = vld [vmem:[%s4606_s1 + $0xc8] sm:$0xff]  }
   0xf   :  { %3410 = vmatprep.subr.bf16.mxu1 %v3671_v0  ;;  %1187 = vmatprep.subr.bf16.mxu0 %v3671_v0  ;;  %v3517_v38 = vld [vmem:[%s4607_s0 + $0x60] ss:$16 sps:$4 sm:$0xff]   ;;  %v3475_v40 = vld [vmem:[%s4607_s0 + $0x384] ss:$16 sps:$4 sm:$0xff]   ;;  %v3500_v1 = vld [vmem:[%s4607_s0 + $0xc] ss:$16 sps:$4 sm:$0xff]  }
  0x10   :  { %v3519_v41 = vld [vmem:[%s4607_s0 + $0x84] ss:$16 sps:$4 sm:$0xff]   ;;  %v3477_v43 = vld [vmem:[%s4607_s0 + $0x380] ss:$16 sps:$4 sm:$0xff]   ;;  %v3498_v4 = vld [vmem:[%s4607_s0 + $0x8] ss:$16 sps:$4 sm:$0xff]  }
  0x11   :  { %v3474_v42 = vld [vmem:[%s4606_s1 + $0x80] sm:$0xff]   ;;  %v3479_v48 = vld [vmem:[%s4606_s1 + $0xf0] sm:$0xff]   ;;  %v3503_v6 = vld [vmem:[%s4607_s0 + $0x2c] ss:$16 sps:$4 sm:$0xff]  }
  0x12   :  { %3426 = vmatpush1.bf16.msra.mxu1 %v3443_v5  ;;  %1188 = vmatpush1.bf16.msra.mxu0 %v3443_v5  ;;  %v3523_v44 = vld [vmem:[%s4607_s0 + $0x80] ss:$16 sps:$4 sm:$0xff]   ;;  %v3480_v46 = vld [vmem:[%s4607_s0 + $0x3a4] ss:$16 sps:$4 sm:$0xff]  }
  0x13   :  { %3411 = vmatprep.subr.bf16.mxu1 %v3671_v0  ;;  %1189 = vmatprep.subr.bf16.mxu0 %v3671_v0  ;;  %v3525_v47 = vld [vmem:[%s4607_s0 + $0xa4] ss:$16 sps:$4 sm:$0xff]   ;;  %v3482_v49 = vld [vmem:[%s4607_s0 + $0x3a0] ss:$16 sps:$4 sm:$0xff]  }
  0x14   :  { %v3529_v50 = vld [vmem:[%s4607_s0 + $0xa0] ss:$16 sps:$4 sm:$0xff]   ;;  %v3485_v52 = vld [vmem:[%s4607_s0 + $0x3c4] ss:$16 sps:$4 sm:$0xff]  }
  0x15   :  { %v3531_v53 = vld [vmem:[%s4607_s0 + $0xc4] ss:$16 sps:$4 sm:$0xff]   ;;  %v3487_v55 = vld [vmem:[%s4607_s0 + $0x3c0] ss:$16 sps:$4 sm:$0xff]  }
  0x16   :  { %3427 = vmatpush1.bf16.msra.mxu1 %v3444_v7  ;;  %1190 = vmatpush1.bf16.msra.mxu0 %v3444_v7  ;;  %v3484_v54 = vld [vmem:[%s4606_s1 + $0xe0] sm:$0xff]   ;;  %v3489_v60 = vld [vmem:[%s4606_s1 + $0xd0] sm:$0xff]  }
  0x17   :  { %3412 = vmatprep.subr.bf16.mxu1 %v3671_v0  ;;  %1191 = vmatprep.subr.bf16.mxu0 %v3671_v0  ;;  %v3535_v56 = vld [vmem:[%s4607_s0 + $0xc0] ss:$16 sps:$4 sm:$0xff]   ;;  %v3490_v58 = vld [vmem:[%s4607_s0 + $0x3e4] ss:$16 sps:$4 sm:$0xff]  }
  0x18   :  { %v3537_v59 = vld [vmem:[%s4607_s0 + $0xe4] ss:$16 sps:$4 sm:$0xff]   ;;  %v3492_v61 = vld [vmem:[%s4607_s0 + $0x3e0] ss:$16 sps:$4 sm:$0xff]  }
  0x19   :  { %v3541_v62 = vld [vmem:[%s4607_s0 + $0xe0] ss:$16 sps:$4 sm:$0xff]   ;;  %v3543_v2 = vld [vmem:[%s4607_s0 + $0x104] ss:$16 sps:$4 sm:$0xff]  }
  0x1a   :  { %3428 = vmatpush1.bf16.msra.mxu1 %v3445_v8  ;;  %1192 = vmatpush1.bf16.msra.mxu0 %v3445_v8  ;;  %v3494_v3 = vld [vmem:[%s4606_s1 + $0xc0] sm:$0xff]  }
  0x1b   :  { %3413 = vmatprep.subr.bf16.mxu1 %v3671_v0  ;;  %1193 = vmatprep.subr.bf16.mxu0 %v3671_v0  ;;  %v3547_v5 = vld [vmem:[%s4607_s0 + $0x100] ss:$16 sps:$4 sm:$0xff]   ;;  %v3549_v7 = vld [vmem:[%s4607_s0 + $0x124] ss:$16 sps:$4 sm:$0xff]  }
  0x1c   :  { %v3553_v8 = vld [vmem:[%s4607_s0 + $0x120] ss:$16 sps:$4 sm:$0xff]   ;;  %v3561_v14 = vld [vmem:[%s4607_s0 + $0x164] ss:$16 sps:$4 sm:$0xff]  }
  0x1e   :  { %3429 = vmatpush1.bf16.msra.mxu1 %v3446_v9  ;;  %1194 = vmatpush1.bf16.msra.mxu0 %v3446_v9  ;;  %v3509_v9 = vld [vmem:[%s4607_s0 + $0x4c] ss:$16 sps:$4 sm:$0xff]  }
  0x1f   :  { %3414 = vmatprep.subr.bf16.mxu1 %v3671_v0  ;;  %1195 = vmatprep.subr.bf16.mxu0 %v3671_v0 }
  0x22   :  { %3430 = vmatpush2.bf16.msra.mxu1 %v3447_v10  ;;  %1196 = vmatpush2.bf16.msra.mxu0 %v3447_v10  ;;  %v3555_v10 = vld [vmem:[%s4607_s0 + $0x144] ss:$16 sps:$4 sm:$0xff]  }
  0x23   :  { %3415 = vmatprep.subr.bf16.mxu1 %v3671_v0  ;;  %1197 = vmatprep.subr.bf16.mxu0 %v3671_v0 }
  0x26   :  { %3431 = vmatpush2.bf16.msra.mxu1 %v3448_v11  ;;  %1198 = vmatpush2.bf16.msra.mxu0 %v3448_v11  ;;  %v3512_v11 = vld [vmem:[%s4607_s0 + $0x48] ss:$16 sps:$4 sm:$0xff]  }
  0x27   :  { %3416 = vmatprep.subr.bf16.mxu1 %v3671_v0  ;;  %1199 = vmatprep.subr.bf16.mxu0 %v3671_v0 }
  0x2a   :  { %3432 = vmatpush2.bf16.msra.mxu1 %v3449_v12  ;;  %1200 = vmatpush2.bf16.msra.mxu0 %v3449_v12  ;;  %v3515_v12 = vld [vmem:[%s4607_s0 + $0x6c] ss:$16 sps:$4 sm:$0xff]  }
  0x2b   :  { %3417 = vmatprep.subr.bf16.mxu1 %v3671_v0  ;;  %1201 = vmatprep.subr.bf16.mxu0 %v3671_v0 }
  0x2e   :  { %3433 = vmatpush2.bf16.msra.mxu1 %v3450_v13  ;;  %1202 = vmatpush2.bf16.msra.mxu0 %v3450_v13  ;;  %v3559_v13 = vld [vmem:[%s4607_s0 + $0x140] ss:$16 sps:$4 sm:$0xff]  }
  0x2f   :  { %3418 = vmatprep.subr.bf16.mxu1 %v3671_v0  ;;  %1203 = vmatprep.subr.bf16.mxu0 %v3671_v0 }
  0x32   :  { %3434 = vmatpush2.bf16.msra.mxu1 %v3451_v15  ;;  %1204 = vmatpush2.bf16.msra.mxu0 %v3451_v15  ;;  %v3603_v15 = vld [vmem:[%s4608_s3 + $0x38] sm:$0xff]  }
  0x33   :  { %3419 = vmatprep.subr.bf16.mxu1 %v3671_v0  ;;  %1205 = vmatprep.subr.bf16.mxu0 %v3671_v0 }
  0x36   :  { %3435 = vmatpush2.bf16.msra.mxu1 %v3452_v16  ;;  %1206 = vmatpush2.bf16.msra.mxu0 %v3452_v16  ;;  %v3518_v16 = vld [vmem:[%s4607_s0 + $0x68] ss:$16 sps:$4 sm:$0xff]  }
  0x37   :  { %3420 = vmatprep.subr.bf16.mxu1 %v3671_v0  ;;  %1207 = vmatprep.subr.bf16.mxu0 %v3671_v0 }
  0x3a   :  { %3436 = vmatpush2.bf16.msra.mxu1 %v3453_v17  ;;  %1208 = vmatpush2.bf16.msra.mxu0 %v3453_v17  ;;  %v3565_v17 = vld [vmem:[%s4607_s0 + $0x160] ss:$16 sps:$4 sm:$0xff]  }
  0x3b   :  { %3421 = vmatprep.subr.bf16.mxu1 %v3671_v0  ;;  %1209 = vmatprep.subr.bf16.mxu0 %v3671_v0 }
  0x3e   :  { %3437 = vmatpush2.bf16.msra.mxu1 %v3454_v18  ;;  %1210 = vmatpush2.bf16.msra.mxu0 %v3454_v18  ;;  %v3521_v18 = vld [vmem:[%s4607_s0 + $0x8c] ss:$16 sps:$4 sm:$0xff]  }
  0x3f   :  { %1468 = vmatprep.subr.bf16.mxu1 %v3671_v0  ;;  %3326 = vmatprep.subr.bf16.mxu0 %v3603_v15 }
  0x41   :  { %1404 = vmatmul.mubr.bf16.vlgmr.msra.gmra.mxu1 %v3455_v19  ;;  %1212 = vmatmul.mubr.bf16.vlgmr.msra.gmra.mxu0 %v3495_v21  ;;  %v3567_v19 = vld [vmem:[%s4607_s0 + $0x184] ss:$16 sps:$4 sm:$0xff]   ;;  %v3571_v21 = vld [vmem:[%s4607_s0 + $0x180] ss:$16 sps:$4 sm:$0xff]  }
  0x42   :  { %1469 = vmatpush1.bf16.msra.mxu1 %v3458_v20  ;;  %1411 = vmatprep.mubr.bf16.mxu1 %v3460_v22  ;;  %v3524_v20 = vld [vmem:[%s4607_s0 + $0x88] ss:$16 sps:$4 sm:$0xff]   ;;  %v3527_v22 = vld [vmem:[%s4607_s0 + $0xac] ss:$16 sps:$4 sm:$0xff]  }
  0x43   :  { %1470 = vmatprep.subr.bf16.mxu1 %v3671_v0  ;;  %1219 = vmatprep.mubr.bf16.mxu0 %v3501_v23  ;;  %v3573_v23 = vld [vmem:[%s4607_s0 + $0x1a4] ss:$16 sps:$4 sm:$0xff]  }
  0x44   :  { %3327 = vmatpush3.bf16.msra.mxu0 %v3603_v15 }
  0x46   :  { %1471 = vmatpush1.bf16.msra.mxu1 %v3459_v24  ;;  %v3530_v24 = vld [vmem:[%s4607_s0 + $0xa8] ss:$16 sps:$4 sm:$0xff]  }
  0x47   :  { %1472 = vmatprep.subr.bf16.mxu1 %v3671_v0 }
  0x49   :  { %1412 = vmatmul.mubr.bf16.gmra.mxu1 %v3462_v25  ;;  %1220 = vmatmul.mubr.bf16.gmra.mxu0 %v3505_v28  ;;  %v3577_v25 = vld [vmem:[%s4607_s0 + $0x1a0] ss:$16 sps:$4 sm:$0xff]   ;;  %v3579_v28 = vld [vmem:[%s4607_s0 + $0x1c4] ss:$16 sps:$4 sm:$0xff]  }
  0x4a   :  { %1473 = vmatpush1.bf16.msra.mxu1 %v3463_v26  ;;  %1419 = vmatprep.mubr.bf16.mxu1 %v3465_v27  ;;  %v3622_v26 = vld [vmem:[%s4608_s3 + $0x30] sm:$0xff]   ;;  %v3533_v27 = vld [vmem:[%s4607_s0 + $0xcc] ss:$16 sps:$4 sm:$0xff]  }
  0x4b   :  { %1474 = vmatprep.subr.bf16.mxu1 %v3671_v0  ;;  %1227 = vmatprep.mubr.bf16.mxu0 %v3507_v29  ;;  %v3536_v29 = vld [vmem:[%s4607_s0 + $0xc8] ss:$16 sps:$4 sm:$0xff]  }
  0x4c   :  { %3328 = vmatprep.subr.bf16.mxu0 %v3622_v26 }
  0x4d   :  { %3329 = vmatpush3.bf16.msra.mxu0 %v3622_v26 }
  0x4e   :  { %1475 = vmatpush1.bf16.msra.mxu1 %v3464_v30  ;;  %v3583_v30 = vld [vmem:[%s4607_s0 + $0x1c0] ss:$16 sps:$4 sm:$0xff]  }
  0x4f   :  { %1476 = vmatprep.subr.bf16.mxu1 %v3671_v0 }
  0x51   :  { %1420 = vmatmul.mubr.bf16.gmra.mxu1 %v3467_v31  ;;  %1228 = vmatmul.mubr.bf16.gmra.mxu0 %v3511_v32  ;;  %v3539_v31 = vld [vmem:[%s4607_s0 + $0xec] ss:$16 sps:$4 sm:$0xff]   ;;  %v3585_v32 = vld [vmem:[%s4607_s0 + $0x1e4] ss:$16 sps:$4 sm:$0xff]  }
  0x52   :  { %1477 = vmatpush1.bf16.msra.mxu1 %v3468_v33  ;;  %1427 = vmatprep.mubr.bf16.mxu1 %v3470_v34  ;;  %v3542_v33 = vld [vmem:[%s4607_s0 + $0xe8] ss:$16 sps:$4 sm:$0xff]   ;;  %v3589_v34 = vld [vmem:[%s4607_s0 + $0x1e0] ss:$16 sps:$4 sm:$0xff]  }
  0x53   :  { %1478 = vmatprep.subr.bf16.mxu1 %v3671_v0  ;;  %1235 = vmatprep.mubr.bf16.mxu0 %v3513_v35  ;;  %v3545_v35 = vld [vmem:[%s4607_s0 + $0x10c] ss:$16 sps:$4 sm:$0xff]  }
  0x56   :  { %1479 = vmatpush1.bf16.msra.mxu1 %v3469_v36  ;;  %v3591_v36 = vld [vmem:[%s4607_s0 + $0x204] ss:$16 sps:$4 sm:$0xff]  }
  0x57   :  { %1480 = vmatprep.subr.bf16.mxu1 %v3671_v0 }
  0x59   :  { %1428 = vmatmul.mubr.bf16.gmra.mxu1 %v3472_v37  ;;  %1236 = vmatmul.mubr.bf16.gmra.mxu0 %v3517_v38  ;;  %v3641_v37 = vld [vmem:[%s4608_s3 + $0x28] sm:$0xff]  }
  0x5a   :  { %1481 = vmatpush1.bf16.msra.mxu1 %v3473_v39  ;;  %1435 = vmatprep.mubr.bf16.mxu1 %v3475_v40  ;;  %v3548_v38 = vld [vmem:[%s4607_s0 + $0x108] ss:$16 sps:$4 sm:$0xff]   ;;  %v3595_v39 = vld [vmem:[%s4607_s0 + $0x200] ss:$16 sps:$4 sm:$0xff]   ;;  %v3551_v40 = vld [vmem:[%s4607_s0 + $0x12c] ss:$16 sps:$4 sm:$0xff]  }
  0x5b   :  { %1482 = vmatprep.subr.bf16.mxu1 %v3671_v0  ;;  %1243 = vmatprep.mubr.bf16.mxu0 %v3519_v41  ;;  %v3597_v41 = vld [vmem:[%s4607_s0 + $0x224] ss:$16 sps:$4 sm:$0xff]  }
  0x5c   :  { %3330 = vmatprep.subr.bf16.mxu0 %v3641_v37 }
  0x5d   :  { %3331 = vmatpush3.bf16.msra.mxu0 %v3641_v37  ;;  %v3615_v37 = vld [vmem:[%s4607_s0 + $0x268] ss:$16 sps:$4 sm:$0xff]  }
  0x5e   :  { %1483 = vmatpush1.bf16.msra.mxu1 %v3474_v42  ;;  %v3645_v42 = vld [vmem:[%s4608_s3 + $0x20] sm:$0xff]  }
  0x5f   :  { %1484 = vmatprep.subr.bf16.mxu1 %v3671_v0  ;;  %3332 = vmatprep.subr.bf16.mxu0 %v3645_v42 }
  0x61   :  { %1436 = vmatmul.mubr.bf16.gmra.mxu1 %v3477_v43  ;;  %1244 = vmatmul.mubr.bf16.gmra.mxu0 %v3523_v44  ;;  %v3646_v43 = vld [vmem:[%s4608_s3 + $0x18] sm:$0xff]  }
  0x62   :  { %1485 = vmatpush2.bf16.msra.mxu1 %v3478_v45  ;;  %1443 = vmatprep.mubr.bf16.mxu1 %v3480_v46  ;;  %v3554_v44 = vld [vmem:[%s4607_s0 + $0x128] ss:$16 sps:$4 sm:$0xff]   ;;  %v3601_v45 = vld [vmem:[%s4607_s0 + $0x220] ss:$16 sps:$4 sm:$0xff]   ;;  %v3557_v46 = vld [vmem:[%s4607_s0 + $0x14c] ss:$16 sps:$4 sm:$0xff]  }
  0x63   :  { %1486 = vmatprep.subr.bf16.mxu1 %v3671_v0  ;;  %1251 = vmatprep.mubr.bf16.mxu0 %v3525_v47  ;;  %v3604_v47 = vld [vmem:[%s4607_s0 + $0x244] ss:$16 sps:$4 sm:$0xff]  }
  0x64   :  { %3333 = vmatpush3.bf16.msra.mxu0 %v3645_v42 }
  0x65   :  { %3334 = vmatprep.subr.bf16.mxu0 %v3646_v43 }
  0x66   :  { %1487 = vmatpush2.bf16.msra.mxu1 %v3479_v48  ;;  %v3650_v48 = vld [vmem:[%s4608_s3 + $0x10] sm:$0xff]  }
  0x67   :  { %1488 = vmatprep.subr.bf16.mxu1 %v3671_v0 }
  0x68   :  { %3335 = vmatpush3.bf16.msra.mxu0 %v3646_v43 }
  0x69   :  { %1444 = vmatmul.mubr.bf16.gmra.mxu1 %v3482_v49  ;;  %1252 = vmatmul.mubr.bf16.gmra.mxu0 %v3529_v50  ;;  %v3651_v49 = vld [vmem:[%s4608_s3 + $0x8] sm:$0xff]  }
  0x6a   :  { %1489 = vmatpush2.bf16.msra.mxu1 %v3483_v51  ;;  %1451 = vmatprep.mubr.bf16.mxu1 %v3485_v52  ;;  %v3560_v50 = vld [vmem:[%s4607_s0 + $0x148] ss:$16 sps:$4 sm:$0xff]   ;;  %v3608_v51 = vld [vmem:[%s4607_s0 + $0x240] ss:$16 sps:$4 sm:$0xff]   ;;  %v3563_v52 = vld [vmem:[%s4607_s0 + $0x16c] ss:$16 sps:$4 sm:$0xff]  }
  0x6b   :  { %1490 = vmatprep.subr.bf16.mxu1 %v3671_v0  ;;  %1259 = vmatprep.mubr.bf16.mxu0 %v3531_v53  ;;  %v3610_v53 = vld [vmem:[%s4607_s0 + $0x264] ss:$16 sps:$4 sm:$0xff]  }
  0x6c   :  { %3336 = vmatprep.subr.bf16.mxu0 %v3650_v48 }
  0x6d   :  { %3337 = vmatpush3.bf16.msra.mxu0 %v3650_v48 }
  0x6e   :  { %1491 = vmatpush2.bf16.msra.mxu1 %v3484_v54  ;;  %3338 = vmatprep.subr.bf16.mxu0 %v3651_v49  ;;  %v3655_v54 = vld [vmem:[%s4608_s3] sm:$0xff]  }
  0x6f   :  { %1492 = vmatprep.subr.bf16.mxu1 %v3671_v0 }
  0x71   :  { %1452 = vmatmul.mubr.bf16.gmra.mxu1 %v3487_v55  ;;  %1260 = vmatmul.mubr.bf16.gmra.mxu0 %v3535_v56  ;;  %v3566_v55 = vld [vmem:[%s4607_s0 + $0x168] ss:$16 sps:$4 sm:$0xff]   ;;  %v3614_v56 = vld [vmem:[%s4607_s0 + $0x260] ss:$16 sps:$4 sm:$0xff]  }
  0x72   :  { %1493 = vmatpush2.bf16.msra.mxu1 %v3488_v57  ;;  %1459 = vmatprep.mubr.bf16.mxu1 %v3490_v58  ;;  %v3569_v57 = vld [vmem:[%s4607_s0 + $0x18c] ss:$16 sps:$4 sm:$0xff]   ;;  %v3616_v58 = vld [vmem:[%s4607_s0 + $0x284] ss:$16 sps:$4 sm:$0xff]  }
  0x73   :  { %1494 = vmatprep.subr.bf16.mxu1 %v3671_v0  ;;  %1267 = vmatprep.mubr.bf16.mxu0 %v3537_v59  ;;  %v3572_v59 = vld [vmem:[%s4607_s0 + $0x188] ss:$16 sps:$4 sm:$0xff]  }
  0x74   :  { %3339 = vmatpush3.bf16.msra.mxu0 %v3651_v49  ;;  %v3627_v49 = vld [vmem:[%s4607_s0 + $0x2ac] ss:$16 sps:$4 sm:$0xff]  }
  0x75   :  { %3340 = vmatprep.subr.bf16.mxu0 %v3655_v54 }
  0x76   :  { %1495 = vmatpush2.bf16.msra.mxu1 %v3489_v60  ;;  %v3621_v60 = vld [vmem:[%s4607_s0 + $0x280] ss:$16 sps:$4 sm:$0xff]  }
  0x77   :  { %1496 = vmatprep.subr.bf16.mxu1 %v3671_v0 }
  0x78   :  { %3341 = vmatpush3.bf16.msra.mxu0 %v3655_v54 }
  0x79   :  { %1460 = vmatmul.mubr.bf16.gmra.mxu1 %v3492_v61  ;;  %1268 = vmatmul.mubr.bf16.gmra.mxu0 %v3541_v62  ;;  %v3575_v61 = vld [vmem:[%s4607_s0 + $0x1ac] ss:$16 sps:$4 sm:$0xff]   ;;  %v3623_v62 = vld [vmem:[%s4607_s0 + $0x2a4] ss:$16 sps:$4 sm:$0xff]  }
  0x7a   :  { %1497 = vmatpush2.bf16.msra.mxu1 %v3493_v63  ;;  %1500 = vmatprep.mubr.bf16.mxu1 %v3500_v1  ;;  %v3578_v63 = vld [vmem:[%s4607_s0 + $0x1a8] ss:$16 sps:$4 sm:$0xff]   ;;  %v3628_v1 = vld [vmem:[%s4607_s0 + $0x2a0] ss:$16 sps:$4 sm:$0xff]  }
  0x7b   :  { %1498 = vmatprep.subr.bf16.mxu1 %v3671_v0  ;;  %1275 = vmatprep.mubr.bf16.mxu0 %v3543_v2  ;;  %v3506_v0 = vld [vmem:[%s4607_s0 + $0x28] ss:$16 sps:$4 sm:$0xff]   ;;  %v3581_v2 = vld [vmem:[%s4607_s0 + $0x1cc] ss:$16 sps:$4 sm:$0xff]  }
  0x7e   :  { %1499 = vmatpush2.bf16.msra.mxu1 %v3494_v3  ;;  %v3629_v3 = vld [vmem:[%s4607_s0 + $0x2c4] ss:$16 sps:$4 sm:$0xff]  }
  0x81   :  { %1501 = vmatmul.mubr.bf16.vlgmr.msra.gmra.mxu1 %v3498_v4  ;;  %1276 = vmatmul.mubr.bf16.gmra.mxu0 %v3547_v5  ;;  %v3584_v4 = vld [vmem:[%s4607_s0 + $0x1c8] ss:$16 sps:$4 sm:$0xff]   ;;  %v3634_v5 = vld [vmem:[%s4607_s0 + $0x2c0] ss:$16 sps:$4 sm:$0xff]  }
  0x82   :  { %1508 = vmatprep.mubr.bf16.mxu1 %v3503_v6  ;;  %1283 = vmatprep.mubr.bf16.mxu0 %v3549_v7  ;;  %v3587_v6 = vld [vmem:[%s4607_s0 + $0x1ec] ss:$16 sps:$4 sm:$0xff]   ;;  %v3635_v7 = vld [vmem:[%s4607_s0 + $0x2e4] ss:$16 sps:$4 sm:$0xff]  }
  0x89   :  { %1509 = vmatmul.mubr.bf16.gmra.mxu1 %v3506_v0  ;;  %1284 = vmatmul.mubr.bf16.gmra.mxu0 %v3553_v8  ;;  %v3590_v0 = vld [vmem:[%s4607_s0 + $0x1e8] ss:$16 sps:$4 sm:$0xff]   ;;  %v3640_v8 = vld [vmem:[%s4607_s0 + $0x2e0] ss:$16 sps:$4 sm:$0xff]  }
  0x8a   :  { %1516 = vmatprep.mubr.bf16.mxu1 %v3509_v9  ;;  %1291 = vmatprep.mubr.bf16.mxu0 %v3555_v10  ;;  %v3593_v9 = vld [vmem:[%s4607_s0 + $0x20c] ss:$16 sps:$4 sm:$0xff]   ;;  %v3596_v10 = vld [vmem:[%s4607_s0 + $0x208] ss:$16 sps:$4 sm:$0xff]  }
  0x91   :  { %1517 = vmatmul.mubr.bf16.gmra.mxu1 %v3512_v11  ;;  %1292 = vmatmul.mubr.bf16.gmra.mxu0 %v3559_v13  ;;  %v3599_v11 = vld [vmem:[%s4607_s0 + $0x22c] ss:$16 sps:$4 sm:$0xff]  }
  0x92   :  { %1524 = vmatprep.mubr.bf16.mxu1 %v3515_v12  ;;  %1299 = vmatprep.mubr.bf16.mxu0 %v3561_v14 }
  0x99   :  { %1525 = vmatmul.mubr.bf16.gmra.mxu1 %v3518_v16  ;;  %1300 = vmatmul.mubr.bf16.gmra.mxu0 %v3565_v17  ;;  %v3602_v17 = vld [vmem:[%s4607_s0 + $0x228] ss:$16 sps:$4 sm:$0xff]  }
  0x9a   :  { %1532 = vmatprep.mubr.bf16.mxu1 %v3521_v18  ;;  %1307 = vmatprep.mubr.bf16.mxu0 %v3567_v19  ;;  %v3606_v19 = vld [vmem:[%s4607_s0 + $0x24c] ss:$16 sps:$4 sm:$0xff]  }
  0xa1   :  { %1533 = vmatmul.mubr.bf16.gmra.mxu1 %v3524_v20  ;;  %1308 = vmatmul.mubr.bf16.gmra.mxu0 %v3571_v21 }
  0xa2   :  { %1540 = vmatprep.mubr.bf16.mxu1 %v3527_v22  ;;  %1315 = vmatprep.mubr.bf16.mxu0 %v3573_v23 }
  0xa9   :  { %1541 = vmatmul.mubr.bf16.gmra.mxu1 %v3530_v24  ;;  %1316 = vmatmul.mubr.bf16.gmra.mxu0 %v3577_v25 }
  0xaa   :  { %1548 = vmatprep.mubr.bf16.mxu1 %v3533_v27  ;;  %1323 = vmatprep.mubr.bf16.mxu0 %v3579_v28  ;;  %v3609_v27 = vld [vmem:[%s4607_s0 + $0x248] ss:$16 sps:$4 sm:$0xff]  }
  0xb1   :  { %1549 = vmatmul.mubr.bf16.gmra.mxu1 %v3536_v29  ;;  %1324 = vmatmul.mubr.bf16.gmra.mxu0 %v3583_v30  ;;  %v3612_v29 = vld [vmem:[%s4607_s0 + $0x26c] ss:$16 sps:$4 sm:$0xff]  }
  0xb2   :  { %1556 = vmatprep.mubr.bf16.mxu1 %v3539_v31  ;;  %1331 = vmatprep.mubr.bf16.mxu0 %v3585_v32 }
  0xb9   :  { %1557 = vmatmul.mubr.bf16.gmra.mxu1 %v3542_v33  ;;  %1332 = vmatmul.mubr.bf16.gmra.mxu0 %v3589_v34 }
  0xba   :  { %1564 = vmatprep.mubr.bf16.mxu1 %v3545_v35  ;;  %1339 = vmatprep.mubr.bf16.mxu0 %v3591_v36 }
  0xc1   :  { %1565 = vmatmul.mubr.bf16.gmra.mxu1 %v3548_v38  ;;  %1340 = vmatmul.mubr.bf16.gmra.mxu0 %v3595_v39  ;;  %v3620_v39 = vld [vmem:[%s4607_s0 + $0x28c] ss:$16 sps:$4 sm:$0xff]  }
  0xc2   :  { %1572 = vmatprep.mubr.bf16.mxu1 %v3551_v40  ;;  %1347 = vmatprep.mubr.bf16.mxu0 %v3597_v41 }
  0xc9   :  { %1573 = vmatmul.mubr.bf16.gmra.mxu1 %v3554_v44  ;;  %1348 = vmatmul.mubr.bf16.gmra.mxu0 %v3601_v45 }
  0xca   :  { %1580 = vmatprep.mubr.bf16.mxu1 %v3557_v46  ;;  %1355 = vmatprep.mubr.bf16.mxu0 %v3604_v47  ;;  %v3618_v47 = vld [vmem:[%s4607_s0 + $0x288] ss:$16 sps:$4 sm:$0xff]  }
  0xd1   :  { %1581 = vmatmul.mubr.bf16.gmra.mxu1 %v3560_v50  ;;  %1356 = vmatmul.mubr.bf16.gmra.mxu0 %v3608_v51 }
  0xd2   :  { %1588 = vmatprep.mubr.bf16.mxu1 %v3563_v52  ;;  %1363 = vmatprep.mubr.bf16.mxu0 %v3610_v53 }
  0xd9   :  { %1589 = vmatmul.mubr.bf16.gmra.mxu1 %v3566_v55  ;;  %1364 = vmatmul.mubr.bf16.gmra.mxu0 %v3614_v56 }
  0xda   :  { %1596 = vmatprep.mubr.bf16.mxu1 %v3569_v57  ;;  %1371 = vmatprep.mubr.bf16.mxu0 %v3616_v58  ;;  %v3625_v57 = vld [vmem:[%s4607_s0 + $0x2a8] ss:$16 sps:$4 sm:$0xff]  }
  0xe1   :  { %1597 = vmatmul.mubr.bf16.gmra.mxu1 %v3572_v59  ;;  %1372 = vmatmul.mubr.bf16.gmra.mxu0 %v3621_v60  ;;  %v3633_v59 = vld [vmem:[%s4607_s0 + $0x2cc] ss:$16 sps:$4 sm:$0xff]  }
  0xe2   :  { %1604 = vmatprep.mubr.bf16.mxu1 %v3575_v61  ;;  %1379 = vmatprep.mubr.bf16.mxu0 %v3623_v62 }
  0xe9   :  { %1605 = vmatmul.mubr.bf16.gmra.mxu1 %v3578_v63  ;;  %1380 = vmatmul.mubr.bf16.gmra.mxu0 %v3628_v1 }
  0xea   :  { %1612 = vmatprep.mubr.bf16.mxu1 %v3581_v2  ;;  %1387 = vmatprep.mubr.bf16.mxu0 %v3629_v3 }
  0xf1   :  { %1613 = vmatmul.mubr.bf16.gmra.mxu1 %v3584_v4  ;;  %1388 = vmatmul.mubr.bf16.gmra.mxu0 %v3634_v5  ;;  %v3631_v4 = vld [vmem:[%s4607_s0 + $0x2c8] ss:$16 sps:$4 sm:$0xff]  }
  0xf2   :  { %1620 = vmatprep.mubr.bf16.mxu1 %v3587_v6  ;;  %1395 = vmatprep.mubr.bf16.mxu0 %v3635_v7  ;;  %v3639_v6 = vld [vmem:[%s4607_s0 + $0x2ec] ss:$16 sps:$4 sm:$0xff]  }
  0xf9   :  { %1621 = vmatmul.mubr.bf16.gmra.mxu1 %v3590_v0  ;;  %1396 = vmatmul.mubr.bf16.gmra.mxu0 %v3640_v8 }
  0xfa   :  { %1628 = vmatprep.mubr.bf16.mxu1 %v3593_v9 }
 0x101   :  { %v4162_v12 = vpop.f32.mrf.mxu1  ;;  %1629 = vmatmul.mubr.bf16.gmra.mxu1 %v3596_v10  ;;  %v4164_v13 = vpop.f32.mrf.mxu0 }
 0x102   :  { %1636 = vmatprep.mubr.bf16.mxu1 %v3599_v11 }
 0x103   :  { %v1407_v14 = vpop.f32.mrf.mxu1  ;;  %v1215_v15 = vpop.f32.mrf.mxu0 }
 0x104   :  { %v3637_v15 = vld [vmem:[%s4607_s0 + $0x2e8] ss:$16 sps:$4 sm:$0xff]  }
 0x105   :  { %v4166_v16 = vpop.f32.mrf.mxu1  ;;  %v4171_v18 = vpop.f32.mrf.mxu0 }
 0x107   :  { %v1410_v20 = vpop.f32.mrf.mxu1  ;;  %v1218_v21 = vpop.f32.mrf.mxu0 }
 0x109   :  { %v4176_v22 = vpop.f32.mrf.mxu1  ;;  %1637 = vmatmul.mubr.bf16.gmra.mxu1 %v3602_v17  ;;  %v4178_v23 = vpop.f32.mrf.mxu0 }
 0x10a   :  { %1644 = vmatprep.mubr.bf16.mxu1 %v3606_v19  ;;  %v3644_v19 = vld [vmem:[%s4607_s0 + $0x30c] ss:$16 sps:$4 sm:$0xff]  }
 0x10b   :  { %v1415_v24 = vpop.f32.mrf.mxu1  ;;  %v1223_v25 = vpop.f32.mrf.mxu0 }
 0x10d   :  { %v4180_v26 = vpop.f32.mrf.mxu1  ;;  %v4185_v28 = vpop.f32.mrf.mxu0 }
 0x10f   :  { %v1418_v30 = vpop.f32.mrf.mxu1  ;;  %v1226_v31 = vpop.f32.mrf.mxu0 }
 0x110   :  { %v3642_v31 = vld [vmem:[%s4607_s0 + $0x308] ss:$16 sps:$4 sm:$0xff]  }
 0x111   :  { %v4190_v32 = vpop.f32.mrf.mxu1  ;;  %1645 = vmatmul.mubr.bf16.gmra.mxu1 %v3609_v27  ;;  %v4192_v33 = vpop.f32.mrf.mxu0 }
 0x112   :  { %1652 = vmatprep.mubr.bf16.mxu1 %v3612_v29 }
 0x113   :  { %v1423_v34 = vpop.f32.mrf.mxu1  ;;  %v1231_v35 = vpop.f32.mrf.mxu0 }
 0x114   :  { %v3649_v35 = vld [vmem:[%s4607_s0 + $0x32c] ss:$16 sps:$4 sm:$0xff]  }
 0x115   :  { %v4194_v36 = vpop.f32.mrf.mxu1  ;;  %v4199_v38 = vpop.f32.mrf.mxu0 }
 0x117   :  { %v1426_v40 = vpop.f32.mrf.mxu1  ;;  %v1234_v41 = vpop.f32.mrf.mxu0 }
 0x119   :  { %v4204_v42 = vpop.f32.mrf.mxu1  ;;  %1653 = vmatmul.mubr.bf16.gmra.mxu1 %v3615_v37  ;;  %v4206_v43 = vpop.f32.mrf.mxu0 }
 0x11a   :  { %1660 = vmatprep.mubr.bf16.mxu1 %v3620_v39 }
 0x11b   :  { %v1431_v44 = vpop.f32.mrf.mxu1  ;;  %v1239_v45 = vpop.f32.mrf.mxu0 }
 0x11c   :  { %v4280_v45 = vld [vmem:[%s4609_s2] ss:$0 sm:$0xff] }
 0x11d   :  { %v4208_v46 = vpop.f32.mrf.mxu1  ;;  %v4213_v48 = vpop.f32.mrf.mxu0 }
 0x11f   :  { %v1434_v50 = vpop.f32.mrf.mxu1  ;;  %v1242_v51 = vpop.f32.mrf.mxu0 }
 0x120   :  { %v3647_v51 = vld [vmem:[%s4607_s0 + $0x328] ss:$16 sps:$4 sm:$0xff]  }
 0x121   :  { %v4218_v52 = vpop.f32.mrf.mxu1  ;;  %1661 = vmatmul.mubr.bf16.gmra.mxu1 %v3618_v47  ;;  %v4220_v53 = vpop.f32.mrf.mxu0 }
 0x122   :  { %1668 = vmatprep.mubr.bf16.mxu1 %v3627_v49 }
 0x123   :  { %v1439_v54 = vpop.f32.mrf.mxu1  ;;  %v1247_v55 = vpop.f32.mrf.mxu0 }
 0x125   :  { %v4222_v56 = vpop.f32.mrf.mxu1  ;;  %v4227_v58 = vpop.f32.mrf.mxu0 }
 0x127   :  { %v1442_v60 = vpop.f32.mrf.mxu1  ;;  %v1250_v61 = vpop.f32.mrf.mxu0 }
 0x129   :  { %v4232_v62 = vpop.f32.mrf.mxu1  ;;  %1669 = vmatmul.mubr.bf16.gmra.mxu1 %v3625_v57  ;;  %v4234_v63 = vpop.f32.mrf.mxu0 }
 0x12a   :  { %1676 = vmatprep.mubr.bf16.mxu1 %v3633_v59 }
 0x12b   :  { %v1447_v1 = vpop.f32.mrf.mxu1  ;;  %v1255_v2 = vpop.f32.mrf.mxu0 }
 0x12d   :  { %v4236_v3 = vpop.f32.mrf.mxu1  ;;  %v4241_v5 = vpop.f32.mrf.mxu0 }
 0x12f   :  { %v1450_v7 = vpop.f32.mrf.mxu1  ;;  %v1258_v0 = vpop.f32.mrf.mxu0 }
 0x131   :  { %v4246_v8 = vpop.f32.mrf.mxu1  ;;  %1677 = vmatmul.mubr.bf16.gmra.mxu1 %v3631_v4  ;;  %v4248_v9 = vpop.f32.mrf.mxu0 }
 0x132   :  { %1684 = vmatprep.mubr.bf16.mxu1 %v3639_v6 }
 0x133   :  { %v1455_v10 = vpop.f32.mrf.mxu1  ;;  %v1263_v11 = vpop.f32.mrf.mxu0 }
 0x135   :  { %v4250_v14 = vpop.f32.mrf.mxu1  ;;  %v4255_v17 = vpop.f32.mrf.mxu0 }
 0x137   :  { %v1458_v20 = vpop.f32.mrf.mxu1  ;;  %v1266_v21 = vpop.f32.mrf.mxu0 }
 0x139   :  { %v4260_v24 = vpop.f32.mrf.mxu1  ;;  %1685 = vmatmul.mubr.bf16.gmra.mxu1 %v3637_v15  ;;  %v4262_v25 = vpop.f32.mrf.mxu0  ;;  %v3652_v15 = vld [vmem:[%s4607_s0 + $0x348] ss:$16 sps:$4 sm:$0xff]  }
 0x13a   :  { %1692 = vmatprep.mubr.bf16.mxu1 %v3644_v19 }
 0x13b   :  { %v1463_v27 = vpop.f32.mrf.mxu1  ;;  %v1271_v29 = vpop.f32.mrf.mxu0 }
 0x13d   :  { %v4264_v30 = vpop.f32.mrf.mxu1  ;;  %v4269_v34 = vpop.f32.mrf.mxu0 }
 0x13f   :  { %v1466_v37 = vpop.f32.mrf.mxu1  ;;  %v1274_v39 = vpop.f32.mrf.mxu0 }
 0x141   :  { %v1502_v40 = vpop.f32.mrf.mxu1  ;;  %1693 = vmatmul.mubr.bf16.gmra.mxu1 %v3642_v31  ;;  %v4274_v41 = vpop.f32.mrf.mxu0 }
 0x142   :  { %v1503_v44 = vadd.f32 %v1502_v40, %v4164_v13  ;;  %1700 = vmatprep.mubr.bf16.mxu1 %v3649_v35  ;;  %v3654_v13 = vld [vmem:[%s4607_s0 + $0x34c] ss:$16 sps:$4 sm:$0xff]  }
 0x143   :  { %v1504_v47 = vpop.f32.mrf.mxu1  ;;  %v1279_v49 = vpop.f32.mrf.mxu0 }
 0x144   :  { %v1959_v55 = vadd.f32 %v4280_v45, %v1503_v44 }
 0x145   :  { %v1505_v50 = vpop.f32.mrf.mxu1  ;;  %v4285_v54 = vpop.f32.mrf.mxu0 }
 0x146   :  { %v1506_v57 = vadd.f32 %v1505_v50, %v4171_v18  ;;  %v2023_v4 = vmax.f32 %v1959_v55, 0.0 }
 0x147   :  { %v1507_v59 = vpop.f32.mrf.mxu1  ;;  %v1282_v60 = vpop.f32.mrf.mxu0 }
 0x148   :  { %v1960_v61 = vadd.f32 %v4280_v45, %v1506_v57 }
 0x149   :  { %v1510_v1 = vpop.f32.mrf.mxu1  ;;  %1701 = vmatmul.mubr.bf16.gmra.mxu1 %v3647_v51  ;;  %v4293_v2 = vpop.f32.mrf.mxu0  ;;  %v3656_v51 = vld [vmem:[%s4607_s0 + $0x368] ss:$16 sps:$4 sm:$0xff]  }
 0x14a   :  { %v2024_v6 = vmax.f32 %v1960_v61, 0.0  ;;  %v1511_v7 = vadd.f32 %v1510_v1, %v4178_v23  ;;  %1708 = vmatprep.mubr.bf16.mxu1 %v3654_v13  ;;  %v3658_v23 = vld [vmem:[%s4607_s0 + $0x36c] ss:$16 sps:$4 sm:$0xff]  }
 0x14b   :  { %v1512_v0 = vpop.f32.mrf.mxu1  ;;  %v1287_v10 = vpop.f32.mrf.mxu0 }
 0x14c   :  { %v2087_v18 = vpack.c.bf16 %v2024_v6, %v2023_v4  ;;  %v1961_v20 = vadd.f32 %v4280_v45, %v1511_v7 }
 0x14d   :  { %v1513_v11 = vpop.f32.mrf.mxu1  ;;  %v4299_v19 = vpop.f32.mrf.mxu0 }
 0x14e   :  { %v1514_v21 = vadd.f32 %v1513_v11, %v4185_v28  ;;  %3342 = vmatprep.mubr.bf16.mxu0 %v2087_v18  ;;  %v2025_v39 = vmax.f32 %v1961_v20, 0.0 }
 0x14f   :  { %v1515_v27 = vpop.f32.mrf.mxu1  ;;  %v1290_v29 = vpop.f32.mrf.mxu0 }
 0x150   :  { %v1962_v31 = vadd.f32 %v4280_v45, %v1514_v21 }
 0x151   :  { %v1518_v35 = vpop.f32.mrf.mxu1  ;;  %1709 = vmatmul.mubr.bf16.gmra.mxu1 %v3652_v15  ;;  %v4307_v37 = vpop.f32.mrf.mxu0  ;;  %v3659_v15 = vld [vmem:[%s4607_s0 + $0x388] ss:$16 sps:$4 sm:$0xff]  }
 0x152   :  { %v2026_v40 = vmax.f32 %v1962_v31, 0.0  ;;  %v1519_v44 = vadd.f32 %v1518_v35, %v4192_v33  ;;  %1716 = vmatprep.mubr.bf16.mxu1 %v3658_v23  ;;  %v3661_v33 = vld [vmem:[%s4607_s0 + $0x38c] ss:$16 sps:$4 sm:$0xff]  }
 0x153   :  { %v1520_v47 = vpop.f32.mrf.mxu1  ;;  %v1295_v28 = vpop.f32.mrf.mxu0 }
 0x154   :  { %v2088_v49 = vpack.c.bf16 %v2026_v40, %v2025_v39  ;;  %v1963_v57 = vadd.f32 %v4280_v45, %v1519_v44 }
 0x155   :  { %v1521_v50 = vpop.f32.mrf.mxu1  ;;  %v4313_v55 = vpop.f32.mrf.mxu0 }
 0x156   :  { %v1522_v13 = vadd.f32 %v1521_v50, %v4199_v38  ;;  %3343 = vmatmul.mubr.bf16.vlgmr.msra.gmra.mxu0 %v2088_v49  ;;  %v2027_v6 = vmax.f32 %v1963_v57, 0.0 }
 0x157   :  { %v1523_v59 = vpop.f32.mrf.mxu1  ;;  %v1298_v60 = vpop.f32.mrf.mxu0 }
 0x158   :  { %v1964_v61 = vadd.f32 %v4280_v45, %v1522_v13 }
 0x159   :  { %v1526_v1 = vpop.f32.mrf.mxu1  ;;  %1717 = vmatmul.mubr.bf16.gmra.mxu1 %v3656_v51  ;;  %v4321_v4 = vpop.f32.mrf.mxu0  ;;  %v3662_v51 = vld [vmem:[%s4607_s0 + $0x3a8] ss:$16 sps:$4 sm:$0xff]  }
 0x15a   :  { %v2028_v7 = vmax.f32 %v1964_v61, 0.0  ;;  %v1527_v0 = vadd.f32 %v1526_v1, %v4206_v43  ;;  %1724 = vmatprep.mubr.bf16.mxu1 %v3661_v33  ;;  %v3664_v43 = vld [vmem:[%s4607_s0 + $0x3ac] ss:$16 sps:$4 sm:$0xff]  }
 0x15b   :  { %v1528_v10 = vpop.f32.mrf.mxu1  ;;  %v1303_v38 = vpop.f32.mrf.mxu0 }
 0x15c   :  { %v2089_v18 = vpack.c.bf16 %v2028_v7, %v2027_v6  ;;  %v1965_v21 = vadd.f32 %v4280_v45, %v1527_v0 }
 0x15d   :  { %v1529_v11 = vpop.f32.mrf.mxu1  ;;  %v4327_v20 = vpop.f32.mrf.mxu0 }
 0x15e   :  { %v1530_v23 = vadd.f32 %v1529_v11, %v4213_v48  ;;  %3346 = vmatprep.mubr.bf16.mxu0 %v2089_v18  ;;  %v2029_v40 = vmax.f32 %v1965_v21, 0.0 }
 0x15f   :  { %v1531_v27 = vpop.f32.mrf.mxu1  ;;  %v1306_v29 = vpop.f32.mrf.mxu0 }
 0x160   :  { %v1966_v31 = vadd.f32 %v4280_v45, %v1530_v23 }
 0x161   :  { %v1534_v35 = vpop.f32.mrf.mxu1  ;;  %1725 = vmatmul.mubr.bf16.gmra.mxu1 %v3659_v15  ;;  %v4335_v39 = vpop.f32.mrf.mxu0  ;;  %v3665_v15 = vld [vmem:[%s4607_s0 + $0x3c8] ss:$16 sps:$4 sm:$0xff]  }
 0x162   :  { %v2030_v44 = vmax.f32 %v1966_v31, 0.0  ;;  %v1535_v47 = vadd.f32 %v1534_v35, %v4220_v53  ;;  %1732 = vmatprep.mubr.bf16.mxu1 %v3664_v43  ;;  %v3667_v53 = vld [vmem:[%s4607_s0 + $0x3cc] ss:$16 sps:$4 sm:$0xff]  }
 0x163   :  { %v1536_v28 = vpop.f32.mrf.mxu1  ;;  %v1311_v48 = vpop.f32.mrf.mxu0 }
 0x164   :  { %v2090_v49 = vpack.c.bf16 %v2030_v44, %v2029_v40  ;;  %v1967_v13 = vadd.f32 %v4280_v45, %v1535_v47 }
 0x165   :  { %v1537_v50 = vpop.f32.mrf.mxu1  ;;  %v4341_v57 = vpop.f32.mrf.mxu0 }
 0x166   :  { %v1538_v33 = vadd.f32 %v1537_v50, %v4227_v58  ;;  %3347 = vmatmul.mubr.bf16.gmra.mxu0 %v2090_v49  ;;  %v2031_v7 = vmax.f32 %v1967_v13, 0.0 }
 0x167   :  { %v1539_v59 = vpop.f32.mrf.mxu1  ;;  %v1314_v60 = vpop.f32.mrf.mxu0 }
 0x168   :  { %v1968_v61 = vadd.f32 %v4280_v45, %v1538_v33 }
 0x169   :  { %v1542_v1 = vpop.f32.mrf.mxu1  ;;  %1733 = vmatmul.mubr.bf16.gmra.mxu1 %v3662_v51  ;;  %v4349_v6 = vpop.f32.mrf.mxu0  ;;  %v3668_v51 = vld [vmem:[%s4607_s0 + $0x3e8] ss:$16 sps:$4 sm:$0xff]  }
 0x16a   :  { %v2032_v0 = vmax.f32 %v1968_v61, 0.0  ;;  %v1543_v10 = vadd.f32 %v1542_v1, %v4234_v63  ;;  %1740 = vmatprep.mubr.bf16.mxu1 %v3667_v53  ;;  %v3670_v63 = vld [vmem:[%s4607_s0 + $0x3ec] ss:$16 sps:$4 sm:$0xff]  }
 0x16b   :  { %v1544_v38 = vpop.f32.mrf.mxu1  ;;  %v1319_v58 = vpop.f32.mrf.mxu0 }
 0x16c   :  { %v2091_v18 = vpack.c.bf16 %v2032_v0, %v2031_v7  ;;  %v1969_v23 = vadd.f32 %v4280_v45, %v1543_v10 }
 0x16d   :  { %v1545_v11 = vpop.f32.mrf.mxu1  ;;  %v4355_v21 = vpop.f32.mrf.mxu0 }
 0x16e   :  { %v1546_v43 = vadd.f32 %v1545_v11, %v4241_v5  ;;  %3350 = vmatprep.mubr.bf16.mxu0 %v2091_v18  ;;  %v2033_v44 = vmax.f32 %v1969_v23, 0.0 }
 0x16f   :  { %v1547_v27 = vpop.f32.mrf.mxu1  ;;  %v1322_v29 = vpop.f32.mrf.mxu0 }
 0x170   :  { %v1970_v31 = vadd.f32 %v4280_v45, %v1546_v43 }
 0x171   :  { %v1550_v35 = vpop.f32.mrf.mxu1  ;;  %1741 = vmatmul.mubr.bf16.gmra.mxu1 %v3665_v15  ;;  %v4363_v40 = vpop.f32.mrf.mxu0 }
 0x172   :  { %v2034_v47 = vmax.f32 %v1970_v31, 0.0  ;;  %v1551_v28 = vadd.f32 %v1550_v35, %v4248_v9  ;;  %1748 = vmatprep.mubr.bf16.mxu1 %v3670_v63 }
 0x173   :  { %v1552_v48 = vpop.f32.mrf.mxu1  ;;  %v1327_v5 = vpop.f32.mrf.mxu0 }
 0x174   :  { %v2092_v49 = vpack.c.bf16 %v2034_v47, %v2033_v44  ;;  %v1971_v33 = vadd.f32 %v4280_v45, %v1551_v28 }
 0x175   :  { %v1553_v50 = vpop.f32.mrf.mxu1  ;;  %v4369_v13 = vpop.f32.mrf.mxu0 }
 0x176   :  { %v1554_v53 = vadd.f32 %v1553_v50, %v4255_v17  ;;  %3351 = vmatmul.mubr.bf16.gmra.mxu0 %v2092_v49  ;;  %v2035_v7 = vmax.f32 %v1971_v33, 0.0 }
 0x177   :  { %v1555_v59 = vpop.f32.mrf.mxu1  ;;  %v1330_v60 = vpop.f32.mrf.mxu0 }
 0x178   :  { %v1972_v9 = vadd.f32 %v4280_v45, %v1554_v53 }
 0x179   :  { %v1558_v61 = vpop.f32.mrf.mxu1  ;;  %1749 = vmatmul.mubr.bf16.gmra.mxu1 %v3668_v51  ;;  %v4374_v1 = vpop.f32.mrf.mxu0 }
 0x17a   :  { %v2036_v0 = vmax.f32 %v1972_v9, 0.0  ;;  %v1559_v10 = vadd.f32 %v1558_v61, %v4262_v25 }
 0x17b   :  { %v1560_v38 = vpop.f32.mrf.mxu1  ;;  %v1335_v58 = vpop.f32.mrf.mxu0 }
 0x17c   :  { %v2093_v18 = vpack.c.bf16 %v2036_v0, %v2035_v7  ;;  %v1973_v17 = vadd.f32 %v4280_v45, %v1559_v10 }
 0x17d   :  { %v1561_v11 = vpop.f32.mrf.mxu1  ;;  %v4377_v15 = vpop.f32.mrf.mxu0 }
 0x17e   :  { %v1562_v23 = vadd.f32 %v1561_v11, %v4269_v34  ;;  %3354 = vmatprep.mubr.bf16.mxu0 %v2093_v18  ;;  %v2037_v35 = vmax.f32 %v1973_v17, 0.0 }
 0x17f   :  { %v1563_v43 = vpop.f32.mrf.mxu1  ;;  %v1338_v63 = vpop.f32.mrf.mxu0 }
 0x180   :  { %v1974_v27 = vadd.f32 %v4280_v45, %v1562_v23 }
 0x181   :  { %v1566_v29 = vpop.f32.mrf.mxu1  ;;  %v4382_v31 = vpop.f32.mrf.mxu0 }
 0x182   :  { %v2038_v25 = vmax.f32 %v1974_v27, 0.0  ;;  %v1567_v44 = vadd.f32 %v1566_v29, %v4274_v41 }
 0x183   :  { %v1568_v47 = vpop.f32.mrf.mxu1  ;;  %v1343_v28 = vpop.f32.mrf.mxu0 }
 0x184   :  { %v2094_v48 = vpack.c.bf16 %v2038_v25, %v2037_v35  ;;  %v1975_v34 = vadd.f32 %v4280_v45, %v1567_v44 }
 0x185   :  { %v1569_v5 = vpop.f32.mrf.mxu1  ;;  %v4385_v49 = vpop.f32.mrf.mxu0 }
 0x186   :  { %v1570_v50 = vadd.f32 %v1569_v5, %v4285_v54  ;;  %3355 = vmatmul.mubr.bf16.gmra.mxu0 %v2094_v48  ;;  %v2039_v9 = vmax.f32 %v1975_v34, 0.0 }
 0x187   :  { %v1571_v51 = vpop.f32.mrf.mxu1  ;;  %v1346_v33 = vpop.f32.mrf.mxu0 }
 0x188   :  { %v1976_v53 = vadd.f32 %v4280_v45, %v1570_v50 }
 0x189   :  { %v1574_v59 = vpop.f32.mrf.mxu1  ;;  %v4390_v60 = vpop.f32.mrf.mxu0 }
 0x18a   :  { %v2040_v41 = vmax.f32 %v1976_v53, 0.0  ;;  %v1575_v61 = vadd.f32 %v1574_v59, %v4293_v2 }
 0x18b   :  { %v1576_v7 = vpop.f32.mrf.mxu1  ;;  %v1351_v0 = vpop.f32.mrf.mxu0 }
 0x18c   :  { %v2095_v10 = vpack.c.bf16 %v2040_v41, %v2039_v9  ;;  %v1977_v54 = vadd.f32 %v4280_v45, %v1575_v61 }
 0x18d   :  { %v1577_v38 = vpop.f32.mrf.mxu1  ;;  %v4393_v58 = vpop.f32.mrf.mxu0 }
 0x18e   :  { %v1578_v18 = vadd.f32 %v1577_v38, %v4299_v19  ;;  %3358 = vmatprep.mubr.bf16.mxu0 %v2095_v10  ;;  %v2041_v27 = vmax.f32 %v1977_v54, 0.0 }
 0x18f   :  { %v1579_v11 = vpop.f32.mrf.mxu1  ;;  %v1354_v17 = vpop.f32.mrf.mxu0 }
 0x190   :  { %v1978_v23 = vadd.f32 %v4280_v45, %v1578_v18 }
 0x191   :  { %v1582_v43 = vpop.f32.mrf.mxu1  ;;  %v4398_v63 = vpop.f32.mrf.mxu0 }
 0x192   :  { %v2042_v2 = vmax.f32 %v1978_v23, 0.0  ;;  %v1583_v29 = vadd.f32 %v1582_v43, %v4307_v37 }
 0x193   :  { %v1584_v35 = vpop.f32.mrf.mxu1  ;;  %v1359_v25 = vpop.f32.mrf.mxu0 }
 0x194   :  { %v2096_v44 = vpack.c.bf16 %v2042_v2, %v2041_v27  ;;  %v1979_v19 = vadd.f32 %v4280_v45, %v1583_v29 }
 0x195   :  { %v1585_v47 = vpop.f32.mrf.mxu1  ;;  %v4401_v28 = vpop.f32.mrf.mxu0 }
 0x196   :  { %v1586_v48 = vadd.f32 %v1585_v47, %v4313_v55  ;;  %3359 = vmatmul.mubr.bf16.gmra.mxu0 %v2096_v44  ;;  %v2043_v53 = vmax.f32 %v1979_v19, 0.0 }
 0x197   :  { %v1587_v5 = vpop.f32.mrf.mxu1  ;;  %v1362_v34 = vpop.f32.mrf.mxu0 }
 0x198   :  { %v1980_v50 = vadd.f32 %v4280_v45, %v1586_v48 }
 0x199   :  { %v1590_v51 = vpop.f32.mrf.mxu1  ;;  %v4406_v33 = vpop.f32.mrf.mxu0 }
 0x19a   :  { %v2044_v37 = vmax.f32 %v1980_v50, 0.0  ;;  %v1591_v59 = vadd.f32 %v1590_v51, %v4321_v4 }
 0x19b   :  { %v1592_v9 = vpop.f32.mrf.mxu1  ;;  %v1367_v41 = vpop.f32.mrf.mxu0 }
 0x19c   :  { %v2097_v61 = vpack.c.bf16 %v2044_v37, %v2043_v53  ;;  %v1981_v55 = vadd.f32 %v4280_v45, %v1591_v59 }
 0x19d   :  { %v1593_v7 = vpop.f32.mrf.mxu1  ;;  %v4409_v0 = vpop.f32.mrf.mxu0 }
 0x19e   :  { %v1594_v10 = vadd.f32 %v1593_v7, %v4327_v20  ;;  %3362 = vmatprep.mubr.bf16.mxu0 %v2097_v61  ;;  %v2045_v23 = vmax.f32 %v1981_v55, 0.0 }
 0x19f   :  { %v1595_v38 = vpop.f32.mrf.mxu1  ;;  %v1370_v54 = vpop.f32.mrf.mxu0 }
 0x1a0   :  { %v1982_v18 = vadd.f32 %v4280_v45, %v1594_v10 }
 0x1a1   :  { %v1598_v11 = vpop.f32.mrf.mxu1  ;;  %v4414_v17 = vpop.f32.mrf.mxu0 }
 0x1a2   :  { %v2046_v4 = vmax.f32 %v1982_v18, 0.0  ;;  %v1599_v43 = vadd.f32 %v1598_v11, %v4335_v39 }
 0x1a3   :  { %v1600_v27 = vpop.f32.mrf.mxu1  ;;  %v1375_v2 = vpop.f32.mrf.mxu0 }
 0x1a4   :  { %v2098_v29 = vpack.c.bf16 %v2046_v4, %v2045_v23  ;;  %v1983_v20 = vadd.f32 %v4280_v45, %v1599_v43 }
 0x1a5   :  { %v1601_v35 = vpop.f32.mrf.mxu1  ;;  %v4417_v25 = vpop.f32.mrf.mxu0 }
 0x1a6   :  { %v1602_v44 = vadd.f32 %v1601_v35, %v4341_v57  ;;  %3363 = vmatmul.mubr.bf16.gmra.mxu0 %v2098_v29  ;;  %v2047_v50 = vmax.f32 %v1983_v20, 0.0 }
 0x1a7   :  { %v1603_v47 = vpop.f32.mrf.mxu1  ;;  %v1378_v19 = vpop.f32.mrf.mxu0 }
 0x1a8   :  { %v1984_v48 = vadd.f32 %v4280_v45, %v1602_v44 }
 0x1a9   :  { %v1606_v5 = vpop.f32.mrf.mxu1  ;;  %v4422_v34 = vpop.f32.mrf.mxu0 }
 0x1aa   :  { %v2048_v39 = vmax.f32 %v1984_v48, 0.0  ;;  %v1607_v51 = vadd.f32 %v1606_v5, %v4349_v6 }
 0x1ab   :  { %v1608_v53 = vpop.f32.mrf.mxu1  ;;  %v1383_v37 = vpop.f32.mrf.mxu0 }
 0x1ac   :  { %v2099_v59 = vpack.c.bf16 %v2048_v39, %v2047_v50  ;;  %v1985_v57 = vadd.f32 %v4280_v45, %v1607_v51 }
 0x1ad   :  { %v1609_v9 = vpop.f32.mrf.mxu1  ;;  %v4425_v41 = vpop.f32.mrf.mxu0 }
 0x1ae   :  { %v1610_v61 = vadd.f32 %v1609_v9, %v4355_v21  ;;  %3366 = vmatprep.mubr.bf16.mxu0 %v2099_v59  ;;  %v2049_v18 = vmax.f32 %v1985_v57, 0.0 }
 0x1af   :  { %v1611_v7 = vpop.f32.mrf.mxu1  ;;  %v1386_v55 = vpop.f32.mrf.mxu0 }
 0x1b0   :  { %v1986_v10 = vadd.f32 %v4280_v45, %v1610_v61 }
 0x1b1   :  { %v1614_v38 = vpop.f32.mrf.mxu1  ;;  %v4430_v54 = vpop.f32.mrf.mxu0 }
 0x1b2   :  { %v2050_v6 = vmax.f32 %v1986_v10, 0.0  ;;  %v1615_v11 = vadd.f32 %v1614_v38, %v4363_v40 }
 0x1b3   :  { %v1616_v23 = vpop.f32.mrf.mxu1  ;;  %v1391_v4 = vpop.f32.mrf.mxu0 }
 0x1b4   :  { %v2100_v43 = vpack.c.bf16 %v2050_v6, %v2049_v18  ;;  %v1987_v21 = vadd.f32 %v4280_v45, %v1615_v11 }
 0x1b5   :  { %v1617_v27 = vpop.f32.mrf.mxu1  ;;  %v4433_v2 = vpop.f32.mrf.mxu0 }
 0x1b6   :  { %v1618_v29 = vadd.f32 %v1617_v27, %v4369_v13  ;;  %3367 = vmatmul.mubr.bf16.gmra.mxu0 %v2100_v43  ;;  %v2051_v48 = vmax.f32 %v1987_v21, 0.0 }
 0x1b7   :  { %v1619_v35 = vpop.f32.mrf.mxu1  ;;  %v1394_v20 = vpop.f32.mrf.mxu0 }
 0x1b8   :  { %v1988_v44 = vadd.f32 %v4280_v45, %v1618_v29 }
 0x1b9   :  { %v1622_v47 = vpop.f32.mrf.mxu1  ;;  %v4438_v19 = vpop.f32.mrf.mxu0 }
 0x1ba   :  { %v2052_v40 = vmax.f32 %v1988_v44, 0.0  ;;  %v1623_v5 = vadd.f32 %v1622_v47, %v4374_v1 }
 0x1bb   :  { %v1624_v50 = vpop.f32.mrf.mxu1  ;;  %v1399_v39 = vpop.f32.mrf.mxu0 }
 0x1bc   :  { %v2101_v51 = vpack.c.bf16 %v2052_v40, %v2051_v48  ;;  %v1989_v13 = vadd.f32 %v4280_v45, %v1623_v5 }
 0x1bd   :  { %v1625_v53 = vpop.f32.mrf.mxu1  ;;  %v4441_v37 = vpop.f32.mrf.mxu0 }
 0x1be   :  { %v1626_v59 = vadd.f32 %v1625_v53, %v4377_v15  ;;  %3370 = vmatprep.mubr.bf16.mxu0 %v2101_v51  ;;  %v2053_v55 = vmax.f32 %v1989_v13, 0.0 }
 0x1bf   :  { %v1627_v9 = vpop.f32.mrf.mxu1  ;;  %v1402_v57 = vpop.f32.mrf.mxu0 }
 0x1c0   :  { %v1990_v61 = vadd.f32 %v4280_v45, %v1626_v59 }
 0x1c1   :  { %v1630_v7 = vpop.f32.mrf.mxu1 }
 0x1c2   :  { %v2054_v10 = vmax.f32 %v1990_v61, 0.0  ;;  %v1631_v1 = vadd.f32 %v1630_v7, %v4382_v31 }
 0x1c3   :  { %v1632_v38 = vpop.f32.mrf.mxu1 }
 0x1c4   :  { %v2102_v18 = vpack.c.bf16 %v2054_v10, %v2053_v55  ;;  %v1991_v11 = vadd.f32 %v4280_v45, %v1631_v1 }
 0x1c5   :  { %v1633_v6 = vpop.f32.mrf.mxu1 }
 0x1c6   :  { %v1634_v23 = vadd.f32 %v1633_v6, %v4385_v49  ;;  %3371 = vmatmul.mubr.bf16.gmra.mxu0 %v2102_v18  ;;  %v2055_v27 = vmax.f32 %v1991_v11, 0.0 }
 0x1c7   :  { %v1635_v4 = vpop.f32.mrf.mxu1 }
 0x1c8   :  { %v1992_v15 = vadd.f32 %v4280_v45, %v1634_v23 }
 0x1c9   :  { %v1638_v43 = vpop.f32.mrf.mxu1 }
 0x1ca   :  { %v2056_v21 = vmax.f32 %v1992_v15, 0.0  ;;  %v1639_v29 = vadd.f32 %v1638_v43, %v4390_v60 }
 0x1cb   :  { %v1640_v35 = vpop.f32.mrf.mxu1 }
 0x1cc   :  { %v2103_v20 = vpack.c.bf16 %v2056_v21, %v2055_v27  ;;  %v1993_v31 = vadd.f32 %v4280_v45, %v1639_v29 }
 0x1cd   :  { %v1641_v44 = vpop.f32.mrf.mxu1 }
 0x1ce   :  { %v1642_v47 = vadd.f32 %v1641_v44, %v4393_v58  ;;  %3374 = vmatprep.mubr.bf16.mxu0 %v2103_v20  ;;  %v2057_v5 = vmax.f32 %v1993_v31, 0.0 }
 0x1cf   :  { %v1643_v48 = vpop.f32.mrf.mxu1 }
 0x1d0   :  { %v1994_v49 = vadd.f32 %v4280_v45, %v1642_v47 }
 0x1d1   :  { %v1646_v40 = vpop.f32.mrf.mxu1 }
 0x1d2   :  { %v2058_v50 = vmax.f32 %v1994_v49, 0.0  ;;  %v1647_v39 = vadd.f32 %v1646_v40, %v4398_v63 }
 0x1d3   :  { %v1648_v51 = vpop.f32.mrf.mxu1 }
 0x1d4   :  { %v2104_v53 = vpack.c.bf16 %v2058_v50, %v2057_v5  ;;  %v1995_v60 = vadd.f32 %v4280_v45, %v1647_v39 }
 0x1d5   :  { %v1649_v13 = vpop.f32.mrf.mxu1 }
 0x1d6   :  { %v1650_v59 = vadd.f32 %v1649_v13, %v4401_v28  ;;  %3375 = vmatmul.mubr.bf16.gmra.mxu0 %v2104_v53  ;;  %v2059_v61 = vmax.f32 %v1995_v60, 0.0 }
 0x1d7   :  { %v1651_v9 = vpop.f32.mrf.mxu1 }
 0x1d8   :  { %v1996_v58 = vadd.f32 %v4280_v45, %v1650_v59 }
 0x1d9   :  { %v1654_v57 = vpop.f32.mrf.mxu1 }
 0x1da   :  { %v2060_v7 = vmax.f32 %v1996_v58, 0.0  ;;  %v1655_v55 = vadd.f32 %v1654_v57, %v4406_v33 }
 0x1db   :  { %v1656_v10 = vpop.f32.mrf.mxu1 }
 0x1dc   :  { %v2105_v1 = vpack.c.bf16 %v2060_v7, %v2059_v61  ;;  %v1997_v63 = vadd.f32 %v4280_v45, %v1655_v55 }
 0x1dd   :  { %v1657_v38 = vpop.f32.mrf.mxu1 }
 0x1de   :  { %v1658_v18 = vadd.f32 %v1657_v38, %v4409_v0  ;;  %3378 = vmatprep.mubr.bf16.mxu0 %v2105_v1  ;;  %v2061_v23 = vmax.f32 %v1997_v63, 0.0 }
 0x1df   :  { %v1659_v6 = vpop.f32.mrf.mxu1 }
 0x1e0   :  { %v1998_v28 = vadd.f32 %v4280_v45, %v1658_v18 }
 0x1e1   :  { %v1662_v11 = vpop.f32.mrf.mxu1 }
 0x1e2   :  { %v2062_v4 = vmax.f32 %v1998_v28, 0.0  ;;  %v1663_v15 = vadd.f32 %v1662_v11, %v4414_v17 }
 0x1e3   :  { %v1664_v43 = vpop.f32.mrf.mxu1 }
 0x1e4   :  { %v2106_v27 = vpack.c.bf16 %v2062_v4, %v2061_v23  ;;  %v1999_v33 = vadd.f32 %v4280_v45, %v1663_v15 }
 0x1e5   :  { %v1665_v21 = vpop.f32.mrf.mxu1 }
 0x1e6   :  { %v1666_v29 = vadd.f32 %v1665_v21, %v4417_v25  ;;  %3379 = vmatmul.mubr.bf16.gmra.mxu0 %v2106_v27  ;;  %v2063_v44 = vmax.f32 %v1999_v33, 0.0 }
 0x1e7   :  { %v1667_v35 = vpop.f32.mrf.mxu1 }
 0x1e8   :  { %v2000_v0 = vadd.f32 %v4280_v45, %v1666_v29 }
 0x1e9   :  { %v1670_v20 = vpop.f32.mrf.mxu1 }
 0x1ea   :  { %v2064_v31 = vmax.f32 %v2000_v0, 0.0  ;;  %v1671_v47 = vadd.f32 %v1670_v20, %v4422_v34 }
 0x1eb   :  { %v1672_v48 = vpop.f32.mrf.mxu1 }
 0x1ec   :  { %v2107_v49 = vpack.c.bf16 %v2064_v31, %v2063_v44  ;;  %v2001_v17 = vadd.f32 %v4280_v45, %v1671_v47 }
 0x1ed   :  { %v1673_v40 = vpop.f32.mrf.mxu1 }
 0x1ee   :  { %v1674_v5 = vadd.f32 %v1673_v40, %v4425_v41  ;;  %3382 = vmatprep.mubr.bf16.mxu0 %v2107_v49  ;;  %v2065_v51 = vmax.f32 %v2001_v17, 0.0 }
 0x1ef   :  { %v1675_v50 = vpop.f32.mrf.mxu1 }
 0x1f0   :  { %v2002_v25 = vadd.f32 %v4280_v45, %v1674_v5 }
 0x1f1   :  { %v1678_v39 = vpop.f32.mrf.mxu1 }
 0x1f2   :  { %v2066_v53 = vmax.f32 %v2002_v25, 0.0  ;;  %v1679_v13 = vadd.f32 %v1678_v39, %v4430_v54 }
 0x1f3   :  { %v1680_v60 = vpop.f32.mrf.mxu1 }
 0x1f4   :  { %v2108_v59 = vpack.c.bf16 %v2066_v53, %v2065_v51  ;;  %v2003_v34 = vadd.f32 %v4280_v45, %v1679_v13 }
 0x1f5   :  { %v1681_v9 = vpop.f32.mrf.mxu1 }
 0x1f6   :  { %v1682_v58 = vadd.f32 %v1681_v9, %v4433_v2  ;;  %3383 = vmatmul.mubr.bf16.gmra.mxu0 %v2108_v59  ;;  %v2067_v7 = vmax.f32 %v2003_v34, 0.0 }
 0x1f7   :  { %v1683_v57 = vpop.f32.mrf.mxu1 }
 0x1f8   :  { %v2004_v41 = vadd.f32 %v4280_v45, %v1682_v58 }
 0x1f9   :  { %v1686_v61 = vpop.f32.mrf.mxu1 }
 0x1fa   :  { %v2068_v55 = vmax.f32 %v2004_v41, 0.0  ;;  %v1687_v10 = vadd.f32 %v1686_v61, %v4438_v19 }
 0x1fb   :  { %v1688_v1 = vpop.f32.mrf.mxu1 }
 0x1fc   :  { %v2109_v38 = vpack.c.bf16 %v2068_v55, %v2067_v7  ;;  %v2005_v54 = vadd.f32 %v4280_v45, %v1687_v10 }
 0x1fd   :  { %v1689_v63 = vpop.f32.mrf.mxu1 }
 0x1fe   :  { %v1690_v18 = vadd.f32 %v1689_v63, %v4441_v37  ;;  %3386 = vmatprep.mubr.bf16.mxu0 %v2109_v38  ;;  %v2069_v11 = vmax.f32 %v2005_v54, 0.0 }
 0x1ff   :  { %v1691_v6 = vpop.f32.mrf.mxu1 }
 0x200   :  { %v2006_v2 = vadd.f32 %v4280_v45, %v1690_v18 }
 0x201   :  { %v1694_v28 = vpop.f32.mrf.mxu1 }
 0x202   :  { %v2070_v23 = vmax.f32 %v2006_v2, 0.0  ;;  %v1695_v4 = vadd.f32 %v1694_v28, %v4162_v12 }
 0x203   :  { %v1696_v15 = vpop.f32.mrf.mxu1 }
 0x204   :  { %v2110_v43 = vpack.c.bf16 %v2070_v23, %v2069_v11  ;;  %v2007_v19 = vadd.f32 %v4280_v45, %v1695_v4 }
 0x205   :  { %v1697_v27 = vpop.f32.mrf.mxu1 }
 0x206   :  { %v1698_v21 = vadd.f32 %v1697_v27, %v4166_v16  ;;  %3387 = vmatmul.mubr.bf16.gmra.mxu0 %v2110_v43  ;;  %v2071_v35 = vmax.f32 %v2007_v19, 0.0 }
 0x207   :  { %v1699_v33 = vpop.f32.mrf.mxu1 }
 0x208   :  { %v2008_v37 = vadd.f32 %v4280_v45, %v1698_v21 }
 0x209   :  { %v1702_v29 = vpop.f32.mrf.mxu1 }
 0x20a   :  { %v2072_v0 = vmax.f32 %v2008_v37, 0.0  ;;  %v1703_v20 = vadd.f32 %v1702_v29, %v4176_v22 }
 0x20b   :  { %v1704_v44 = vpop.f32.mrf.mxu1 }
 0x20c   :  { %v2111_v31 = vpack.c.bf16 %v2072_v0, %v2071_v35  ;;  %v2009_v12 = vadd.f32 %v4280_v45, %v1703_v20 }
 0x20d   :  { %v1705_v47 = vpop.f32.mrf.mxu1 }
 0x20e   :  { %v1706_v48 = vadd.f32 %v1705_v47, %v4180_v26  ;;  %3390 = vmatprep.mubr.bf16.mxu0 %v2111_v31  ;;  %v2073_v17 = vmax.f32 %v2009_v12, 0.0 }
 0x20f   :  { %v1707_v49 = vpop.f32.mrf.mxu1 }
 0x210   :  { %v2010_v16 = vadd.f32 %v4280_v45, %v1706_v48 }
 0x211   :  { %v1710_v40 = vpop.f32.mrf.mxu1 }
 0x212   :  { %v2074_v5 = vmax.f32 %v2010_v16, 0.0  ;;  %v1711_v50 = vadd.f32 %v1710_v40, %v4190_v32 }
 0x213   :  { %v1712_v25 = vpop.f32.mrf.mxu1 }
 0x214   :  { %v2112_v39 = vpack.c.bf16 %v2074_v5, %v2073_v17  ;;  %v2011_v22 = vadd.f32 %v4280_v45, %v1711_v50 }
 0x215   :  { %v1713_v51 = vpop.f32.mrf.mxu1 }
 0x216   :  { %v1714_v53 = vadd.f32 %v1713_v51, %v4194_v36  ;;  %v3344_v13 = vpop.f32.mrf.mxu0  ;;  %3391 = vmatmul.mubr.bf16.gmra.mxu0 %v2112_v39  ;;  %v2075_v34 = vmax.f32 %v2011_v22, 0.0 }
 0x217   :  { %v1715_v60 = vpop.f32.mrf.mxu1 }
 0x218   :  { %v2012_v26 = vadd.f32 %v4280_v45, %v1714_v53  ;;  %v2217_v59 = vpop.f32.mrf.mxu0 }
 0x219   :  { %v1718_v9 = vpop.f32.mrf.mxu1 }
 0x21a   :  { %v2076_v58 = vmax.f32 %v2012_v26, 0.0  ;;  %v1719_v57 = vadd.f32 %v1718_v9, %v4204_v42  ;;  %v3345_v41 = vpop.f32.mrf.mxu0 }
 0x21b   :  { %v3103_v32 = vpack.c.bf16 %v3345_v41, %v3344_v13  ;;  %v1720_v61 = vpop.f32.mrf.mxu1 }
 0x21c   :  { %v2220_v7 = vpop.f32.mrf.mxu0  ;;  %v2113_v55 = vpack.c.bf16 %v2076_v58, %v2075_v34  ;;  %v2013_v1 = vadd.f32 %v4280_v45, %v1719_v57 }
 0x21d   :  { %3255 = vst [vmem:[%s4610_s4 + $0x8] sm:$0xff] %v3103_v32   ;;  %v3098_v36 = vpack.c.bf16 %v2220_v7, %v2217_v59  ;;  %v1721_v10 = vpop.f32.mrf.mxu1 }
 0x21e   :  { %v1722_v38 = vadd.f32 %v1721_v10, %v4208_v46  ;;  %3394 = vmatprep.mubr.bf16.mxu0 %v2113_v55  ;;  %v2077_v18 = vmax.f32 %v2013_v1, 0.0 }
 0x21f   :  { %3099 = vst [vmem:[%s4610_s4] sm:$0xff] %v3098_v36   ;;  %v1723_v42 = vpop.f32.mrf.mxu1 }
 0x220   :  { %v2014_v63 = vadd.f32 %v4280_v45, %v1722_v38 }
 0x221   :  { %v1726_v54 = vpop.f32.mrf.mxu1 }
 0x222   :  { %v2078_v6 = vmax.f32 %v2014_v63, 0.0  ;;  %v1727_v2 = vadd.f32 %v1726_v54, %v4218_v52 }
 0x223   :  { %v1728_v28 = vpop.f32.mrf.mxu1 }
 0x224   :  { %v2114_v11 = vpack.c.bf16 %v2078_v6, %v2077_v18  ;;  %v2015_v4 = vadd.f32 %v4280_v45, %v1727_v2 }
 0x225   :  { %v1729_v23 = vpop.f32.mrf.mxu1 }
 0x226   :  { %v1730_v46 = vadd.f32 %v1729_v23, %v4222_v56  ;;  %v3348_v15 = vpop.f32.mrf.mxu0  ;;  %3395 = vmatmul.mubr.bf16.gmra.mxu0 %v2114_v11  ;;  %v2079_v33 = vmax.f32 %v2015_v4, 0.0 }
 0x227   :  { %v1731_v43 = vpop.f32.mrf.mxu1 }
 0x228   :  { %v2016_v27 = vadd.f32 %v4280_v45, %v1730_v46  ;;  %v2233_v19 = vpop.f32.mrf.mxu0 }
 0x229   :  { %v1734_v21 = vpop.f32.mrf.mxu1 }
 0x22a   :  { %v2080_v37 = vmax.f32 %v2016_v27, 0.0  ;;  %v1735_v29 = vadd.f32 %v1734_v21, %v4232_v62  ;;  %v3349_v35 = vpop.f32.mrf.mxu0 }
 0x22b   :  { %v3113_v52 = vpack.c.bf16 %v3349_v35, %v3348_v15  ;;  %v1736_v0 = vpop.f32.mrf.mxu1 }
 0x22c   :  { %v2236_v20 = vpop.f32.mrf.mxu0  ;;  %v2115_v44 = vpack.c.bf16 %v2080_v37, %v2079_v33  ;;  %v2017_v47 = vadd.f32 %v4280_v45, %v1735_v29 }
 0x22d   :  { %3257 = vst [vmem:[%s4610_s4 + $0x18] sm:$0xff] %v3113_v52   ;;  %v3108_v56 = vpack.c.bf16 %v2236_v20, %v2233_v19  ;;  %v1737_v31 = vpop.f32.mrf.mxu1 }
 0x22e   :  { %v1738_v12 = vadd.f32 %v1737_v31, %v4236_v3  ;;  %3398 = vmatprep.mubr.bf16.mxu0 %v2115_v44  ;;  %v2081_v16 = vmax.f32 %v2017_v47, 0.0 }
 0x22f   :  { %3256 = vst [vmem:[%s4610_s4 + $0x10] sm:$0xff] %v3108_v56   ;;  %v1739_v62 = vpop.f32.mrf.mxu1 }
 0x230   :  { %v2018_v48 = vadd.f32 %v4280_v45, %v1738_v12 }
 0x231   :  { %v1742_v49 = vpop.f32.mrf.mxu1 }
 0x232   :  { %v2082_v40 = vmax.f32 %v2018_v48, 0.0  ;;  %v1743_v17 = vadd.f32 %v1742_v49, %v4246_v8 }
 0x233   :  { %v1744_v5 = vpop.f32.mrf.mxu1 }
 0x234   :  { %v2116_v50 = vpack.c.bf16 %v2082_v40, %v2081_v16  ;;  %v2019_v39 = vadd.f32 %v4280_v45, %v1743_v17 }
 0x235   :  { %v1745_v25 = vpop.f32.mrf.mxu1 }
 0x236   :  { %v1746_v3 = vadd.f32 %v1745_v25, %v4250_v14  ;;  %v3352_v51 = vpop.f32.mrf.mxu0  ;;  %3399 = vmatmul.mubr.bf16.gmra.mxu0 %v2116_v50  ;;  %v2083_v26 = vmax.f32 %v2019_v39, 0.0 }
 0x237   :  { %v1747_v22 = vpop.f32.mrf.mxu1 }
 0x238   :  { %v2020_v53 = vadd.f32 %v4280_v45, %v1746_v3  ;;  %v2249_v13 = vpop.f32.mrf.mxu0 }
 0x239   :  { %v1750_v60 = vpop.f32.mrf.mxu1 }
 0x23a   :  { %v2084_v59 = vmax.f32 %v2020_v53, 0.0  ;;  %v1751_v9 = vadd.f32 %v1750_v60, %v4260_v24  ;;  %v3353_v34 = vpop.f32.mrf.mxu0 }
 0x23b   :  { %v3123_v8 = vpack.c.bf16 %v3353_v34, %v3352_v51  ;;  %v1752_v58 = vpop.f32.mrf.mxu1 }
 0x23c   :  { %v2252_v57 = vpop.f32.mrf.mxu0  ;;  %v2117_v41 = vpack.c.bf16 %v2084_v59, %v2083_v26  ;;  %v2021_v61 = vadd.f32 %v4280_v45, %v1751_v9 }
 0x23d   :  { %3259 = vst [vmem:[%s4610_s4 + $0x28] sm:$0xff] %v3123_v8   ;;  %v3118_v14 = vpack.c.bf16 %v2252_v57, %v2249_v13  ;;  %v1753_v32 = vpop.f32.mrf.mxu1 }
 0x23e   :  { %v1754_v7 = vadd.f32 %v1753_v32, %v4264_v30  ;;  %3402 = vmatprep.mubr.bf16.mxu0 %v2117_v41  ;;  %v2085_v36 = vmax.f32 %v2021_v61, 0.0 }
 0x23f   :  { %3258 = vst [vmem:[%s4610_s4 + $0x20] sm:$0xff] %v3118_v14   ;;  %v1755_v24 = vpop.f32.mrf.mxu1 }
 0x240   :  { %v2022_v55 = vadd.f32 %v4280_v45, %v1754_v7 }
 0x242   :  { %v2086_v10 = vmax.f32 %v2022_v55, 0.0 }
 0x244   :  { %v2118_v1 = vpack.c.bf16 %v2086_v10, %v2085_v36 }
 0x246   :  { %v3356_v38 = vpop.f32.mrf.mxu0  ;;  %3403 = vmatmul.mubr.bf16.gmra.mxu0 %v2118_v1 }
 0x248   :  { %v2265_v42 = vpop.f32.mrf.mxu0 }
 0x24a   :  { %v3357_v63 = vpop.f32.mrf.mxu0 }
 0x24b   :  { %v3133_v54 = vpack.c.bf16 %v3357_v63, %v3356_v38 }
 0x24c   :  { %v2268_v18 = vpop.f32.mrf.mxu0 }
 0x24d   :  { %3261 = vst [vmem:[%s4610_s4 + $0x38] sm:$0xff] %v3133_v54   ;;  %v3128_v30 = vpack.c.bf16 %v2268_v18, %v2265_v42 }
 0x24f   :  { %3260 = vst [vmem:[%s4610_s4 + $0x30] sm:$0xff] %v3128_v30  }
 0x256   :  { %v3360_v6 = vpop.f32.mrf.mxu0 }
 0x258   :  { %v2281_v45 = vpop.f32.mrf.mxu0 }
 0x25a   :  { %v3361_v2 = vpop.f32.mrf.mxu0 }
 0x25b   :  { %v3143_v28 = vpack.c.bf16 %v3361_v2, %v3360_v6 }
 0x25c   :  { %v2284_v11 = vpop.f32.mrf.mxu0 }
 0x25d   :  { %3263 = vst [vmem:[%s4610_s4 + $0x48] sm:$0xff] %v3143_v28   ;;  %v3138_v23 = vpack.c.bf16 %v2284_v11, %v2281_v45 }
 0x25f   :  { %3262 = vst [vmem:[%s4610_s4 + $0x40] sm:$0xff] %v3138_v23  }
 0x266   :  { %v3364_v4 = vpop.f32.mrf.mxu0 }
 0x268   :  { %v2297_v46 = vpop.f32.mrf.mxu0 }
 0x26a   :  { %v3365_v15 = vpop.f32.mrf.mxu0 }
 0x26b   :  { %v3153_v43 = vpack.c.bf16 %v3365_v15, %v3364_v4 }
 0x26c   :  { %v2300_v27 = vpop.f32.mrf.mxu0 }
 0x26d   :  { %3265 = vst [vmem:[%s4610_s4 + $0x58] sm:$0xff] %v3153_v43   ;;  %v3148_v19 = vpack.c.bf16 %v2300_v27, %v2297_v46 }
 0x26f   :  { %3264 = vst [vmem:[%s4610_s4 + $0x50] sm:$0xff] %v3148_v19  }
 0x276   :  { %v3368_v21 = vpop.f32.mrf.mxu0 }
 0x278   :  { %v2313_v33 = vpop.f32.mrf.mxu0 }
 0x27a   :  { %v3369_v37 = vpop.f32.mrf.mxu0 }
 0x27b   :  { %v3163_v29 = vpack.c.bf16 %v3369_v37, %v3368_v21 }
 0x27c   :  { %v2316_v35 = vpop.f32.mrf.mxu0 }
 0x27d   :  { %3267 = vst [vmem:[%s4610_s4 + $0x68] sm:$0xff] %v3163_v29   ;;  %v3158_v52 = vpack.c.bf16 %v2316_v35, %v2313_v33 }
 0x27f   :  { %3266 = vst [vmem:[%s4610_s4 + $0x60] sm:$0xff] %v3158_v52  }
 0x286   :  { %v3372_v0 = vpop.f32.mrf.mxu0 }
 0x288   :  { %v2329_v20 = vpop.f32.mrf.mxu0 }
 0x28a   :  { %v3373_v44 = vpop.f32.mrf.mxu0 }
 0x28b   :  { %v3173_v56 = vpack.c.bf16 %v3373_v44, %v3372_v0 }
 0x28c   :  { %v2332_v31 = vpop.f32.mrf.mxu0 }
 0x28d   :  { %3269 = vst [vmem:[%s4610_s4 + $0x78] sm:$0xff] %v3173_v56   ;;  %v3168_v47 = vpack.c.bf16 %v2332_v31, %v2329_v20 }
 0x28f   :  { %3268 = vst [vmem:[%s4610_s4 + $0x70] sm:$0xff] %v3168_v47  }
 0x296   :  { %v3376_v12 = vpop.f32.mrf.mxu0 }
 0x298   :  { %v2345_v62 = vpop.f32.mrf.mxu0 }
 0x29a   :  { %v3377_v48 = vpop.f32.mrf.mxu0 }
 0x29b   :  { %v3183_v49 = vpack.c.bf16 %v3377_v48, %v3376_v12 }
 0x29c   :  { %v2348_v16 = vpop.f32.mrf.mxu0 }
 0x29d   :  { %3271 = vst [vmem:[%s4610_s4 + $0x88] sm:$0xff] %v3183_v49   ;;  %v3178_v40 = vpack.c.bf16 %v2348_v16, %v2345_v62 }
 0x29f   :  { %3270 = vst [vmem:[%s4610_s4 + $0x80] sm:$0xff] %v3178_v40  }
 0x2a6   :  { %v3380_v17 = vpop.f32.mrf.mxu0 }
 0x2a8   :  { %v2361_v5 = vpop.f32.mrf.mxu0 }
 0x2aa   :  { %v3381_v50 = vpop.f32.mrf.mxu0 }
 0x2ab   :  { %v3193_v25 = vpack.c.bf16 %v3381_v50, %v3380_v17 }
 0x2ac   :  { %v2364_v39 = vpop.f32.mrf.mxu0 }
 0x2ad   :  { %3273 = vst [vmem:[%s4610_s4 + $0x98] sm:$0xff] %v3193_v25   ;;  %v3188_v3 = vpack.c.bf16 %v2364_v39, %v2361_v5 }
 0x2af   :  { %3272 = vst [vmem:[%s4610_s4 + $0x90] sm:$0xff] %v3188_v3  }
 0x2b6   :  { %v3384_v51 = vpop.f32.mrf.mxu0 }
 0x2b8   :  { %v2377_v22 = vpop.f32.mrf.mxu0 }
 0x2ba   :  { %v3385_v53 = vpop.f32.mrf.mxu0 }
 0x2bb   :  { %v3203_v13 = vpack.c.bf16 %v3385_v53, %v3384_v51 }
 0x2bc   :  { %v2380_v60 = vpop.f32.mrf.mxu0 }
 0x2bd   :  { %3275 = vst [vmem:[%s4610_s4 + $0xa8] sm:$0xff] %v3203_v13   ;;  %v3198_v26 = vpack.c.bf16 %v2380_v60, %v2377_v22 }
 0x2bf   :  { %3274 = vst [vmem:[%s4610_s4 + $0xa0] sm:$0xff] %v3198_v26  }
 0x2c6   :  { %v3388_v59 = vpop.f32.mrf.mxu0 }
 0x2c8   :  { %v2393_v9 = vpop.f32.mrf.mxu0 }
 0x2ca   :  { %v3389_v34 = vpop.f32.mrf.mxu0 }
 0x2cb   :  { %v3213_v8 = vpack.c.bf16 %v3389_v34, %v3388_v59 }
 0x2cc   :  { %v2396_v58 = vpop.f32.mrf.mxu0 }
 0x2cd   :  { %3277 = vst [vmem:[%s4610_s4 + $0xb8] sm:$0xff] %v3213_v8   ;;  %v3208_v57 = vpack.c.bf16 %v2396_v58, %v2393_v9 }
 0x2cf   :  { %3276 = vst [vmem:[%s4610_s4 + $0xb0] sm:$0xff] %v3208_v57  }
 0x2d6   :  { %v3392_v41 = vpop.f32.mrf.mxu0 }
 0x2d8   :  { %v2409_v14 = vpop.f32.mrf.mxu0 }
 0x2da   :  { %v3393_v32 = vpop.f32.mrf.mxu0 }
 0x2db   :  { %v3223_v61 = vpack.c.bf16 %v3393_v32, %v3392_v41 }
 0x2dc   :  { %v2412_v7 = vpop.f32.mrf.mxu0 }
 0x2dd   :  { %3279 = vst [vmem:[%s4610_s4 + $0xc8] sm:$0xff] %v3223_v61   ;;  %v3218_v24 = vpack.c.bf16 %v2412_v7, %v2409_v14 }
 0x2df   :  { %3278 = vst [vmem:[%s4610_s4 + $0xc0] sm:$0xff] %v3218_v24  }
 0x2e6   :  { %v3396_v55 = vpop.f32.mrf.mxu0 }
 0x2e8   :  { %v2425_v36 = vpop.f32.mrf.mxu0 }
 0x2ea   :  { %v3397_v10 = vpop.f32.mrf.mxu0 }
 0x2eb   :  { %v3233_v1 = vpack.c.bf16 %v3397_v10, %v3396_v55 }
 0x2ec   :  { %v2428_v38 = vpop.f32.mrf.mxu0 }
 0x2ed   :  { %3281 = vst [vmem:[%s4610_s4 + $0xd8] sm:$0xff] %v3233_v1   ;;  %v3228_v42 = vpack.c.bf16 %v2428_v38, %v2425_v36 }
 0x2ef   :  { %3280 = vst [vmem:[%s4610_s4 + $0xd0] sm:$0xff] %v3228_v42  }
 0x2f6   :  { %v3400_v63 = vpop.f32.mrf.mxu0 }
 0x2f8   :  { %v2441_v54 = vpop.f32.mrf.mxu0 }
 0x2fa   :  { %v3401_v18 = vpop.f32.mrf.mxu0 }
 0x2fb   :  { %v3243_v30 = vpack.c.bf16 %v3401_v18, %v3400_v63 }
 0x2fc   :  { %v2444_v6 = vpop.f32.mrf.mxu0 }
 0x2fd   :  { %3283 = vst [vmem:[%s4610_s4 + $0xe8] sm:$0xff] %v3243_v30   ;;  %v3238_v45 = vpack.c.bf16 %v2444_v6, %v2441_v54 }
 0x2ff   :  { %3282 = vst [vmem:[%s4610_s4 + $0xe0] sm:$0xff] %v3238_v45  }
 0x306   :  { %v3404_v2 = vpop.f32.mrf.mxu0 }
 0x308   :  { %v2457_v28 = vpop.f32.mrf.mxu0 }
 0x30a   :  { %v3405_v11 = vpop.f32.mrf.mxu0 }
 0x30b   :  { %v3253_v23 = vpack.c.bf16 %v3405_v11, %v3404_v2 }
 0x30c   :  { %v2460_v4 = vpop.f32.mrf.mxu0 }
 0x30d   :  { %3285 = vst [vmem:[%s4610_s4 + $0xf8] sm:$0xff] %v3253_v23   ;;  %v3248_v46 = vpack.c.bf16 %v2460_v4, %v2457_v28 }
 0x30f   :  { %3284 = vst [vmem:[%s4610_s4 + $0xf0] sm:$0xff] %v3248_v46  }

</bundles_post_ra>
